<compile_context>
chip_gen: v7x
topology: tpu7x:2x2x1
jax: 0.10.0
libtpu: 0.0.40
codegen_flags: <defaults>
</compile_context>

<pallas_src>
import functools

import jax
import jax.numpy as jnp
from jax import lax
from jax.experimental import pallas as pl
from jax.experimental.pallas import tpu as pltpu


# ----------------------------- glue: bilinear upsample ------------------------------
def bilinear_align_corners(x, out_h, out_w):
    """x: (B, H, W, C) -> (B, out_h, out_w, C); matches F.interpolate(..., mode='bilinear',
    align_corners=True)."""
    B, H, W, C = x.shape

    def coords(n_in, n_out):
        src = jnp.arange(n_out, dtype=jnp.float32) * ((n_in - 1) / (n_out - 1))
        i0 = jnp.clip(jnp.floor(src).astype(jnp.int32), 0, n_in - 2)
        frac = src - i0.astype(jnp.float32)
        return i0, i0 + 1, frac

    y0, y1, wy = coords(H, out_h)
    x0, x1, wx = coords(W, out_w)

    top = (x[:, y0, :, :] * (1.0 - wy)[None, :, None, None]
           + x[:, y1, :, :] * wy[None, :, None, None])
    out = (top[:, :, x0, :] * (1.0 - wx)[None, None, :, None]
           + top[:, :, x1, :] * wx[None, None, :, None])
    return out


# ----------------------------- Pallas kernel (hot path) -----------------------------
def superres_kernel(xt_ref, w0_ref, b0_ref, wrgb_ref, brgb_ref, out_ref, acc_ref):
    # xt_ref  : (TH+2, W+2, Cin)  f32   halo'd row-tile of the upsampled (and zero-padded) input
    # w0_ref  : (3, 3, Cin, Chid) bf16  conv0 weight (HWIO)
    # b0_ref  : (1, Chid)         f32   conv0 bias
    # wrgb_ref: (Chid, Cin)       bf16  torgb weight
    # brgb_ref: (1, Cin)          f32   torgb bias
    # out_ref : (TH, W, Cin)      f32   TH output rows
    # acc_ref : (TH*W, Chid)      f32   VMEM scratch accumulator
    th, w, cin = out_ref.shape

    xt = xt_ref[...]                        # f32 copy, feeds the residual path exactly
    xt_b = xt.astype(jnp.bfloat16)          # bf16 copy feeds the MXU (half the staging traffic)
    w0 = w0_ref[...]                        # (3, 3, Cin, Chid) bf16

    # 3x3 conv (stride 1, pad 1) as 9 shifted (TH*W, Cin) @ (Cin, Chid) bf16 matmuls,
    # accumulated in f32 into a single VMEM scratch accumulator.
    for dy in range(3):
        for dx in range(3):
            tap = xt_b[dy:dy + th, dx:dx + w, :].reshape(th * w, cin)
            p = jnp.dot(tap, w0[dy, dx], preferred_element_type=jnp.float32)
            if dy == 0 and dx == 0:
                acc_ref[...] = p
            else:
                acc_ref[...] += p

    h = acc_ref[...] + b0_ref[...]                        # (TH*W, Chid) f32
    h = jnp.where(h >= 0, h, 0.2 * h)                     # LeakyReLU(0.2)

    # torgb 1x1 conv + bias (bf16 operands, f32 accumulation)
    y = jnp.dot(h.astype(jnp.bfloat16), wrgb_ref[...],
                preferred_element_type=jnp.float32) + brgb_ref[...]

    # residual add with the (unpadded) upsampled input rows — exact f32 path
    center = xt[1:1 + th, 1:1 + w, :].reshape(th * w, cin)
    out_ref[...] = (center + y).reshape(th, w, cin).astype(out_ref.dtype)


def _pick_tile_h(hout, target):
    """Largest TH <= target that divides Hout and keeps the output block (8,128)-legal."""
    for th in range(min(target, hout), 0, -1):
        if hout % th == 0 and (th == hout or th % 8 == 0):
            return th
    return hout


def superres_forward(x_in_nhwc, w0, b0, wrgb, brgb, *, tile_h=16):
    """x_in_nhwc: (B, R, R, Cin) float32. Returns (B, 2R, 2R, Cin).

    tile_h: output rows per grid step. Default 16 keeps the per-step VMEM footprint
    (double-buffered in/out blocks + f32 accumulator) ~22 MiB at real EG3D sizes
    (W=512, Cin=32, Chid=128), which fits v7x's 64 MiB VMEM as well as v5e/v6e's 128 MiB.
    """
    B, H_in, W_in, Cin = x_in_nhwc.shape
    Hout, Wout = 2 * H_in, 2 * W_in
    Chid = w0.shape[-1]
    TH = _pick_tile_h(Hout, tile_h)
    nT = Hout // TH
    Wp = Wout + 2

    # TODO(synk): fuse the bilinear upsample + halo generation into the kernel to cut HBM traffic.
    # The two upsamples in the PyTorch forward are identical -> compute once.
    x_up = bilinear_align_corners(x_in_nhwc, Hout, Wout)
    xpad = jnp.pad(x_up, ((0, 0), (1, 1), (1, 1), (0, 0)))

    # Per-tile halo duplication: tile t carries padded rows [t*TH, t*TH + TH + 2), so the kernel
    # can use plain Blocked BlockSpecs (overlap-free index maps) with auto double-buffering.
    row_idx = jnp.arange(nT)[:, None] * TH + jnp.arange(TH + 2)[None, :]   # (nT, TH+2)
    xtiles = xpad[:, row_idx]                                              # (B, nT, TH+2, Wp, Cin)

    # bf16 weights for the MXU (accumulation stays f32; biases stay f32).
    w0_b = w0.astype(jnp.bfloat16)
    wrgb_b = wrgb.astype(jnp.bfloat16)

    flops = 2 * B * Hout * Wout * Chid * (9 * Cin + Cin)
    bytes_accessed = (xtiles.size * 4 + B * Hout * Wout * Cin * 4
                      + w0_b.size * 2 + wrgb_b.size * 2 + b0.size * 4 + brgb.size * 4)

    out = pl.pallas_call(
        superres_kernel,
        out_shape=jax.ShapeDtypeStruct((B, Hout, Wout, Cin), x_in_nhwc.dtype),
        grid_spec=pltpu.PrefetchScalarGridSpec(
            num_scalar_prefetch=0,
            grid=(B, nT),
            in_specs=[
                pl.BlockSpec((None, None, TH + 2, Wp, Cin), lambda b, t: (b, t, 0, 0, 0)),
                pl.BlockSpec((3, 3, Cin, Chid), lambda b, t: (0, 0, 0, 0)),
                pl.BlockSpec((1, Chid), lambda b, t: (0, 0)),
                pl.BlockSpec((Chid, Cin), lambda b, t: (0, 0)),
                pl.BlockSpec((1, Cin), lambda b, t: (0, 0)),
            ],
            out_specs=pl.BlockSpec((None, TH, Wout, Cin), lambda b, t: (b, t, 0, 0)),
            scratch_shapes=[pltpu.VMEM((TH * Wout, Chid), jnp.float32)],
        ),
        compiler_params=pltpu.CompilerParams(
            dimension_semantics=("parallel", "parallel")),   # v7x: shard tiles across both TCs
        cost_estimate=pl.CostEstimate(flops=int(flops), transcendentals=0,
                                      bytes_accessed=int(bytes_accessed)),
    )(xtiles, w0_b, b0.reshape(1, Chid), wrgb_b, brgb.reshape(1, Cin))
    return out


# ----------------------------- pure-JAX reference -----------------------------------
def reference_forward(x_in_nhwc, w0, b0, wrgb, brgb):
    B, H, W, Cin = x_in_nhwc.shape
    x_up = bilinear_align_corners(x_in_nhwc, 2 * H, 2 * W)
    h = lax.conv_general_dilated(
        x_up, w0, window_strides=(1, 1), padding="SAME",
        dimension_numbers=("NHWC", "HWIO", "NHWC")) + b0[None, None, None, :]
    h = jnp.where(h >= 0, h, 0.2 * h)
    y = jnp.einsum("bhwc,cd->bhwd", h, wrgb) + brgb[None, None, None, :]
    return x_up + y


# ----------------------------- demo -------------------------------------------------
if __name__ == "__main__":
    B, Cin, Chid, R = 2, 4, 8, 16   # small stand-in for (in_ch, hidden_ch, 256->512)

    key = jax.random.PRNGKey(0)
    kx, kw0, kb0, krgb = jax.random.split(key, 4)

    # PyTorch-style NCHW input, converted to the kernel's NHWC layout.
    x_nchw = jax.random.normal(kx, (B, Cin, R, R), jnp.float32)
    x_nhwc = jnp.transpose(x_nchw, (0, 2, 3, 1))

    # Deterministic parameters (synthetic; shapes follow the module's __init__).
    w0 = 0.1 * jax.random.normal(kw0, (3, 3, Cin, Chid), jnp.float32)       # conv0, HWIO
    b0 = 0.1 * jax.random.normal(kb0, (Chid,), jnp.float32)                 # conv0 bias
    wrgb = jax.random.uniform(krgb, (Chid, Cin), jnp.float32,
                              minval=-1e-5, maxval=1e-5)                    # torgb weight
    brgb = jnp.zeros((Cin,), jnp.float32)                                   # torgb bias

    # tile_h=8 at this toy size (Hout=32) -> grid=(2, 4), exercising the row pipeline.
    fwd = jax.jit(functools.partial(superres_forward, tile_h=8))
    out = jax.block_until_ready(fwd(x_nhwc, w0, b0, wrgb, brgb))
    ref = reference_forward(x_nhwc, w0, b0, wrgb, brgb)

    assert out.shape == (B, 2 * R, 2 * R, Cin), out.shape
    assert jnp.allclose(out, ref, rtol=1e-3, atol=1e-4), float(jnp.max(jnp.abs(out - ref)))
    print("KERNEL_OK")
</pallas_src>

<mosaic_0001>
module attributes {stable_mosaic.version = 11 : i64} {
  func.func @superres_kernel(%arg0: i32, %arg1: i32, %arg2: memref<1x1x10x34x4xf32, #tpu.memory_space<vmem>>, %arg3: memref<3x3x4x8xbf16, #tpu.memory_space<vmem>>, %arg4: memref<1x8xf32, #tpu.memory_space<vmem>>, %arg5: memref<8x4xbf16, #tpu.memory_space<vmem>>, %arg6: memref<1x4xf32, #tpu.memory_space<vmem>>, %arg7: memref<1x8x32x4xf32, #tpu.memory_space<vmem>>, %arg8: memref<256x8xf32, #tpu.memory_space<vmem>>) attributes {dimension_semantics = [#tpu.dimension_semantics<parallel>, #tpu.dimension_semantics<parallel>], iteration_bounds = array<i64: 2, 4>, scalar_prefetch = 0 : i64, scratch_operands = 1 : i64, tpu.core_type = #tpu.core_type<tc>, window_params = [{transform_indices = @transform_0, window_bounds = array<i64: 1, 1, 10, 34, 4>}, {pipeline_mode = #tpu.pipeline_mode<synchronous>, transform_indices = @transform_1, window_bounds = array<i64: 3, 3, 4, 8>}, {pipeline_mode = #tpu.pipeline_mode<synchronous>, transform_indices = @transform_2, window_bounds = array<i64: 1, 8>}, {pipeline_mode = #tpu.pipeline_mode<synchronous>, transform_indices = @transform_3, window_bounds = array<i64: 8, 4>}, {pipeline_mode = #tpu.pipeline_mode<synchronous>, transform_indices = @transform_4, window_bounds = array<i64: 1, 4>}, {transform_indices = @transform_5, window_bounds = array<i64: 1, 8, 32, 4>}]} {
    %c0 = arith.constant 0 : index
    %c0_0 = arith.constant 0 : index
    %c0_1 = arith.constant 0 : index
    %c0_2 = arith.constant 0 : index
    %c0_3 = arith.constant 0 : index
    %0 = vector.load %arg2[%c0, %c0_0, %c0_1, %c0_2, %c0_3] : memref<1x1x10x34x4xf32, #tpu.memory_space<vmem>>, vector<1x1x10x34x4xf32>
    %1 = vector.shape_cast %0 : vector<1x1x10x34x4xf32> to vector<10x34x4xf32>
    %2 = arith.truncf %1 : vector<10x34x4xf32> to vector<10x34x4xbf16>
    %c0_4 = arith.constant 0 : index
    %c0_5 = arith.constant 0 : index
    %c0_6 = arith.constant 0 : index
    %c0_7 = arith.constant 0 : index
    %3 = vector.load %arg3[%c0_4, %c0_5, %c0_6, %c0_7] : memref<3x3x4x8xbf16, #tpu.memory_space<vmem>>, vector<3x3x4x8xbf16>
    %4 = vector.extract_strided_slice %2 {offsets = [0, 0, 0], sizes = [8, 32, 4], strides = [1, 1, 1]} : vector<10x34x4xbf16> to vector<8x32x4xbf16>
    %5 = vector.shape_cast %4 : vector<8x32x4xbf16> to vector<256x4xbf16>
    %6 = vector.extract_strided_slice %3 {offsets = [0, 0, 0, 0], sizes = [1, 1, 4, 8], strides = [1, 1, 1, 1]} : vector<3x3x4x8xbf16> to vector<1x1x4x8xbf16>
    %7 = vector.shape_cast %6 : vector<1x1x4x8xbf16> to vector<4x8xbf16>
    %cst = arith.constant dense<0.000000e+00> : vector<256x8xf32>
    %8 = tpu.matmul %5, %7, %cst {dimension_numbers = #tpu.dot_dimension_numbers<[1], [0], [0], [1], [0, 0, 1, 1], [], []>} : vector<256x4xbf16>, vector<4x8xbf16>, vector<256x8xf32> -> vector<256x8xf32>
    %c0_8 = arith.constant 0 : index
    %c0_9 = arith.constant 0 : index
    %9 = vector.load %arg8[%c0_8, %c0_9] : memref<256x8xf32, #tpu.memory_space<vmem>>, vector<256x8xf32>
    tpu.vector_store %arg8[%c0_8, %c0_9], %8 {strides = array<i32>} : memref<256x8xf32, #tpu.memory_space<vmem>>, vector<256x8xf32>,
    %10 = vector.extract_strided_slice %2 {offsets = [0, 1, 0], sizes = [8, 32, 4], strides = [1, 1, 1]} : vector<10x34x4xbf16> to vector<8x32x4xbf16>
    %11 = vector.shape_cast %10 : vector<8x32x4xbf16> to vector<256x4xbf16>
    %12 = vector.extract_strided_slice %3 {offsets = [0, 1, 0, 0], sizes = [1, 1, 4, 8], strides = [1, 1, 1, 1]} : vector<3x3x4x8xbf16> to vector<1x1x4x8xbf16>
    %13 = vector.shape_cast %12 : vector<1x1x4x8xbf16> to vector<4x8xbf16>
    %cst_10 = arith.constant dense<0.000000e+00> : vector<256x8xf32>
    %14 = tpu.matmul %11, %13, %cst_10 {dimension_numbers = #tpu.dot_dimension_numbers<[1], [0], [0], [1], [0, 0, 1, 1], [], []>} : vector<256x4xbf16>, vector<4x8xbf16>, vector<256x8xf32> -> vector<256x8xf32>
    %c0_11 = arith.constant 0 : index
    %c0_12 = arith.constant 0 : index
    %15 = vector.load %arg8[%c0_11, %c0_12] : memref<256x8xf32, #tpu.memory_space<vmem>>, vector<256x8xf32>
    %16 = arith.addf %15, %14 : vector<256x8xf32>
    %c0_13 = arith.constant 0 : index
    %c0_14 = arith.constant 0 : index
    %17 = vector.load %arg8[%c0_13, %c0_14] : memref<256x8xf32, #tpu.memory_space<vmem>>, vector<256x8xf32>
    tpu.vector_store %arg8[%c0_13, %c0_14], %16 {strides = array<i32>} : memref<256x8xf32, #tpu.memory_space<vmem>>, vector<256x8xf32>,
    %18 = vector.extract_strided_slice %2 {offsets = [0, 2, 0], sizes = [8, 32, 4], strides = [1, 1, 1]} : vector<10x34x4xbf16> to vector<8x32x4xbf16>
    %19 = vector.shape_cast %18 : vector<8x32x4xbf16> to vector<256x4xbf16>
    %20 = vector.extract_strided_slice %3 {offsets = [0, 2, 0, 0], sizes = [1, 1, 4, 8], strides = [1, 1, 1, 1]} : vector<3x3x4x8xbf16> to vector<1x1x4x8xbf16>
    %21 = vector.shape_cast %20 : vector<1x1x4x8xbf16> to vector<4x8xbf16>
    %cst_15 = arith.constant dense<0.000000e+00> : vector<256x8xf32>
    %22 = tpu.matmul %19, %21, %cst_15 {dimension_numbers = #tpu.dot_dimension_numbers<[1], [0], [0], [1], [0, 0, 1, 1], [], []>} : vector<256x4xbf16>, vector<4x8xbf16>, vector<256x8xf32> -> vector<256x8xf32>
    %c0_16 = arith.constant 0 : index
    %c0_17 = arith.constant 0 : index
    %23 = vector.load %arg8[%c0_16, %c0_17] : memref<256x8xf32, #tpu.memory_space<vmem>>, vector<256x8xf32>
    %24 = arith.addf %23, %22 : vector<256x8xf32>
    %c0_18 = arith.constant 0 : index
    %c0_19 = arith.constant 0 : index
    %25 = vector.load %arg8[%c0_18, %c0_19] : memref<256x8xf32, #tpu.memory_space<vmem>>, vector<256x8xf32>
    tpu.vector_store %arg8[%c0_18, %c0_19], %24 {strides = array<i32>} : memref<256x8xf32, #tpu.memory_space<vmem>>, vector<256x8xf32>,
    %26 = vector.extract_strided_slice %2 {offsets = [1, 0, 0], sizes = [8, 32, 4], strides = [1, 1, 1]} : vector<10x34x4xbf16> to vector<8x32x4xbf16>
    %27 = vector.shape_cast %26 : vector<8x32x4xbf16> to vector<256x4xbf16>
    %28 = vector.extract_strided_slice %3 {offsets = [1, 0, 0, 0], sizes = [1, 1, 4, 8], strides = [1, 1, 1, 1]} : vector<3x3x4x8xbf16> to vector<1x1x4x8xbf16>
    %29 = vector.shape_cast %28 : vector<1x1x4x8xbf16> to vector<4x8xbf16>
    %cst_20 = arith.constant dense<0.000000e+00> : vector<256x8xf32>
    %30 = tpu.matmul %27, %29, %cst_20 {dimension_numbers = #tpu.dot_dimension_numbers<[1], [0], [0], [1], [0, 0, 1, 1], [], []>} : vector<256x4xbf16>, vector<4x8xbf16>, vector<256x8xf32> -> vector<256x8xf32>
    %c0_21 = arith.constant 0 : index
    %c0_22 = arith.constant 0 : index
    %31 = vector.load %arg8[%c0_21, %c0_22] : memref<256x8xf32, #tpu.memory_space<vmem>>, vector<256x8xf32>
    %32 = arith.addf %31, %30 : vector<256x8xf32>
    %c0_23 = arith.constant 0 : index
    %c0_24 = arith.constant 0 : index
    %33 = vector.load %arg8[%c0_23, %c0_24] : memref<256x8xf32, #tpu.memory_space<vmem>>, vector<256x8xf32>
    tpu.vector_store %arg8[%c0_23, %c0_24], %32 {strides = array<i32>} : memref<256x8xf32, #tpu.memory_space<vmem>>, vector<256x8xf32>,
    %34 = vector.extract_strided_slice %2 {offsets = [1, 1, 0], sizes = [8, 32, 4], strides = [1, 1, 1]} : vector<10x34x4xbf16> to vector<8x32x4xbf16>
    %35 = vector.shape_cast %34 : vector<8x32x4xbf16> to vector<256x4xbf16>
    %36 = vector.extract_strided_slice %3 {offsets = [1, 1, 0, 0], sizes = [1, 1, 4, 8], strides = [1, 1, 1, 1]} : vector<3x3x4x8xbf16> to vector<1x1x4x8xbf16>
    %37 = vector.shape_cast %36 : vector<1x1x4x8xbf16> to vector<4x8xbf16>
    %cst_25 = arith.constant dense<0.000000e+00> : vector<256x8xf32>
    %38 = tpu.matmul %35, %37, %cst_25 {dimension_numbers = #tpu.dot_dimension_numbers<[1], [0], [0], [1], [0, 0, 1, 1], [], []>} : vector<256x4xbf16>, vector<4x8xbf16>, vector<256x8xf32> -> vector<256x8xf32>
    %c0_26 = arith.constant 0 : index
    %c0_27 = arith.constant 0 : index
    %39 = vector.load %arg8[%c0_26, %c0_27] : memref<256x8xf32, #tpu.memory_space<vmem>>, vector<256x8xf32>
    %40 = arith.addf %39, %38 : vector<256x8xf32>
    %c0_28 = arith.constant 0 : index
    %c0_29 = arith.constant 0 : index
    %41 = vector.load %arg8[%c0_28, %c0_29] : memref<256x8xf32, #tpu.memory_space<vmem>>, vector<256x8xf32>
    tpu.vector_store %arg8[%c0_28, %c0_29], %40 {strides = array<i32>} : memref<256x8xf32, #tpu.memory_space<vmem>>, vector<256x8xf32>,
    %42 = vector.extract_strided_slice %2 {offsets = [1, 2, 0], sizes = [8, 32, 4], strides = [1, 1, 1]} : vector<10x34x4xbf16> to vector<8x32x4xbf16>
    %43 = vector.shape_cast %42 : vector<8x32x4xbf16> to vector<256x4xbf16>
    %44 = vector.extract_strided_slice %3 {offsets = [1, 2, 0, 0], sizes = [1, 1, 4, 8], strides = [1, 1, 1, 1]} : vector<3x3x4x8xbf16> to vector<1x1x4x8xbf16>
    %45 = vector.shape_cast %44 : vector<1x1x4x8xbf16> to vector<4x8xbf16>
    %cst_30 = arith.constant dense<0.000000e+00> : vector<256x8xf32>
    %46 = tpu.matmul %43, %45, %cst_30 {dimension_numbers = #tpu.dot_dimension_numbers<[1], [0], [0], [1], [0, 0, 1, 1], [], []>} : vector<256x4xbf16>, vector<4x8xbf16>, vector<256x8xf32> -> vector<256x8xf32>
    %c0_31 = arith.constant 0 : index
    %c0_32 = arith.constant 0 : index
    %47 = vector.load %arg8[%c0_31, %c0_32] : memref<256x8xf32, #tpu.memory_space<vmem>>, vector<256x8xf32>
    %48 = arith.addf %47, %46 : vector<256x8xf32>
    %c0_33 = arith.constant 0 : index
    %c0_34 = arith.constant 0 : index
    %49 = vector.load %arg8[%c0_33, %c0_34] : memref<256x8xf32, #tpu.memory_space<vmem>>, vector<256x8xf32>
    tpu.vector_store %arg8[%c0_33, %c0_34], %48 {strides = array<i32>} : memref<256x8xf32, #tpu.memory_space<vmem>>, vector<256x8xf32>,
    %50 = vector.extract_strided_slice %2 {offsets = [2, 0, 0], sizes = [8, 32, 4], strides = [1, 1, 1]} : vector<10x34x4xbf16> to vector<8x32x4xbf16>
    %51 = vector.shape_cast %50 : vector<8x32x4xbf16> to vector<256x4xbf16>
    %52 = vector.extract_strided_slice %3 {offsets = [2, 0, 0, 0], sizes = [1, 1, 4, 8], strides = [1, 1, 1, 1]} : vector<3x3x4x8xbf16> to vector<1x1x4x8xbf16>
    %53 = vector.shape_cast %52 : vector<1x1x4x8xbf16> to vector<4x8xbf16>
    %cst_35 = arith.constant dense<0.000000e+00> : vector<256x8xf32>
    %54 = tpu.matmul %51, %53, %cst_35 {dimension_numbers = #tpu.dot_dimension_numbers<[1], [0], [0], [1], [0, 0, 1, 1], [], []>} : vector<256x4xbf16>, vector<4x8xbf16>, vector<256x8xf32> -> vector<256x8xf32>
    %c0_36 = arith.constant 0 : index
    %c0_37 = arith.constant 0 : index
    %55 = vector.load %arg8[%c0_36, %c0_37] : memref<256x8xf32, #tpu.memory_space<vmem>>, vector<256x8xf32>
    %56 = arith.addf %55, %54 : vector<256x8xf32>
    %c0_38 = arith.constant 0 : index
    %c0_39 = arith.constant 0 : index
    %57 = vector.load %arg8[%c0_38, %c0_39] : memref<256x8xf32, #tpu.memory_space<vmem>>, vector<256x8xf32>
    tpu.vector_store %arg8[%c0_38, %c0_39], %56 {strides = array<i32>} : memref<256x8xf32, #tpu.memory_space<vmem>>, vector<256x8xf32>,
    %58 = vector.extract_strided_slice %2 {offsets = [2, 1, 0], sizes = [8, 32, 4], strides = [1, 1, 1]} : vector<10x34x4xbf16> to vector<8x32x4xbf16>
    %59 = vector.shape_cast %58 : vector<8x32x4xbf16> to vector<256x4xbf16>
    %60 = vector.extract_strided_slice %3 {offsets = [2, 1, 0, 0], sizes = [1, 1, 4, 8], strides = [1, 1, 1, 1]} : vector<3x3x4x8xbf16> to vector<1x1x4x8xbf16>
    %61 = vector.shape_cast %60 : vector<1x1x4x8xbf16> to vector<4x8xbf16>
    %cst_40 = arith.constant dense<0.000000e+00> : vector<256x8xf32>
    %62 = tpu.matmul %59, %61, %cst_40 {dimension_numbers = #tpu.dot_dimension_numbers<[1], [0], [0], [1], [0, 0, 1, 1], [], []>} : vector<256x4xbf16>, vector<4x8xbf16>, vector<256x8xf32> -> vector<256x8xf32>
    %c0_41 = arith.constant 0 : index
    %c0_42 = arith.constant 0 : index
    %63 = vector.load %arg8[%c0_41, %c0_42] : memref<256x8xf32, #tpu.memory_space<vmem>>, vector<256x8xf32>
    %64 = arith.addf %63, %62 : vector<256x8xf32>
    %c0_43 = arith.constant 0 : index
    %c0_44 = arith.constant 0 : index
    %65 = vector.load %arg8[%c0_43, %c0_44] : memref<256x8xf32, #tpu.memory_space<vmem>>, vector<256x8xf32>
    tpu.vector_store %arg8[%c0_43, %c0_44], %64 {strides = array<i32>} : memref<256x8xf32, #tpu.memory_space<vmem>>, vector<256x8xf32>,
    %66 = vector.extract_strided_slice %2 {offsets = [2, 2, 0], sizes = [8, 32, 4], strides = [1, 1, 1]} : vector<10x34x4xbf16> to vector<8x32x4xbf16>
    %67 = vector.shape_cast %66 : vector<8x32x4xbf16> to vector<256x4xbf16>
    %68 = vector.extract_strided_slice %3 {offsets = [2, 2, 0, 0], sizes = [1, 1, 4, 8], strides = [1, 1, 1, 1]} : vector<3x3x4x8xbf16> to vector<1x1x4x8xbf16>
    %69 = vector.shape_cast %68 : vector<1x1x4x8xbf16> to vector<4x8xbf16>
    %cst_45 = arith.constant dense<0.000000e+00> : vector<256x8xf32>
    %70 = tpu.matmul %67, %69, %cst_45 {dimension_numbers = #tpu.dot_dimension_numbers<[1], [0], [0], [1], [0, 0, 1, 1], [], []>} : vector<256x4xbf16>, vector<4x8xbf16>, vector<256x8xf32> -> vector<256x8xf32>
    %c0_46 = arith.constant 0 : index
    %c0_47 = arith.constant 0 : index
    %71 = vector.load %arg8[%c0_46, %c0_47] : memref<256x8xf32, #tpu.memory_space<vmem>>, vector<256x8xf32>
    %72 = arith.addf %71, %70 : vector<256x8xf32>
    %c0_48 = arith.constant 0 : index
    %c0_49 = arith.constant 0 : index
    %73 = vector.load %arg8[%c0_48, %c0_49] : memref<256x8xf32, #tpu.memory_space<vmem>>, vector<256x8xf32>
    tpu.vector_store %arg8[%c0_48, %c0_49], %72 {strides = array<i32>} : memref<256x8xf32, #tpu.memory_space<vmem>>, vector<256x8xf32>,
    %c0_50 = arith.constant 0 : index
    %c0_51 = arith.constant 0 : index
    %74 = vector.load %arg8[%c0_50, %c0_51] : memref<256x8xf32, #tpu.memory_space<vmem>>, vector<256x8xf32>
    %c0_52 = arith.constant 0 : index
    %c0_53 = arith.constant 0 : index
    %75 = vector.load %arg4[%c0_52, %c0_53] : memref<1x8xf32, #tpu.memory_space<vmem>>, vector<1x8xf32>
    %76 = vector.broadcast %75 : vector<1x8xf32> to vector<256x8xf32>
    %77 = arith.addf %74, %76 : vector<256x8xf32>
    %cst_54 = arith.constant 0.000000e+00 : f32
    %78 = vector.broadcast %cst_54 : f32 to vector<256x8xf32>
    %79 = arith.cmpf oge, %77, %78 : vector<256x8xf32>
    %cst_55 = arith.constant 2.000000e-01 : f32
    %80 = vector.broadcast %cst_55 : f32 to vector<256x8xf32>
    %81 = arith.mulf %80, %77 : vector<256x8xf32>
    %82 = arith.select %79, %77, %81 : vector<256x8xi1>, vector<256x8xf32>
    %83 = arith.truncf %82 : vector<256x8xf32> to vector<256x8xbf16>
    %c0_56 = arith.constant 0 : index
    %c0_57 = arith.constant 0 : index
    %84 = vector.load %arg5[%c0_56, %c0_57] : memref<8x4xbf16, #tpu.memory_space<vmem>>, vector<8x4xbf16>
    %cst_58 = arith.constant dense<0.000000e+00> : vector<256x4xf32>
    %85 = tpu.matmul %83, %84, %cst_58 {dimension_numbers = #tpu.dot_dimension_numbers<[1], [0], [0], [1], [0, 0, 1, 1], [], []>} : vector<256x8xbf16>, vector<8x4xbf16>, vector<256x4xf32> -> vector<256x4xf32>
    %c0_59 = arith.constant 0 : index
    %c0_60 = arith.constant 0 : index
    %86 = vector.load %arg6[%c0_59, %c0_60] : memref<1x4xf32, #tpu.memory_space<vmem>>, vector<1x4xf32>
    %87 = vector.broadcast %86 : vector<1x4xf32> to vector<256x4xf32>
    %88 = arith.addf %85, %87 : vector<256x4xf32>
    %89 = vector.extract_strided_slice %1 {offsets = [1, 1, 0], sizes = [8, 32, 4], strides = [1, 1, 1]} : vector<10x34x4xf32> to vector<8x32x4xf32>
    %90 = vector.shape_cast %89 : vector<8x32x4xf32> to vector<256x4xf32>
    %91 = arith.addf %90, %88 : vector<256x4xf32>
    %92 = vector.shape_cast %91 : vector<256x4xf32> to vector<8x32x4xf32>
    %c0_61 = arith.constant 0 : index
    %c0_62 = arith.constant 0 : index
    %c0_63 = arith.constant 0 : index
    %c0_64 = arith.constant 0 : index
    %93 = vector.load %arg7[%c0_61, %c0_62, %c0_63, %c0_64] : memref<1x8x32x4xf32, #tpu.memory_space<vmem>>, vector<1x8x32x4xf32>
    %94 = vector.shape_cast %93 : vector<1x8x32x4xf32> to vector<8x32x4xf32>
    %95 = vector.shape_cast %92 : vector<8x32x4xf32> to vector<1x8x32x4xf32>
    tpu.vector_store %arg7[%c0_61, %c0_62, %c0_63, %c0_64], %95 {strides = array<i32>} : memref<1x8x32x4xf32, #tpu.memory_space<vmem>>, vector<1x8x32x4xf32>,
    return
  }
  func.func @transform_0(%arg0: i32, %arg1: i32) -> (i32, i32, i32, i32, i32) {
    %c0_i32 = arith.constant 0 : i32
    %c0_i32_0 = arith.constant 0 : i32
    %c0_i32_1 = arith.constant 0 : i32
    %c0_i32_2 = arith.constant 0 : i32
    return %arg0, %arg1, %c0_i32, %c0_i32_0, %c0_i32_1 : i32, i32, i32, i32, i32
  }
  func.func @transform_1(%arg0: i32, %arg1: i32) -> (i32, i32, i32, i32) {
    %c0_i32 = arith.constant 0 : i32
    %c0_i32_0 = arith.constant 0 : i32
    %c0_i32_1 = arith.constant 0 : i32
    %c0_i32_2 = arith.constant 0 : i32
    %c0_i32_3 = arith.constant 0 : i32
    return %c0_i32, %c0_i32_0, %c0_i32_1, %c0_i32_2 : i32, i32, i32, i32
  }
  func.func @transform_2(%arg0: i32, %arg1: i32) -> (i32, i32) {
    %c0_i32 = arith.constant 0 : i32
    %c0_i32_0 = arith.constant 0 : i32
    %c0_i32_1 = arith.constant 0 : i32
    return %c0_i32, %c0_i32_0 : i32, i32
  }
  func.func @transform_3(%arg0: i32, %arg1: i32) -> (i32, i32) {
    %c0_i32 = arith.constant 0 : i32
    %c0_i32_0 = arith.constant 0 : i32
    %c0_i32_1 = arith.constant 0 : i32
    return %c0_i32, %c0_i32_0 : i32, i32
  }
  func.func @transform_4(%arg0: i32, %arg1: i32) -> (i32, i32) {
    %c0_i32 = arith.constant 0 : i32
    %c0_i32_0 = arith.constant 0 : i32
    %c0_i32_1 = arith.constant 0 : i32
    return %c0_i32, %c0_i32_0 : i32, i32
  }
  func.func @transform_5(%arg0: i32, %arg1: i32) -> (i32, i32, i32, i32) {
    %c0_i32 = arith.constant 0 : i32
    %c0_i32_0 = arith.constant 0 : i32
    %c0_i32_1 = arith.constant 0 : i32
    return %arg0, %arg1, %c0_i32, %c0_i32_0 : i32, i32, i32, i32
  }
}

</mosaic_0001>

<bundles_post_ra>
// kernel: superres_forward.1
= control target key start
LH: loop header
LB: loop body
LE: loop exit
PB: predicated region body
PF: predicated region fallthrough
CT: control target
= control target key end

     0   :  { %s4633_s18 = smov 0   ;;  %s4635_s19 = smov 0   ;;  %s5861_s0 = inlined_call_operand.vmem [shape: f32[2,4,10,34,4], index: 0, kind: input, shape index: {}]   ;;  %s5862_s1 = inlined_call_operand.vmem [shape: bf16[3,3,4,8], index: 1, kind: input, shape index: {}]   ;;  %s5863_s2 = inlined_call_operand.vmem [shape: f32[1,8], index: 2, kind: input, shape index: {}]   ;;  %s5864_s3 = inlined_call_operand.vmem [shape: bf16[8,4], index: 3, kind: input, shape index: {}]   ;;  %s5865_s4 = inlined_call_operand.vmem [shape: f32[1,4], index: 4, kind: input, shape index: {}]   ;;  %s5866_s5 = inlined_call_operand.vmem [shape: f32[2,32,32,4], index: 5, kind: output, shape index: {}]  }
   0x1   :  { %s4637_s20 = smov 0   ;;  %s4639_s21 = smov 0  }
   0x2   :  { %s4641_s22 = smov 0  }
   0x3 LB: > { %s24_s23 = sadd.s32 1, %s4593_s20  ;;  %s27_s24 = sadd.s32 1, %s4597_s21  ;;  %s4601_s22 = sphi %s4641_s22, %s15_s22   ;;  %s4597_s21 = sphi %s4639_s21, %s5870_s21   ;;  %s4593_s20 = sphi %s4637_s20, %s5869_s20   ;;  %s4589_s19 = sphi %s4635_s19, %s5868_s19   ;;  %s4585_s18 = sphi %s4633_s18, %s5867_s18  }
   0x4   : > { %p25_p0 = scmp.ge.s32.totalorder %s24_s23, 4  ;;  %p3791_p1 = scmp.ge.s32.totalorder %s4601_s22, 1 }
   0x5   : > { %p207_p2 = scmp.lt.s32.totalorder %s4601_s22, 9 }
   0x6   : > { %s5872_s23 = smov (%p25_p0, %s24_s23), 0  ;;  %s5874_s24 = smov (!%p25_p0, %s27_s24), %s4597_s21 }
   0x7   : > { %p208_p3 = pnand %p3791_p1, %p207_p2  ;;  %p29_p4 = scmp.ge.s32.totalorder %s5874_s24, 2 }
   0x8   : > { %v345_v0 = vld [vmem:[%s5862_s1] sm:$0x3] (!%p208_p3)  ;;  %vm403_vm0 = vcmask (!%p208_p3), 1041408   ;;  %p244_p5 = scmp.lt.s32.totalorder (!%p208_p3), %s4589_s19, 1  ;;  %p246_p6 = scmp.lt.s32.totalorder (!%p208_p3), %s4585_s18, 3  ;;  %vm354_vm1 = vcmask (!%p208_p3), 31744  }
   0x9   : > { %s5876_s24 = smov (%p29_p4, %s5874_s24), 0  ;;  %211 = sbr.rel (%p208_p3) target bundleno = 793 (0x319), region = 40 }
   0xa   : > { %4471 = vmatprep.subr.msk.bf16.mxu0 (!%p208_p3), %vm403_vm0, %v345_v0  ;;  %v405_v1 = vsel (!%p208_p3), %vm403_vm0, %v345_v0, 0  ;;  %v347_v2 = vld [vmem:[%s5862_s1 + $0x4] sm:$0x3] (!%p208_p3)  ;;  %v346_v3 = vld [vmem:[%s5862_s1 + $0x2] sm:$0x3] (!%p208_p3)  ;;  %vm1078_vm3 = vcmask (!%p208_p3), 1046528  }
   0xb   : > { %4132 = vmatpush3.bf16.msra.mxu0 (!%p208_p3), %v405_v1  ;;  %4472 = vmatprep.subr.msk.bf16.mxu1 (!%p208_p3), %vm403_vm0, %v346_v3  ;;  %v795_v4 = vsel (!%p208_p3), %vm403_vm0, %v346_v3, 0  ;;  %v4686_v5 = vld [vmem:[%s5862_s1 + $0x6] sm:$0x3] (!%p208_p3)  ;;  %v1168_v11 = vsel (!%p208_p3), %vm403_vm0, %v347_v2, 0  ;;  %v4708_v14 = vld [vmem:[%s5862_s1 + $0x8] sm:$0x3] (!%p208_p3) }
   0xc   : > { %4473 = vmatprep.subr.msk.bf16.mxu0 (!%p208_p3), %vm403_vm0, %v347_v2  ;;  %4166 = vmatpush3.bf16.msra.mxu1 (!%p208_p3), %v795_v4  ;;  %vm601_vm2 = vsmask.f32 (!%p208_p3), 7424  ;;  %v1434_v59 = vsel (!%p208_p3), %vm403_vm0, %v4686_v5, 0  ;;  %v4772_v62 = vld [vmem:[%s5862_s1 + $0xa] sm:$0x3] (!%p208_p3)  ;;  %vm568_vm4 = vcmask (!%p208_p3), 64512  }
   0xd   : > { %4474 = vmatprep.subr.msk.bf16.mxu1 (!%p208_p3), %vm403_vm0, %v4686_v5  ;;  %vm3314_vm5 = vcmask (!%p208_p3), 1043456  }
  0x10   : > { %s5878_s19 = smov (!%p244_p5, %s4589_s19), 1 }
  0x11   : > { %s247_s6 = scalar_select %p246_p6, %s4585_s18, 3 }
  0x12   : > { %s4482_s9 = smul.u32 200, %s5878_s19  ;;  %s3795_s14 = sshll.u32 %s5878_s19, 7 }
  0x13   : > { %s4481_s10 = smul.u32 50, %s247_s6 }
  0x15   : > { %s250_s11 = sadd.s32 %s4482_s9, %s4481_s10 }
  0x16   : > { %s3792_s12 = sshll.u32 %s250_s11, 3 }
  0x17   : > { %s4694_s15 = scalar_lea.vmem %s5861_s0, %s3792_s12  ;;  %s3793_s12 = sshll.u32 %s4585_s18, 3 }
  0x18   : > { %v265_v6 = vld [vmem:[%s4694_s15] sm:$0xff]  ;;  %v266_v7 = vld [vmem:[%s4694_s15 + $0x8] sm:$0xff]  ;;  %v267_v8 = vld [vmem:[%s4694_s15 + $0x10] sm:$0xff]  ;;  %p256_p7 = scmp.lt.s32.totalorder %s3793_s12, 31 }
  0x19   : > { %v4699_v9 = vpack.c.bf16 %v266_v7, %v265_v6  ;;  %v268_v10 = vld [vmem:[%s4694_s15 + $0x18] sm:$0xff]  ;;  %v270_v12 = vld [vmem:[%s4694_s15 + $0x28] sm:$0xff]  ;;  %v271_v13 = vld [vmem:[%s4694_s15 + $0x30] sm:$0xff] }
  0x1a   : > { %v4710_v15 = vpack.c.bf16 %v268_v10, %v267_v8  ;;  %v4712_v16 = vpack.c.bf16 %v271_v13, %v270_v12  ;;  %v272_v17 = vld [vmem:[%s4694_s15 + $0x38] sm:$0xff]  ;;  %v273_v18 = vld [vmem:[%s4694_s15 + $0x40] sm:$0xff]  ;;  %v275_v24 = vld [vmem:[%s4694_s15 + $0x50] sm:$0xff]  ;;  %s5880_s12 = smov (!%p256_p7, %s3793_s12), 31 }
  0x1b   : > { %v269_v19 = vld [vmem:[%s4694_s15 + $0x20] sm:$0x3]  ;;  %4133 = vmatprep.mubr.msk.bf16.mxu0 %vm354_vm1, %v4699_v9  ;;  %v602_v20 = vshrl.u32 %v4699_v9, 16  ;;  %v604_v21 = vshll.u32 %v4699_v9, 16  ;;  %v4721_v22 = vpack.c.bf16 %v273_v18, %v272_v17  ;;  %v276_v25 = vld [vmem:[%s4694_s15 + $0x58] sm:$0xff]  ;;  %v278_v30 = vld [vmem:[%s4694_s15 + $0x68] sm:$0xff] }
  0x1c   : > { %v4723_v23 = vpack.c.bf16 %v269_v19, %v269_v19  ;;  %v277_v26 = vld [vmem:[%s4694_s15 + $0x60] sm:$0xff]  ;;  %4134 = vmatmul.mubr.msk.bf16.vlgmr.msra.gmra.mrb[0].mxu0 %vm354_vm1, %v4710_v15  ;;  %v608_v27 = vshll.u32 %v4710_v15, 16  ;;  %v612_v28 = vshrl.u32 %v4710_v15, 16  ;;  %v4732_v29 = vpack.c.bf16 %v276_v25, %v275_v24  ;;  %v274_v31 = vld [vmem:[%s4694_s15 + $0x48] sm:$0x3]  ;;  %v280_v36 = vld [vmem:[%s4694_s15 + $0x78] sm:$0xff] }
  0x1d   : > { %4200 = vmatpush3.bf16.msra.mxu0 %v1168_v11  ;;  %4137 = vmatprep.mubr.msk.bf16.mxu0 %vm354_vm1, %v4712_v16  ;;  %v606_v32 = vrot.slane %v604_v21, 1  ;;  %v620_v34 = vshrl.u32 %v4712_v16, 16  ;;  %v622_v35 = vshll.u32 %v4712_v16, 16  ;;  %v281_v37 = vld [vmem:[%s4694_s15 + $0x80] sm:$0xff]  ;;  %v626_v39 = vshll.u32 %v4721_v22, 16  ;;  %v282_v57 = vld [vmem:[%s4694_s15 + $0x88] sm:$0xff] }
  0x1e   : > { %v616_v33 = vshll.u32 %v4723_v23, 16  ;;  %v610_v38 = vrot.slane %v608_v27, 1  ;;  %v4744_v40 = vpack.c.bf16 %v278_v30, %v277_v26  ;;  %v4746_v41 = vpack.c.bf16 %v274_v31, %v274_v31  ;;  %4475 = vmatprep.subr.msk.bf16.mxu0 %vm403_vm0, %v4708_v14  ;;  %v279_v54 = vld [vmem:[%s4694_s15 + $0x70] sm:$0x3]  ;;  %v285_v5 = vld [vmem:[%s4694_s15 + $0xa0] sm:$0xff]  ;;  %v286_v6 = vld [vmem:[%s4694_s15 + $0xa8] sm:$0xff] }
  0x1f   : > { %v607_v42 = vor.u32 %v606_v32, %v602_v20  ;;  %v624_v44 = vrot.slane %v622_v35, 1  ;;  %v630_v45 = vshrl.u32 %v4721_v22, 16  ;;  %v628_v47 = vrot.slane %v626_v39, 1  ;;  %v283_v58 = vld [vmem:[%s4694_s15 + $0x90] sm:$0xff]  ;;  %v284_v20 = vld [vmem:[%s4694_s15 + $0x98] sm:$0x3] }
  0x20   : > { %v618_v43 = vrot.slane %v616_v33, 1  ;;  %v614_v46 = vor.u32 %v612_v28, %v610_v38  ;;  %v634_v48 = vshll.u32 %v4746_v41, 16  ;;  %v4752_v49 = vpack.c.bf16 %v281_v37, %v280_v36  ;;  %v287_v21 = vld [vmem:[%s4694_s15 + $0xb0] sm:$0xff]  ;;  %v288_v24 = vld [vmem:[%s4694_s15 + $0xb8] sm:$0xff]  ;;  %v290_v32 = vld [vmem:[%s4694_s15 + $0xc8] sm:$0xff]  ;;  %s3794_s13 = sshll.u32 %s5880_s12, 2 }
  0x21   : > { %v611_v50 = vsel %vm601_vm2, %v607_v42, %v610_v38  ;;  %v625_v51 = vor.u32 %v624_v44, %v620_v34  ;;  %v638_v52 = vshrl.u32 %v4732_v29, 16  ;;  %v640_v53 = vshll.u32 %v4732_v29, 16  ;;  %v291_v33 = vld [vmem:[%s4694_s15 + $0xd0] sm:$0xff]  ;;  %s260_s16 = sadd.s32 %s3795_s14, %s3794_s13 }
  0x22   : > { %4167 = vmatprep.mubr.msk.bf16.mxu1 %vm354_vm1, %v611_v50  ;;  %v619_v55 = vsel %vm601_vm2, %v614_v46, %v618_v43  ;;  %v644_v56 = vshll.u32 %v4744_v40, 16  ;;  %v632_v63 = vor.u32 %v630_v45, %v628_v47  ;;  %v636_v0 = vrot.slane %v634_v48, 1  ;;  %v289_v45 = vld [vmem:[%s4694_s15 + $0xc0] sm:$0x3]  ;;  %v292_v46 = vld [vmem:[%s4694_s15 + $0xd8] sm:$0xff]  ;;  %s3796_s18 = sshll.u32 %s260_s16, 3 }
  0x23   : > { %4168 = vmatmul.mubr.msk.bf16.vlgmr.msra.gmra.mrb[0].mxu1 %vm354_vm1, %v619_v55  ;;  %v4767_v60 = vsel %vm601_vm2, %v625_v51, %v628_v47  ;;  %v642_v61 = vrot.slane %v640_v53, 1  ;;  %v4778_v1 = vpack.c.bf16 %v279_v54, %v279_v54  ;;  %v4782_v4 = vpack.c.bf16 %v283_v58, %v282_v57  ;;  %v293_v47 = vld [vmem:[%s4694_s15 + $0xe0] sm:$0xff]  ;;  %v295_v55 = vld [vmem:[%s4694_s15 + $0xf0] sm:$0xff]  ;;  %s5684_s27 = scalar_lea.vmem %s5866_s5, %s3796_s18 }
  0x24   : > { %4138 = vmatmul.mubr.msk.bf16.gmra.mrb[4].mxu0 %vm354_vm1, %v4721_v22  ;;  %4171 = vmatprep.mubr.msk.bf16.mxu1 %vm354_vm1, %v4767_v60  ;;  %v646_v3 = vrot.slane %v644_v56, 1  ;;  %v658_v7 = vshll.u32 %v4752_v49, 16  ;;  %v4790_v8 = vsel %vm601_vm2, %v632_v63, %v636_v0  ;;  %v648_v10 = vshrl.u32 %v4744_v40, 16  ;;  %v296_v56 = vld [vmem:[%s4694_s15 + $0xf8] sm:$0xff] }
  0x25   : > { %4141 = vmatprep.mubr.msk.bf16.mxu0 %vm354_vm1, %v4732_v29  ;;  %v643_v2 = vor.u32 %v642_v61, %v638_v52  ;;  %4234 = vmatpush3.bf16.msra.mxu1 %v1434_v59  ;;  %v652_v11 = vshll.u32 %v4778_v1, 16  ;;  %v4794_v12 = vpack.c.bf16 %v286_v6, %v285_v5  ;;  %v656_v17 = vshrl.u32 %v4752_v49, 16  ;;  %v294_v6 = vld [vmem:[%s4694_s15 + $0xe8] sm:$0x3] }
  0x26   : > { %4476 = vmatprep.subr.msk.bf16.mxu1 %vm403_vm0, %v4772_v62  ;;  %v660_v18 = vrot.slane %v658_v7, 1  ;;  %v662_v19 = vshll.u32 %v4782_v4, 16  ;;  %v650_v25 = vor.u32 %v648_v10, %v646_v3  ;;  %v4810_v27 = vpack.c.bf16 %v284_v20, %v284_v20  ;;  %v297_v7 = vld [vmem:[%s4694_s15 + $0x100] sm:$0xff]  ;;  %v298_v10 = vld [vmem:[%s4694_s15 + $0x108] sm:$0xff] }
  0x27   : > { %v4797_v13 = vsel %vm601_vm2, %v643_v2, %v646_v3  ;;  %v654_v26 = vrot.slane %v652_v11, 1  ;;  %v4814_v31 = vpack.c.bf16 %v288_v24, %v287_v21  ;;  %v676_v34 = vshll.u32 %v4794_v12, 16  ;;  %v300_v24 = vld [vmem:[%s4694_s15 + $0x118] sm:$0xff] }
  0x28   : > { %v661_v28 = vor.u32 %v660_v18, %v656_v17  ;;  %v664_v30 = vrot.slane %v662_v19, 1  ;;  %v666_v36 = vshrl.u32 %v4782_v4, 16  ;;  %v670_v37 = vshll.u32 %v4810_v27, 16 }
  0x29   : > { %v4820_v35 = vsel %vm601_vm2, %v650_v25, %v654_v26  ;;  %v4824_v38 = vpack.c.bf16 %v291_v33, %v290_v32  ;;  %v674_v42 = vshrl.u32 %v4794_v12, 16  ;;  %v678_v43 = vrot.slane %v676_v34, 1  ;;  %v301_v25 = vld [vmem:[%s4694_s15 + $0x120] sm:$0xff] }
  0x2a   : > { %v4827_v39 = vsel %vm601_vm2, %v661_v28, %v664_v30  ;;  %v680_v44 = vshll.u32 %v4814_v31, 16  ;;  %v668_v48 = vor.u32 %v666_v36, %v664_v30  ;;  %v672_v50 = vrot.slane %v670_v37, 1 }
  0x2b   : > { %4172 = vmatmul.mubr.msk.bf16.gmra.mrb[4].mxu1 %vm354_vm1, %v4790_v8  ;;  %v4840_v51 = vpack.c.bf16 %v289_v45, %v289_v45  ;;  %v679_v52 = vor.u32 %v678_v43, %v674_v42  ;;  %v4844_v54 = vpack.c.bf16 %v293_v47, %v292_v46  ;;  %v694_v57 = vshll.u32 %v4824_v38, 16  ;;  %v299_v43 = vld [vmem:[%s4694_s15 + $0x110] sm:$0x3] }
  0x2c   : > { %4142 = vmatmul.mubr.msk.bf16.gmra.mrb[8].mxu0 %vm354_vm1, %v4744_v40  ;;  %4175 = vmatprep.mubr.msk.bf16.mxu1 %vm354_vm1, %v4797_v13  ;;  %v682_v53 = vrot.slane %v680_v44, 1  ;;  %v4850_v58 = vsel %vm601_vm2, %v668_v48, %v672_v50  ;;  %v684_v59 = vshrl.u32 %v4814_v31, 16  ;;  %v4854_v63 = vpack.c.bf16 %v296_v56, %v295_v55  ;;  %v302_v44 = vld [vmem:[%s4694_s15 + $0x128] sm:$0xff]  ;;  %v303_v45 = vld [vmem:[%s4694_s15 + $0x130] sm:$0xff] }
  0x2d   : > { %4145 = vmatprep.mubr.msk.bf16.mxu0 %vm354_vm1, %v4752_v49  ;;  %v688_v61 = vshll.u32 %v4840_v51, 16  ;;  %v692_v2 = vshrl.u32 %v4824_v38, 16  ;;  %v696_v3 = vrot.slane %v694_v57, 1  ;;  %v698_v5 = vshll.u32 %v4844_v54, 16 }
  0x2e   : > { %v4857_v0 = vsel %vm601_vm2, %v679_v52, %v682_v53  ;;  %v686_v11 = vor.u32 %v684_v59, %v682_v53  ;;  %v4870_v18 = vpack.c.bf16 %v294_v6, %v294_v6  ;;  %v4874_v21 = vpack.c.bf16 %v298_v10, %v297_v7  ;;  %v304_v6 = vld [vmem:[%s4694_s15 + $0x138] sm:$0x3] }
  0x2f   : > { %v690_v17 = vrot.slane %v688_v61, 1  ;;  %v697_v19 = vor.u32 %v696_v3, %v692_v2  ;;  %v700_v20 = vrot.slane %v698_v5, 1  ;;  %v712_v26 = vshll.u32 %v4854_v63, 16 }
  0x30   : > { %v702_v30 = vshrl.u32 %v4844_v54, 16  ;;  %v706_v32 = vshll.u32 %v4870_v18, 16  ;;  %v4884_v33 = vpack.c.bf16 %v301_v25, %v300_v24  ;;  %v710_v36 = vshrl.u32 %v4854_v63, 16 }
  0x31   : > { %v4880_v28 = vsel %vm601_vm2, %v686_v11, %v690_v17  ;;  %v4887_v34 = vsel %vm601_vm2, %v697_v19, %v700_v20  ;;  %v714_v37 = vrot.slane %v712_v26, 1  ;;  %v716_v42 = vshll.u32 %v4874_v21, 16 }
  0x32   : > { %v704_v46 = vor.u32 %v702_v30, %v700_v20  ;;  %v708_v47 = vrot.slane %v706_v32, 1  ;;  %v4900_v48 = vpack.c.bf16 %v299_v43, %v299_v43  ;;  %v4904_v53 = vpack.c.bf16 %v303_v45, %v302_v44 }
  0x33   : > { %4176 = vmatmul.mubr.msk.bf16.gmra.mrb[8].mxu1 %vm354_vm1, %v4820_v35  ;;  %v715_v50 = vor.u32 %v714_v37, %v710_v36  ;;  %v718_v52 = vrot.slane %v716_v42, 1  ;;  %v730_v55 = vshll.u32 %v4884_v33, 16  ;;  %v720_v57 = vshrl.u32 %v4874_v21, 16 }
  0x34   : > { %4146 = vmatmul.mubr.msk.bf16.gmra.mrb[12].mxu0 %vm354_vm1, %v4782_v4  ;;  %4179 = vmatprep.mubr.msk.bf16.mxu1 %vm354_vm1, %v4827_v39  ;;  %v4908_v56 = vsel %vm601_vm2, %v704_v46, %v708_v47  ;;  %v724_v59 = vshll.u32 %v4900_v48, 16  ;;  %v728_v2 = vshrl.u32 %v4884_v33, 16  ;;  %v734_v5 = vshll.u32 %v4904_v53, 16 }
  0x35   : > { %4149 = vmatprep.mubr.msk.bf16.mxu0 %vm354_vm1, %v4794_v12  ;;  %v4913_v61 = vsel %vm601_vm2, %v715_v50, %v718_v52  ;;  %v732_v3 = vrot.slane %v730_v55, 1  ;;  %v722_v7 = vor.u32 %v720_v57, %v718_v52  ;;  %v4924_v11 = vpack.c.bf16 %v304_v6, %v304_v6 }
  0x36   : > { %v726_v10 = vrot.slane %v724_v59, 1  ;;  %v736_v19 = vrot.slane %v734_v5, 1  ;;  %v1079_v20 = vrot.slane %v4699_v9, 1  ;;  %v1080_v24 = vrot.slane %v4710_v15, 1 }
  0x37   : > { %v733_v17 = vor.u32 %v732_v3, %v728_v2  ;;  %v738_v26 = vshrl.u32 %v4904_v53, 16  ;;  %v742_v30 = vshll.u32 %v4924_v11, 16  ;;  %v1082_v37 = vrot.slane %v4723_v23, 1  ;;  %v4963_v23 = vld [vmem:[%s5862_s1 + $0xc] sm:$0x3] }
  0x38   : > { %v4931_v25 = vsel %vm601_vm2, %v722_v7, %v726_v10  ;;  %v1081_v36 = vsel %vm1078_vm3, %v1079_v20, %v1080_v24  ;;  %v1084_v42 = vrot.slane %v4712_v16, 1  ;;  %v1085_v43 = vrot.slane %v4721_v22, 1 }
  0x39   : > { %v4936_v32 = vsel %vm601_vm2, %v733_v17, %v736_v19  ;;  %v740_v9 = vor.u32 %v738_v26, %v736_v19  ;;  %v744_v15 = vrot.slane %v742_v30, 1  ;;  %v1083_v45 = vsel %vm1078_vm3, %v1080_v24, %v1082_v37 }
  0x3a   : > { %v1718_v46 = vsel %vm403_vm0, %v4708_v14, 0  ;;  %v4956_v47 = vsel %vm1078_vm3, %v1084_v42, %v1085_v43  ;;  %v1087_v14 = vrot.slane %v4746_v41, 1  ;;  %v1089_v50 = vrot.slane %v4732_v29, 1  ;;  %v4988_v41 = vld [vmem:[%s5862_s1 + $0xe] sm:$0x3] }
  0x3b   : > { %4180 = vmatmul.mubr.msk.bf16.gmra.mrb[12].mxu1 %vm354_vm1, %v4850_v58  ;;  %v4950_v44 = vsel %vm601_vm2, %v740_v9, %v744_v15  ;;  %v1090_v52 = vrot.slane %v4744_v40, 1  ;;  %v1092_v59 = vrot.slane %v4778_v1, 1  ;;  %v1097_v1 = vrot.slane %v4810_v27, 1 }
  0x3c   : > { %4150 = vmatmul.mubr.msk.bf16.gmra.mrb[16].mxu0 %vm354_vm1, %v4814_v31  ;;  %4183 = vmatprep.mubr.msk.bf16.mxu1 %vm354_vm1, %v4857_v0  ;;  %v4976_v55 = vsel %vm1078_vm3, %v1085_v43, %v1087_v14  ;;  %v1099_v5 = vrot.slane %v4794_v12, 1  ;;  %v1100_v6 = vrot.slane %v4814_v31, 1  ;;  %v1102_v27 = vrot.slane %v4840_v51, 1 }
  0x3d   : > { %4153 = vmatprep.mubr.msk.bf16.mxu0 %vm354_vm1, %v4824_v38  ;;  %v4979_v57 = vsel %vm1078_vm3, %v1089_v50, %v1090_v52  ;;  %v5002_v2 = vsel %vm1078_vm3, %v1090_v52, %v1092_v59  ;;  %v1104_v17 = vrot.slane %v4824_v38, 1  ;;  %v1105_v19 = vrot.slane %v4844_v54, 1  ;;  %v307_v52 = vld [vmem:[%s4694_s15 + $0x150] sm:$0xff] }
  0x3e   : > { %v5022_v10 = vsel %vm1078_vm3, %v1099_v5, %v1100_v6  ;;  %v5036_v20 = vsel %vm1078_vm3, %v1100_v6, %v1102_v27  ;;  %v1107_v51 = vrot.slane %v4870_v18, 1  ;;  %v1109_v26 = vrot.slane %v4854_v63, 1 }
  0x3f   : > { %v5039_v24 = vsel %vm1078_vm3, %v1104_v17, %v1105_v19  ;;  %v1110_v30 = vrot.slane %v4874_v21, 1  ;;  %v1112_v18 = vrot.slane %v4900_v48, 1  ;;  %v1114_v15 = vrot.slane %v4884_v33, 1 }
  0x40   : > { %v1115_v37 = vrot.slane %v4904_v53, 1  ;;  %v1117_v48 = vrot.slane %v4924_v11, 1  ;;  %v2258_v59 = vsel %vm403_vm0, %v4963_v23, 0 }
  0x41   : > { %v5056_v9 = vsel %vm1078_vm3, %v1109_v26, %v1110_v30  ;;  %v5070_v42 = vsel %vm1078_vm3, %v1110_v30, %v1112_v18 }
  0x42   : > { %v5073_v43 = vsel %vm1078_vm3, %v1114_v15, %v1115_v37  ;;  %v5089_v50 = vsel %vm1078_vm3, %v1115_v37, %v1117_v48 }
  0x43   : > { %4184 = vmatmul.mubr.msk.bf16.gmra.mrb[16].mxu1 %vm354_vm1, %v4880_v28 }
  0x44   : > { %4154 = vmatmul.mubr.msk.bf16.gmra.mrb[20].mxu0 %vm354_vm1, %v4844_v54  ;;  %4187 = vmatprep.mubr.msk.bf16.mxu1 %vm354_vm1, %v4887_v34 }
  0x45   : > { %4157 = vmatprep.mubr.msk.bf16.mxu0 %vm354_vm1, %v4854_v63 }
  0x4b   : > { %4188 = vmatmul.mubr.msk.bf16.gmra.mrb[20].mxu1 %vm354_vm1, %v4908_v56 }
  0x4c   : > { %4158 = vmatmul.mubr.msk.bf16.gmra.mrb[24].mxu0 %vm354_vm1, %v4874_v21  ;;  %4191 = vmatprep.mubr.msk.bf16.mxu1 %vm354_vm1, %v4913_v61 }
  0x4d   : > { %4161 = vmatprep.mubr.msk.bf16.mxu0 %vm354_vm1, %v4884_v33 }
  0x53   : > { %4192 = vmatmul.mubr.msk.bf16.gmra.mrb[24].mxu1 %vm354_vm1, %v4931_v25 }
  0x54   : > { %4162 = vmatmul.mubr.msk.bf16.gmra.mrb[28].mxu0 %vm354_vm1, %v4904_v53  ;;  %4195 = vmatprep.mubr.msk.bf16.mxu1 %vm354_vm1, %v4936_v32 }
  0x55   : > { %4201 = vmatprep.mubr.msk.bf16.mxu0 %vm354_vm1, %v1081_v36  ;;  %v5053_v36 = vsel %vm1078_vm3, %v1105_v19, %v1107_v51 }
  0x5b   : > { %4196 = vmatmul.mubr.msk.bf16.gmra.mrb[28].mxu1 %vm354_vm1, %v4950_v44 }
  0x5c   : > { %4202 = vmatmul.mubr.msk.bf16.vlgmr.msra.gmra.mrb[32].mxu0 %vm354_vm1, %v1083_v45  ;;  %4235 = vmatprep.mubr.msk.bf16.mxu1 %vm354_vm1, %v4712_v16  ;;  %v1992_v16 = vsel %vm403_vm0, %v4772_v62, 0  ;;  %v1094_v62 = vrot.slane %v4752_v49, 1  ;;  %v305_v45 = vld [vmem:[%s4694_s15 + $0x140] sm:$0xff] }
  0x5d   : > { %4268 = vmatpush3.bf16.msra.mxu0 %v1718_v46  ;;  %4205 = vmatprep.mubr.msk.bf16.mxu0 %vm354_vm1, %v4956_v47  ;;  %v306_v46 = vld [vmem:[%s4694_s15 + $0x148] sm:$0xff] }
  0x5e   : > { %4477 = vmatprep.subr.msk.bf16.mxu0 %vm403_vm0, %v4963_v23  ;;  %v5086_v14 = vpack.c.bf16 %v306_v46, %v305_v45 }
  0x60   : > { %v1980_v26 = vrot.slane %v5086_v14, 1 }
  0x63   : > { %4236 = vmatmul.mubr.msk.bf16.vlgmr.msra.gmra.mrb[32].mxu1 %vm354_vm1, %v4721_v22  ;;  %v1095_v22 = vrot.slane %v4782_v4, 1 }
  0x64   : > { %4206 = vmatmul.mubr.msk.bf16.gmra.mrb[36].mxu0 %vm354_vm1, %v4976_v55  ;;  %4239 = vmatprep.mubr.msk.bf16.mxu1 %vm354_vm1, %v4732_v29 }
  0x65   : > { %4209 = vmatprep.mubr.msk.bf16.mxu0 %vm354_vm1, %v4979_v57  ;;  %4302 = vmatpush3.bf16.msra.mxu1 %v1992_v16  ;;  %v5005_v3 = vsel %vm1078_vm3, %v1094_v62, %v1095_v22  ;;  %v5019_v7 = vsel %vm1078_vm3, %v1095_v22, %v1097_v1  ;;  %v308_v16 = vld [vmem:[%s4694_s15 + $0x158] sm:$0xff]  ;;  %v353_v62 = vld [vmem:[%s5862_s1 + $0x10] sm:$0x3] }
  0x66   : > { %4478 = vmatprep.subr.msk.bf16.mxu1 %vm403_vm0, %v4988_v41  ;;  %v5101_v11 = vpack.c.bf16 %v308_v16, %v307_v52  ;;  %v2816_v45 = vsel %vm403_vm0, %v353_v62, 0 }
  0x68   : > { %v1703_v6 = vshrl.u32 %v5101_v11, 16  ;;  %v1981_v30 = vrot.slane %v5101_v11, 1 }
  0x6a   : > { %v5181_v15 = vsel %vm1078_vm3, %v1980_v26, %v1981_v30 }
  0x6b   : > { %4240 = vmatmul.mubr.msk.bf16.gmra.mrb[36].mxu1 %vm354_vm1, %v4744_v40 }
  0x6c   : > { %4210 = vmatmul.mubr.msk.bf16.gmra.mrb[40].mxu0 %vm354_vm1, %v5002_v2  ;;  %4243 = vmatprep.mubr.msk.bf16.mxu1 %vm354_vm1, %v4752_v49 }
  0x6d   : > { %4213 = vmatprep.mubr.msk.bf16.mxu0 %vm354_vm1, %v5005_v3 }
  0x73   : > { %4244 = vmatmul.mubr.msk.bf16.gmra.mrb[40].mxu1 %vm354_vm1, %v4782_v4 }
  0x74   : > { %4214 = vmatmul.mubr.msk.bf16.gmra.mrb[44].mxu0 %vm354_vm1, %v5019_v7  ;;  %4247 = vmatprep.mubr.msk.bf16.mxu1 %vm354_vm1, %v4794_v12 }
  0x75   : > { %4217 = vmatprep.mubr.msk.bf16.mxu0 %vm354_vm1, %v5022_v10 }
  0x7b   : > { %4248 = vmatmul.mubr.msk.bf16.gmra.mrb[44].mxu1 %vm354_vm1, %v4814_v31 }
  0x7c   : > { %4218 = vmatmul.mubr.msk.bf16.gmra.mrb[48].mxu0 %vm354_vm1, %v5036_v20  ;;  %4251 = vmatprep.mubr.msk.bf16.mxu1 %vm354_vm1, %v4824_v38 }
  0x7d   : > { %4221 = vmatprep.mubr.msk.bf16.mxu0 %vm354_vm1, %v5039_v24 }
  0x83   : > { %4252 = vmatmul.mubr.msk.bf16.gmra.mrb[48].mxu1 %vm354_vm1, %v4844_v54 }
  0x84   : > { %4222 = vmatmul.mubr.msk.bf16.gmra.mrb[52].mxu0 %vm354_vm1, %v5053_v36  ;;  %4255 = vmatprep.mubr.msk.bf16.mxu1 %vm354_vm1, %v4854_v63 }
  0x85   : > { %4225 = vmatprep.mubr.msk.bf16.mxu0 %vm354_vm1, %v5056_v9 }
  0x8b   : > { %4256 = vmatmul.mubr.msk.bf16.gmra.mrb[52].mxu1 %vm354_vm1, %v4874_v21 }
  0x8c   : > { %4226 = vmatmul.mubr.msk.bf16.gmra.mrb[56].mxu0 %vm354_vm1, %v5070_v42  ;;  %4259 = vmatprep.mubr.msk.bf16.mxu1 %vm354_vm1, %v4884_v33 }
  0x8d   : > { %4229 = vmatprep.mubr.msk.bf16.mxu0 %vm354_vm1, %v5073_v43 }
  0x93   : > { %4260 = vmatmul.mubr.msk.bf16.gmra.mrb[56].mxu1 %vm354_vm1, %v4904_v53 }
  0x94   : > { %4230 = vmatmul.mubr.msk.bf16.gmra.mrb[60].mxu0 %vm354_vm1, %v5089_v50  ;;  %4263 = vmatprep.mubr.msk.bf16.mxu1 %vm354_vm1, %v5086_v14 }
  0x95   : > { %4269 = vmatprep.mubr.msk.bf16.mxu0 %vm354_vm1, %v4767_v60  ;;  %v2542_v60 = vsel %vm403_vm0, %v4988_v41, 0  ;;  %v309_v41 = vld [vmem:[%s4694_s15 + $0x160] sm:$0x3] }
  0x96   : > { %v341_v22 = vpack.c.bf16 %v309_v41, %v309_v41 }
  0x98   : > { %v1707_v27 = vshll.u32 %v341_v22, 16  ;;  %v1983_v37 = vrot.slane %v341_v22, 1  ;;  %v310_v22 = vld [vmem:[%s4694_s15 + $0x168] sm:$0xff] }
  0x9a   : > { %v1709_v51 = vrot.slane %v1707_v27, 1  ;;  %v5192_v48 = vsel %vm1078_vm3, %v1981_v30, %v1983_v37  ;;  %v312_v30 = vld [vmem:[%s4694_s15 + $0x178] sm:$0xff]  ;;  %v313_v37 = vld [vmem:[%s4694_s15 + $0x180] sm:$0xff] }
  0x9b   : > { %4264 = vmatmul.mubr.msk.bf16.gmra.mrb[60].mxu1 %vm354_vm1, %v5101_v11 }
  0x9c   : > { %4270 = vmatmul.mubr.msk.bf16.vlgmr.msra.gmra.mrb[64].mxu0 %vm354_vm1, %v4790_v8  ;;  %4303 = vmatprep.mubr.msk.bf16.mxu1 %vm354_vm1, %v4956_v47  ;;  %v1695_v8 = vshll.u32 %v5086_v14, 16  ;;  %v1693_v47 = vshrl.u32 %v5086_v14, 16 }
  0x9d   : > { %4336 = vmatpush3.bf16.msra.mxu0 %v2258_v59  ;;  %4273 = vmatprep.mubr.msk.bf16.mxu0 %vm354_vm1, %v4797_v13 }
  0x9e   : > { %4479 = vmatprep.subr.msk.bf16.mxu0 %vm403_vm0, %v353_v62  ;;  %v1697_v23 = vrot.slane %v1695_v8, 1 }
  0xa0   : > { %v1698_v1 = vor.u32 %v1697_v23, %v1693_v47 }
  0xa3   : > { %4304 = vmatmul.mubr.msk.bf16.vlgmr.msra.gmra.mrb[64].mxu1 %vm354_vm1, %v4976_v55  ;;  %v1699_v55 = vshll.u32 %v5101_v11, 16 }
  0xa4   : > { %4274 = vmatmul.mubr.msk.bf16.gmra.mrb[68].mxu0 %vm354_vm1, %v4820_v35  ;;  %4307 = vmatprep.mubr.msk.bf16.mxu1 %vm354_vm1, %v4979_v57 }
  0xa5   : > { %4277 = vmatprep.mubr.msk.bf16.mxu0 %vm354_vm1, %v4827_v39  ;;  %4370 = vmatpush3.bf16.msra.mxu1 %v2542_v60  ;;  %v1701_v5 = vrot.slane %v1699_v55, 1 }
  0xa7   : > { %v5165_v17 = vsel %vm601_vm2, %v1698_v1, %v1701_v5  ;;  %v1705_v19 = vor.u32 %v1703_v6, %v1701_v5 }
  0xa9   : > { %v5178_v18 = vsel %vm601_vm2, %v1705_v19, %v1709_v51 }
  0xab   : > { %4308 = vmatmul.mubr.msk.bf16.gmra.mrb[68].mxu1 %vm354_vm1, %v5002_v2 }
  0xac   : > { %4278 = vmatmul.mubr.msk.bf16.gmra.mrb[72].mxu0 %vm354_vm1, %v4850_v58  ;;  %4311 = vmatprep.mubr.msk.bf16.mxu1 %vm354_vm1, %v5005_v3 }
  0xad   : > { %4281 = vmatprep.mubr.msk.bf16.mxu0 %vm354_vm1, %v4857_v0 }
  0xb3   : > { %4312 = vmatmul.mubr.msk.bf16.gmra.mrb[72].mxu1 %vm354_vm1, %v5019_v7 }
  0xb4   : > { %4282 = vmatmul.mubr.msk.bf16.gmra.mrb[76].mxu0 %vm354_vm1, %v4880_v28  ;;  %4315 = vmatprep.mubr.msk.bf16.mxu1 %vm354_vm1, %v5022_v10 }
  0xb5   : > { %4285 = vmatprep.mubr.msk.bf16.mxu0 %vm354_vm1, %v4887_v34 }
  0xbb   : > { %4316 = vmatmul.mubr.msk.bf16.gmra.mrb[76].mxu1 %vm354_vm1, %v5036_v20 }
  0xbc   : > { %4286 = vmatmul.mubr.msk.bf16.gmra.mrb[80].mxu0 %vm354_vm1, %v4908_v56  ;;  %4319 = vmatprep.mubr.msk.bf16.mxu1 %vm354_vm1, %v5039_v24 }
  0xbd   : > { %4289 = vmatprep.mubr.msk.bf16.mxu0 %vm354_vm1, %v4913_v61 }
  0xc3   : > { %4320 = vmatmul.mubr.msk.bf16.gmra.mrb[80].mxu1 %vm354_vm1, %v5053_v36 }
  0xc4   : > { %4290 = vmatmul.mubr.msk.bf16.gmra.mrb[84].mxu0 %vm354_vm1, %v4931_v25  ;;  %4323 = vmatprep.mubr.msk.bf16.mxu1 %vm354_vm1, %v5056_v9 }
  0xc5   : > { %4293 = vmatprep.mubr.msk.bf16.mxu0 %vm354_vm1, %v4936_v32 }
  0xcb   : > { %4324 = vmatmul.mubr.msk.bf16.gmra.mrb[84].mxu1 %vm354_vm1, %v5070_v42 }
  0xcc   : > { %4294 = vmatmul.mubr.msk.bf16.gmra.mrb[88].mxu0 %vm354_vm1, %v4950_v44  ;;  %4327 = vmatprep.mubr.msk.bf16.mxu1 %vm354_vm1, %v5073_v43 }
  0xcd   : > { %4297 = vmatprep.mubr.msk.bf16.mxu0 %vm354_vm1, %v5165_v17 }
  0xd3   : > { %4328 = vmatmul.mubr.msk.bf16.gmra.mrb[88].mxu1 %vm354_vm1, %v5089_v50 }
  0xd4   : > { %4298 = vmatmul.mubr.msk.bf16.gmra.mrb[92].mxu0 %vm354_vm1, %v5178_v18  ;;  %4331 = vmatprep.mubr.msk.bf16.mxu1 %vm354_vm1, %v5181_v15 }
  0xd5   : > { %4337 = vmatprep.mubr.msk.bf16.mxu0 %vm354_vm1, %v4732_v29 }
  0xdb   : > { %4332 = vmatmul.mubr.msk.bf16.gmra.mrb[92].mxu1 %vm354_vm1, %v5192_v48 }
  0xdc   : > { %4338 = vmatmul.mubr.msk.bf16.vlgmr.msra.gmra.mrb[96].mxu0 %vm354_vm1, %v4744_v40  ;;  %4371 = vmatprep.mubr.msk.bf16.mxu1 %vm354_vm1, %v4797_v13 }
  0xdd   : > { %4404 = vmatpush3.bf16.msra.mxu0 %v2816_v45  ;;  %4341 = vmatprep.mubr.msk.bf16.mxu0 %vm354_vm1, %v4752_v49 }
  0xe3   : > { %4372 = vmatmul.mubr.msk.bf16.vlgmr.msra.gmra.mrb[96].mxu1 %vm354_vm1, %v4820_v35 }
  0xe4   : > { %4342 = vmatmul.mubr.msk.bf16.gmra.mrb[100].mxu0 %vm354_vm1, %v4782_v4  ;;  %4375 = vmatprep.mubr.msk.bf16.mxu1 %vm354_vm1, %v4827_v39 }
  0xe5   : > { %4345 = vmatprep.mubr.msk.bf16.mxu0 %vm354_vm1, %v4794_v12 }
  0xeb   : > { %4376 = vmatmul.mubr.msk.bf16.gmra.mrb[100].mxu1 %vm354_vm1, %v4850_v58 }
  0xec   : > { %4346 = vmatmul.mubr.msk.bf16.gmra.mrb[104].mxu0 %vm354_vm1, %v4814_v31  ;;  %4379 = vmatprep.mubr.msk.bf16.mxu1 %vm354_vm1, %v4857_v0 }
  0xed   : > { %4349 = vmatprep.mubr.msk.bf16.mxu0 %vm354_vm1, %v4824_v38 }
  0xef   : > { %v4135_v29 = vpop.f32.mrb[0].mxu0 }
  0xf0   : > { %571 = vst.msk [vmem:[#allocation2 + $0x10] sm:$0xff] %vm568_vm4, %v4135_v29  ;;  %v441_v40 = vpop.f32.mrb[1].mxu0 }
  0xf1   : > { %569 = vst.msk [vmem:[#allocation2] sm:$0xff] %vm568_vm4, %v441_v40  ;;  %v4136_v49 = vpop.f32.mrb[2].mxu0 }
  0xf2   : > { %572 = vst.msk [vmem:[#allocation2 + $0x18] sm:$0xff] %vm568_vm4, %v4136_v49  ;;  %v444_v4 = vpop.f32.mrb[3].mxu0 }
  0xf3   : > { %570 = vst.msk [vmem:[#allocation2 + $0x8] sm:$0xff] %vm568_vm4, %v444_v4  ;;  %4380 = vmatmul.mubr.msk.bf16.gmra.mrb[104].mxu1 %vm354_vm1, %v4880_v28  ;;  %v5270_v4 = vpack.c.bf16 %v313_v37, %v312_v30 }
  0xf4   : > { %4350 = vmatmul.mubr.msk.bf16.gmra.mrb[108].mxu0 %vm354_vm1, %v4844_v54  ;;  %4383 = vmatprep.mubr.msk.bf16.mxu1 %vm354_vm1, %v4887_v34 }
  0xf5   : > { %4353 = vmatprep.mubr.msk.bf16.mxu0 %vm354_vm1, %v4854_v63 }
  0xf6   : > { %v4169_v12 = vpop.f32.mrb[0].mxu1 }
  0xf7   : > { %v4139_v13 = vpop.f32.mrb[4].mxu0  ;;  %v960_v31 = vld [vmem:[#allocation2 + $0x10] sm:$0xff]  ;;  %v831_v35 = vpop.f32.mrb[1].mxu1 }
  0xf8   : > { %575 = vst.msk [vmem:[#allocation2 + $0x30] sm:$0xff] %vm568_vm4, %v4139_v13  ;;  %v992_v38 = vadd.f32 %v4169_v12, %v960_v31  ;;  %v457_v39 = vpop.f32.mrb[5].mxu0  ;;  %v958_v58 = vld [vmem:[#allocation2] sm:$0xff]  ;;  %v4170_v0 = vpop.f32.mrb[2].mxu1  ;;  %v314_v31 = vld [vmem:[%s4694_s15 + $0x188] sm:$0x3] }
  0xf9   : > { %573 = vst.msk [vmem:[#allocation2 + $0x20] sm:$0xff] %vm568_vm4, %v457_v39  ;;  %v990_v28 = vadd.f32 %v958_v58, %v831_v35  ;;  %v4140_v54 = vpop.f32.mrb[6].mxu0  ;;  %v961_v46 = vld [vmem:[#allocation2 + $0x18] sm:$0xff]  ;;  %v834_v52 = vpop.f32.mrb[3].mxu1 }
  0xfa   : > { %1024 = vst.msk [vmem:[#allocation2 + $0x10] sm:$0xff] %vm568_vm4, %v992_v38  ;;  %576 = vst.msk [vmem:[#allocation2 + $0x38] sm:$0xff] %vm568_vm4, %v4140_v54  ;;  %v993_v63 = vadd.f32 %v4170_v0, %v961_v46  ;;  %v460_v34 = vpop.f32.mrb[7].mxu0  ;;  %v959_v16 = vld [vmem:[#allocation2 + $0x8] sm:$0xff] }
  0xfb   : > { %1022 = vst.msk [vmem:[#allocation2] sm:$0xff] %vm568_vm4, %v990_v28  ;;  %574 = vst.msk [vmem:[#allocation2 + $0x28] sm:$0xff] %vm568_vm4, %v460_v34  ;;  %v991_v59 = vadd.f32 %v959_v16, %v834_v52  ;;  %4384 = vmatmul.mubr.msk.bf16.gmra.mrb[108].mxu1 %vm354_vm1, %v4908_v56  ;;  %v2523_v28 = vshll.u32 %v5270_v4, 16  ;;  %v5288_v34 = vpack.c.bf16 %v314_v31, %v314_v31 }
  0xfc   : > { %1025 = vst.msk [vmem:[#allocation2 + $0x18] sm:$0xff] %vm568_vm4, %v993_v63  ;;  %4354 = vmatmul.mubr.msk.bf16.gmra.mrb[112].mxu0 %vm354_vm1, %v4874_v21  ;;  %4387 = vmatprep.mubr.msk.bf16.mxu1 %vm354_vm1, %v4913_v61  ;;  %v311_v21 = vld [vmem:[%s4694_s15 + $0x170] sm:$0xff] }
  0xfd   : > { %1023 = vst.msk [vmem:[#allocation2 + $0x8] sm:$0xff] %vm568_vm4, %v991_v59  ;;  %4357 = vmatprep.mubr.msk.bf16.mxu0 %vm354_vm1, %v4884_v33  ;;  %v5257_v26 = vpack.c.bf16 %v311_v21, %v310_v22  ;;  %v2525_v59 = vrot.slane %v2523_v28, 1 }
  0xfe   : > { %v4173_v62 = vpop.f32.mrb[4].mxu1 }
  0xff   : > { %v4143_v60 = vpop.f32.mrb[8].mxu0  ;;  %v964_v8 = vld [vmem:[#allocation2 + $0x30] sm:$0xff]  ;;  %v847_v47 = vpop.f32.mrb[5].mxu1  ;;  %v2517_v58 = vshrl.u32 %v5257_v26, 16 }
 0x100   : > { %579 = vst.msk [vmem:[#allocation2 + $0x50] sm:$0xff] %vm568_vm4, %v4143_v60  ;;  %v996_v56 = vadd.f32 %v4173_v62, %v964_v8  ;;  %v473_v23 = vpop.f32.mrb[9].mxu0  ;;  %v962_v55 = vld [vmem:[#allocation2 + $0x20] sm:$0xff]  ;;  %v4174_v41 = vpop.f32.mrb[6].mxu1 }
 0x101   : > { %577 = vst.msk [vmem:[#allocation2 + $0x40] sm:$0xff] %vm568_vm4, %v473_v23  ;;  %v994_v61 = vadd.f32 %v962_v55, %v847_v47  ;;  %v4144_v1 = vpop.f32.mrb[10].mxu0  ;;  %v965_v5 = vld [vmem:[#allocation2 + $0x38] sm:$0xff]  ;;  %v850_v33 = vpop.f32.mrb[7].mxu1  ;;  %v2531_v55 = vshll.u32 %v5288_v34, 16 }
 0x102   : > { %1028 = vst.msk [vmem:[#allocation2 + $0x30] sm:$0xff] %vm568_vm4, %v996_v56  ;;  %580 = vst.msk [vmem:[#allocation2 + $0x58] sm:$0xff] %vm568_vm4, %v4144_v1  ;;  %v997_v6 = vadd.f32 %v4174_v41, %v965_v5  ;;  %v476_v27 = vpop.f32.mrb[11].mxu0  ;;  %v963_v19 = vld [vmem:[#allocation2 + $0x28] sm:$0xff] }
 0x103   : > { %1026 = vst.msk [vmem:[#allocation2 + $0x20] sm:$0xff] %vm568_vm4, %v994_v61  ;;  %578 = vst.msk [vmem:[#allocation2 + $0x48] sm:$0xff] %vm568_vm4, %v476_v27  ;;  %v995_v51 = vadd.f32 %v963_v19, %v850_v33  ;;  %4388 = vmatmul.mubr.msk.bf16.gmra.mrb[112].mxu1 %vm354_vm1, %v4931_v25  ;;  %v2519_v25 = vshll.u32 %v5257_v26, 16 }
 0x104   : > { %1029 = vst.msk [vmem:[#allocation2 + $0x38] sm:$0xff] %vm568_vm4, %v997_v6  ;;  %4358 = vmatmul.mubr.msk.bf16.gmra.mrb[116].mxu0 %vm354_vm1, %v4904_v53  ;;  %4391 = vmatprep.mubr.msk.bf16.mxu1 %vm354_vm1, %v4936_v32 }
 0x105   : > { %1027 = vst.msk [vmem:[#allocation2 + $0x28] sm:$0xff] %vm568_vm4, %v995_v51  ;;  %4361 = vmatprep.mubr.msk.bf16.mxu0 %vm354_vm1, %v5086_v14  ;;  %v2521_v0 = vrot.slane %v2519_v25, 1  ;;  %v2533_v51 = vrot.slane %v2531_v55, 1 }
 0x106   : > { %v4177_v45 = vpop.f32.mrb[8].mxu1 }
 0x107   : > { %v4147_v29 = vpop.f32.mrb[12].mxu0  ;;  %v968_v40 = vld [vmem:[#allocation2 + $0x50] sm:$0xff]  ;;  %v863_v49 = vpop.f32.mrb[9].mxu1  ;;  %v2522_v16 = vor.u32 %v2521_v0, %v2517_v58 }
 0x108   : > { %583 = vst.msk [vmem:[#allocation2 + $0x70] sm:$0xff] %vm568_vm4, %v4147_v29  ;;  %v1000_v53 = vadd.f32 %v4177_v45, %v968_v40  ;;  %v489_v32 = vpop.f32.mrb[13].mxu0  ;;  %v966_v12 = vld [vmem:[#allocation2 + $0x40] sm:$0xff]  ;;  %v4178_v13 = vpop.f32.mrb[10].mxu1 }
 0x109   : > { %581 = vst.msk [vmem:[#allocation2 + $0x60] sm:$0xff] %vm568_vm4, %v489_v32  ;;  %v998_v35 = vadd.f32 %v966_v12, %v863_v49  ;;  %v4148_v38 = vpop.f32.mrb[14].mxu0  ;;  %v969_v14 = vld [vmem:[#allocation2 + $0x58] sm:$0xff]  ;;  %v866_v39 = vpop.f32.mrb[11].mxu1  ;;  %v2526_v1 = vsel %vm601_vm2, %v2522_v16, %v2525_v59 }
 0x10a   : > { %1032 = vst.msk [vmem:[#allocation2 + $0x50] sm:$0xff] %vm568_vm4, %v1000_v53  ;;  %584 = vst.msk [vmem:[#allocation2 + $0x78] sm:$0xff] %vm568_vm4, %v4148_v38  ;;  %v1001_v54 = vadd.f32 %v4178_v13, %v969_v14  ;;  %v492_v46 = vpop.f32.mrb[15].mxu0  ;;  %v967_v52 = vld [vmem:[#allocation2 + $0x48] sm:$0xff] }
 0x10b   : > { %1030 = vst.msk [vmem:[#allocation2 + $0x40] sm:$0xff] %vm568_vm4, %v998_v35  ;;  %582 = vst.msk [vmem:[#allocation2 + $0x68] sm:$0xff] %vm568_vm4, %v492_v46  ;;  %v999_v63 = vadd.f32 %v967_v52, %v866_v39  ;;  %4392 = vmatmul.mubr.msk.bf16.gmra.mrb[116].mxu1 %vm354_vm1, %v4950_v44 }
 0x10c   : > { %1033 = vst.msk [vmem:[#allocation2 + $0x58] sm:$0xff] %vm568_vm4, %v1001_v54  ;;  %4362 = vmatmul.mubr.msk.bf16.gmra.mrb[120].mxu0 %vm354_vm1, %v5101_v11  ;;  %4395 = vmatprep.mubr.msk.bf16.mxu1 %vm354_vm1, %v5165_v17  ;;  %v2527_v17 = vshrl.u32 %v5270_v4, 16 }
 0x10d   : > { %1031 = vst.msk [vmem:[#allocation2 + $0x48] sm:$0xff] %vm568_vm4, %v999_v63  ;;  %4365 = vmatprep.mubr.msk.bf16.mxu0 %vm354_vm1, %v5257_v26 }
 0x10e   : > { %v4181_v62 = vpop.f32.mrb[12].mxu1  ;;  %v2529_v19 = vor.u32 %v2527_v17, %v2525_v59 }
 0x10f   : > { %v4151_v60 = vpop.f32.mrb[16].mxu0  ;;  %v972_v44 = vld [vmem:[#allocation2 + $0x70] sm:$0xff]  ;;  %v879_v8 = vpop.f32.mrb[13].mxu1 }
 0x110   : > { %587 = vst.msk [vmem:[#allocation2 + $0x90] sm:$0xff] %vm568_vm4, %v4151_v60  ;;  %v1004_v47 = vadd.f32 %v4181_v62, %v972_v44  ;;  %v505_v11 = vpop.f32.mrb[17].mxu0  ;;  %v970_v56 = vld [vmem:[#allocation2 + $0x60] sm:$0xff]  ;;  %v4182_v23 = vpop.f32.mrb[14].mxu1  ;;  %v2534_v53 = vsel %vm601_vm2, %v2529_v19, %v2533_v51 }
 0x111   : > { %585 = vst.msk [vmem:[#allocation2 + $0x80] sm:$0xff] %vm568_vm4, %v505_v11  ;;  %v1002_v41 = vadd.f32 %v970_v56, %v879_v8  ;;  %v4152_v22 = vpop.f32.mrb[18].mxu0  ;;  %v973_v21 = vld [vmem:[#allocation2 + $0x78] sm:$0xff]  ;;  %v882_v61 = vpop.f32.mrb[15].mxu1 }
 0x112   : > { %1036 = vst.msk [vmem:[#allocation2 + $0x70] sm:$0xff] %vm568_vm4, %v1004_v47  ;;  %588 = vst.msk [vmem:[#allocation2 + $0x98] sm:$0xff] %vm568_vm4, %v4152_v22  ;;  %v1005_v5 = vadd.f32 %v4182_v23, %v973_v21  ;;  %v508_v33 = vpop.f32.mrb[19].mxu0  ;;  %v971_v6 = vld [vmem:[#allocation2 + $0x68] sm:$0xff] }
 0x113   : > { %1034 = vst.msk [vmem:[#allocation2 + $0x60] sm:$0xff] %vm568_vm4, %v1002_v41  ;;  %586 = vst.msk [vmem:[#allocation2 + $0x88] sm:$0xff] %vm568_vm4, %v508_v33  ;;  %v1003_v27 = vadd.f32 %v971_v6, %v882_v61  ;;  %4396 = vmatmul.mubr.msk.bf16.gmra.mrb[120].mxu1 %vm354_vm1, %v5178_v18 }
 0x114   : > { %1037 = vst.msk [vmem:[#allocation2 + $0x78] sm:$0xff] %vm568_vm4, %v1005_v5  ;;  %4366 = vmatmul.mubr.msk.bf16.gmra.mrb[124].mxu0 %vm354_vm1, %v5270_v4  ;;  %4399 = vmatprep.mubr.msk.bf16.mxu1 %vm354_vm1, %v2526_v1 }
 0x115   : > { %1035 = vst.msk [vmem:[#allocation2 + $0x68] sm:$0xff] %vm568_vm4, %v1003_v27  ;;  %4405 = vmatprep.mubr.msk.bf16.mxu0 %vm354_vm1, %v4979_v57 }
 0x116   : > { %v4185_v30 = vpop.f32.mrb[16].mxu1 }
 0x117   : > { %v4155_v37 = vpop.f32.mrb[20].mxu0  ;;  %v976_v25 = vld [vmem:[#allocation2 + $0x90] sm:$0xff]  ;;  %v895_v45 = vpop.f32.mrb[17].mxu1 }
 0x118   : > { %591 = vst.msk [vmem:[#allocation2 + $0xb0] sm:$0xff] %vm568_vm4, %v4155_v37  ;;  %v1008_v18 = vadd.f32 %v4185_v30, %v976_v25  ;;  %v521_v29 = vpop.f32.mrb[21].mxu0  ;;  %v974_v40 = vld [vmem:[#allocation2 + $0x80] sm:$0xff]  ;;  %v4186_v49 = vpop.f32.mrb[18].mxu1  ;;  %v1333_v30 = vld [vmem:[#allocation2 + $0x10] sm:$0xff] }
 0x119   : > { %589 = vst.msk [vmem:[#allocation2 + $0xa0] sm:$0xff] %vm568_vm4, %v521_v29  ;;  %v1006_v32 = vadd.f32 %v974_v40, %v895_v45  ;;  %v4156_v12 = vpop.f32.mrb[22].mxu0  ;;  %v977_v13 = vld [vmem:[#allocation2 + $0x98] sm:$0xff]  ;;  %v898_v31 = vpop.f32.mrb[19].mxu1  ;;  %v1331_v40 = vld [vmem:[#allocation2] sm:$0xff] }
 0x11a   : > { %1040 = vst.msk [vmem:[#allocation2 + $0x90] sm:$0xff] %vm568_vm4, %v1008_v18  ;;  %592 = vst.msk [vmem:[#allocation2 + $0xb8] sm:$0xff] %vm568_vm4, %v4156_v12  ;;  %v1009_v57 = vadd.f32 %v4186_v49, %v977_v13  ;;  %v524_v35 = vpop.f32.mrb[23].mxu0  ;;  %v975_v38 = vld [vmem:[#allocation2 + $0x88] sm:$0xff]  ;;  %v1334_v13 = vld [vmem:[#allocation2 + $0x18] sm:$0xff] }
 0x11b   : > { %1038 = vst.msk [vmem:[#allocation2 + $0x80] sm:$0xff] %vm568_vm4, %v1006_v32  ;;  %590 = vst.msk [vmem:[#allocation2 + $0xa8] sm:$0xff] %vm568_vm4, %v524_v35  ;;  %v1007_v14 = vadd.f32 %v975_v38, %v898_v31  ;;  %4400 = vmatmul.mubr.msk.bf16.gmra.mrb[124].mxu1 %vm354_vm1, %v2534_v53 }
 0x11c   : > { %1041 = vst.msk [vmem:[#allocation2 + $0x98] sm:$0xff] %vm568_vm4, %v1009_v57  ;;  %4406 = vmatmul.mubr.msk.bf16.vlgmr.msra.gmra.mrb[128].mxu0 %vm354_vm1, %v5002_v2 }
 0x11d   : > { %1039 = vst.msk [vmem:[#allocation2 + $0x88] sm:$0xff] %vm568_vm4, %v1007_v14  ;;  %4409 = vmatprep.mubr.msk.bf16.mxu0 %vm354_vm1, %v5005_v3  ;;  %v1332_v14 = vld [vmem:[#allocation2 + $0x8] sm:$0xff] }
 0x11e   : > { %v4189_v39 = vpop.f32.mrb[20].mxu1 }
 0x11f   : > { %v4159_v58 = vpop.f32.mrb[24].mxu0  ;;  %v980_v0 = vld [vmem:[#allocation2 + $0xb0] sm:$0xff]  ;;  %v911_v28 = vpop.f32.mrb[21].mxu1 }
 0x120   : > { %595 = vst.msk [vmem:[#allocation2 + $0xd0] sm:$0xff] %vm568_vm4, %v4159_v58  ;;  %v1012_v54 = vadd.f32 %v4189_v39, %v980_v0  ;;  %v537_v46 = vpop.f32.mrb[25].mxu0  ;;  %v978_v52 = vld [vmem:[#allocation2 + $0xa0] sm:$0xff]  ;;  %v4190_v63 = vpop.f32.mrb[22].mxu1 }
 0x121   : > { %593 = vst.msk [vmem:[#allocation2 + $0xc0] sm:$0xff] %vm568_vm4, %v537_v46  ;;  %v1010_v16 = vadd.f32 %v978_v52, %v911_v28  ;;  %v4160_v59 = vpop.f32.mrb[26].mxu0  ;;  %v981_v2 = vld [vmem:[#allocation2 + $0xb8] sm:$0xff]  ;;  %v914_v62 = vpop.f32.mrb[23].mxu1 }
 0x122   : > { %1044 = vst.msk [vmem:[#allocation2 + $0xb0] sm:$0xff] %vm568_vm4, %v1012_v54  ;;  %596 = vst.msk [vmem:[#allocation2 + $0xd8] sm:$0xff] %vm568_vm4, %v4160_v59  ;;  %v1013_v3 = vadd.f32 %v4190_v63, %v981_v2  ;;  %v540_v60 = vpop.f32.mrb[27].mxu0  ;;  %v979_v44 = vld [vmem:[#allocation2 + $0xa8] sm:$0xff]  ;;  %v1337_v54 = vld [vmem:[#allocation2 + $0x30] sm:$0xff] }
 0x123   : > { %1042 = vst.msk [vmem:[#allocation2 + $0xa0] sm:$0xff] %vm568_vm4, %v1010_v16  ;;  %594 = vst.msk [vmem:[#allocation2 + $0xc8] sm:$0xff] %vm568_vm4, %v540_v60  ;;  %v1011_v8 = vadd.f32 %v979_v44, %v914_v62  ;;  %v1335_v16 = vld [vmem:[#allocation2 + $0x20] sm:$0xff] }
 0x124   : > { %1045 = vst.msk [vmem:[#allocation2 + $0xb8] sm:$0xff] %vm568_vm4, %v1013_v3  ;;  %4410 = vmatmul.mubr.msk.bf16.gmra.mrb[132].mxu0 %vm354_vm1, %v5019_v7  ;;  %v1338_v3 = vld [vmem:[#allocation2 + $0x38] sm:$0xff] }
 0x125   : > { %1043 = vst.msk [vmem:[#allocation2 + $0xa8] sm:$0xff] %vm568_vm4, %v1011_v8  ;;  %4413 = vmatprep.mubr.msk.bf16.mxu0 %vm354_vm1, %v5022_v10 }
 0x126   : > { %v4193_v47 = vpop.f32.mrb[24].mxu1 }
 0x127   : > { %v4163_v11 = vpop.f32.mrb[28].mxu0  ;;  %v984_v56 = vld [vmem:[#allocation2 + $0xd0] sm:$0xff]  ;;  %v927_v23 = vpop.f32.mrb[25].mxu1 }
 0x128   : > { %599 = vst.msk [vmem:[#allocation2 + $0xf0] sm:$0xff] %vm568_vm4, %v4163_v11  ;;  %v1016_v17 = vadd.f32 %v4193_v47, %v984_v56  ;;  %v553_v55 = vpop.f32.mrb[29].mxu0  ;;  %v982_v41 = vld [vmem:[#allocation2 + $0xc0] sm:$0xff]  ;;  %v4194_v22 = vpop.f32.mrb[26].mxu1  ;;  %v1336_v11 = vld [vmem:[#allocation2 + $0x28] sm:$0xff] }
 0x129   : > { %597 = vst.msk [vmem:[#allocation2 + $0xe0] sm:$0xff] %vm568_vm4, %v553_v55  ;;  %v1014_v21 = vadd.f32 %v982_v41, %v927_v23  ;;  %v4164_v61 = vpop.f32.mrb[30].mxu0  ;;  %v985_v7 = vld [vmem:[#allocation2 + $0xd8] sm:$0xff]  ;;  %v930_v1 = vpop.f32.mrb[27].mxu1 }
 0x12a   : > { %1048 = vst.msk [vmem:[#allocation2 + $0xd0] sm:$0xff] %vm568_vm4, %v1016_v17  ;;  %600 = vst.msk [vmem:[#allocation2 + $0xf8] sm:$0xff] %vm568_vm4, %v4164_v61  ;;  %v1017_v10 = vadd.f32 %v4194_v22, %v985_v7  ;;  %v556_v5 = vpop.f32.mrb[31].mxu0  ;;  %v983_v33 = vld [vmem:[#allocation2 + $0xc8] sm:$0xff]  ;;  %v1341_v7 = vld [vmem:[#allocation2 + $0x50] sm:$0xff] }
 0x12b   : > { %1046 = vst.msk [vmem:[#allocation2 + $0xc0] sm:$0xff] %vm568_vm4, %v1014_v21  ;;  %598 = vst.msk [vmem:[#allocation2 + $0xe8] sm:$0xff] %vm568_vm4, %v556_v5  ;;  %v1015_v6 = vadd.f32 %v983_v33, %v930_v1  ;;  %v1339_v33 = vld [vmem:[#allocation2 + $0x40] sm:$0xff] }
 0x12c   : > { %1049 = vst.msk [vmem:[#allocation2 + $0xd8] sm:$0xff] %vm568_vm4, %v1017_v10  ;;  %4414 = vmatmul.mubr.msk.bf16.gmra.mrb[136].mxu0 %vm354_vm1, %v5036_v20 }
 0x12d   : > { %1047 = vst.msk [vmem:[#allocation2 + $0xc8] sm:$0xff] %vm568_vm4, %v1015_v6  ;;  %4417 = vmatprep.mubr.msk.bf16.mxu0 %vm354_vm1, %v5039_v24 }
 0x12e   : > { %v4197_v27 = vpop.f32.mrb[28].mxu1 }
 0x12f   : > { %v988_v19 = vld [vmem:[#allocation2 + $0xf0] sm:$0xff]  ;;  %v4203_v51 = vpop.f32.mrb[32].mxu0  ;;  %v943_v37 = vpop.f32.mrb[29].mxu1 }
 0x130   : > { %v1020_v25 = vadd.f32 %v4197_v27, %v988_v19  ;;  %v1365_v45 = vadd.f32 %v4203_v51, %v1333_v30  ;;  %v986_v18 = vld [vmem:[#allocation2 + $0xe0] sm:$0xff]  ;;  %v1204_v29 = vpop.f32.mrb[33].mxu0  ;;  %v4198_v49 = vpop.f32.mrb[30].mxu1  ;;  %v1342_v19 = vld [vmem:[#allocation2 + $0x58] sm:$0xff] }
 0x131   : > { %v1018_v53 = vadd.f32 %v986_v18, %v943_v37  ;;  %v1363_v32 = vadd.f32 %v1331_v40, %v1204_v29  ;;  %v989_v12 = vld [vmem:[#allocation2 + $0xf8] sm:$0xff]  ;;  %v4204_v20 = vpop.f32.mrb[34].mxu0  ;;  %v946_v31 = vpop.f32.mrb[31].mxu1 }
 0x132   : > { %1052 = vst.msk [vmem:[#allocation2 + $0xf0] sm:$0xff] %vm568_vm4, %v1020_v25  ;;  %1397 = vst.msk [vmem:[#allocation2 + $0x10] sm:$0xff] %vm568_vm4, %v1365_v45  ;;  %v1021_v24 = vadd.f32 %v4198_v49, %v989_v12  ;;  %v1366_v57 = vadd.f32 %v4204_v20, %v1334_v13  ;;  %v987_v35 = vld [vmem:[#allocation2 + $0xe8] sm:$0xff]  ;;  %v1207_v38 = vpop.f32.mrb[35].mxu0  ;;  %v2804_v13 = vrot.slane %v5257_v26, 1 }
 0x133   : > { %1050 = vst.msk [vmem:[#allocation2 + $0xe0] sm:$0xff] %vm568_vm4, %v1018_v53  ;;  %1395 = vst.msk [vmem:[#allocation2] sm:$0xff] %vm568_vm4, %v1363_v32  ;;  %v1019_v39 = vadd.f32 %v987_v35, %v946_v31  ;;  %v1364_v58 = vadd.f32 %v1332_v14, %v1207_v38  ;;  %v1340_v45 = vld [vmem:[#allocation2 + $0x48] sm:$0xff]  ;;  %v2805_v31 = vrot.slane %v5270_v4, 1  ;;  %v3258_v35 = vld [vmem:[%s5864_s3] sm:$0xf] }
 0x134   : > { %1053 = vst.msk [vmem:[#allocation2 + $0xf8] sm:$0xff] %vm568_vm4, %v1021_v24  ;;  %1398 = vst.msk [vmem:[#allocation2 + $0x18] sm:$0xff] %vm568_vm4, %v1366_v57  ;;  %4418 = vmatmul.mubr.msk.bf16.gmra.mrb[140].mxu0 %vm354_vm1, %v5053_v36  ;;  %v1345_v57 = vld [vmem:[#allocation2 + $0x70] sm:$0xff]  ;;  %4480 = vmatprep.subr.msk.bf16.mxu1 %vm3314_vm5, %v3258_v35 }
 0x135   : > { %1051 = vst.msk [vmem:[#allocation2 + $0xe8] sm:$0xff] %vm568_vm4, %v1019_v39  ;;  %1396 = vst.msk [vmem:[#allocation2 + $0x8] sm:$0xff] %vm568_vm4, %v1364_v58  ;;  %4421 = vmatprep.mubr.msk.bf16.mxu0 %vm354_vm1, %v5056_v9  ;;  %v3316_v58 = vsel %vm3314_vm5, %v3258_v35, 0 }
 0x136   : > { %v4237_v0 = vpop.f32.mrb[32].mxu1  ;;  %4438 = vmatpush3.bf16.msra.mxu1 %v3316_v58 }
 0x137   : > { %v4207_v28 = vpop.f32.mrb[36].mxu0  ;;  %v1470_v46 = vpop.f32.mrb[33].mxu1 }
 0x138   : > { %v1369_v52 = vadd.f32 %v4207_v28, %v1337_v54  ;;  %v1220_v63 = vpop.f32.mrb[37].mxu0  ;;  %v4238_v59 = vpop.f32.mrb[34].mxu1  ;;  %v1346_v28 = vld [vmem:[#allocation2 + $0x78] sm:$0xff] }
 0x139   : > { %v1367_v2 = vadd.f32 %v1335_v16, %v1220_v63  ;;  %v4208_v62 = vpop.f32.mrb[38].mxu0  ;;  %v1599_v60 = vld [vmem:[#allocation2 + $0x10] sm:$0xff]  ;;  %v1473_v36 = vpop.f32.mrb[35].mxu1  ;;  %v1344_v16 = vld [vmem:[#allocation2 + $0x68] sm:$0xff] }
 0x13a   : > { %1401 = vst.msk [vmem:[#allocation2 + $0x30] sm:$0xff] %vm568_vm4, %v1369_v52  ;;  %v1370_v44 = vadd.f32 %v4208_v62, %v1338_v3  ;;  %v1631_v8 = vadd.f32 %v4237_v0, %v1599_v60  ;;  %v1223_v47 = vpop.f32.mrb[39].mxu0  ;;  %v1597_v9 = vld [vmem:[#allocation2] sm:$0xff] }
 0x13b   : > { %1399 = vst.msk [vmem:[#allocation2 + $0x20] sm:$0xff] %vm568_vm4, %v1367_v2  ;;  %v1368_v56 = vadd.f32 %v1336_v11, %v1223_v47  ;;  %v1629_v23 = vadd.f32 %v1597_v9, %v1470_v46  ;;  %v1600_v17 = vld [vmem:[#allocation2 + $0x18] sm:$0xff]  ;;  %v2806_v2 = vsel %vm1078_vm3, %v2804_v13, %v2805_v31  ;;  %v2807_v47 = vrot.slane %v5288_v34, 1 }
 0x13c   : > { %1402 = vst.msk [vmem:[#allocation2 + $0x38] sm:$0xff] %vm568_vm4, %v1370_v44  ;;  %1663 = vst.msk [vmem:[#allocation2 + $0x10] sm:$0xff] %vm568_vm4, %v1631_v8  ;;  %v1632_v55 = vadd.f32 %v4238_v59, %v1600_v17  ;;  %v1598_v41 = vld [vmem:[#allocation2 + $0x8] sm:$0xff]  ;;  %4422 = vmatmul.mubr.msk.bf16.gmra.mrb[144].mxu0 %vm354_vm1, %v5070_v42  ;;  %v1354_v13 = vld [vmem:[#allocation2 + $0xb8] sm:$0xff] }
 0x13d   : > { %1400 = vst.msk [vmem:[#allocation2 + $0x28] sm:$0xff] %vm568_vm4, %v1368_v56  ;;  %1661 = vst.msk [vmem:[#allocation2] sm:$0xff] %vm568_vm4, %v1629_v23  ;;  %v1630_v22 = vadd.f32 %v1598_v41, %v1473_v36  ;;  %4425 = vmatprep.mubr.msk.bf16.mxu0 %vm354_vm1, %v5073_v43  ;;  %v1349_v56 = vld [vmem:[#allocation2 + $0x90] sm:$0xff] }
 0x13e   : > { %1664 = vst.msk [vmem:[#allocation2 + $0x18] sm:$0xff] %vm568_vm4, %v1632_v55  ;;  %v4241_v21 = vpop.f32.mrb[36].mxu1 }
 0x13f   : > { %1662 = vst.msk [vmem:[#allocation2 + $0x8] sm:$0xff] %vm568_vm4, %v1630_v22  ;;  %v4211_v61 = vpop.f32.mrb[40].mxu0  ;;  %v1486_v1 = vpop.f32.mrb[37].mxu1 }
 0x140   : > { %v1373_v10 = vadd.f32 %v4211_v61, %v1341_v7  ;;  %v1236_v5 = vpop.f32.mrb[41].mxu0  ;;  %v4242_v42 = vpop.f32.mrb[38].mxu1  ;;  %v1350_v61 = vld [vmem:[#allocation2 + $0x98] sm:$0xff] }
 0x141   : > { %v1371_v6 = vadd.f32 %v1339_v33, %v1236_v5  ;;  %v4212_v27 = vpop.f32.mrb[42].mxu0  ;;  %v1603_v51 = vld [vmem:[#allocation2 + $0x30] sm:$0xff]  ;;  %v1489_v30 = vpop.f32.mrb[39].mxu1 }
 0x142   : > { %1405 = vst.msk [vmem:[#allocation2 + $0x50] sm:$0xff] %vm568_vm4, %v1373_v10  ;;  %v1374_v43 = vadd.f32 %v4212_v27, %v1342_v19  ;;  %v1635_v37 = vadd.f32 %v4241_v21, %v1603_v51  ;;  %v1239_v25 = vpop.f32.mrb[43].mxu0  ;;  %v1601_v18 = vld [vmem:[#allocation2 + $0x20] sm:$0xff]  ;;  %v2808_v10 = vsel %vm1078_vm3, %v2805_v31, %v2807_v47 }
 0x143   : > { %1403 = vst.msk [vmem:[#allocation2 + $0x40] sm:$0xff] %vm568_vm4, %v1371_v6  ;;  %v1372_v29 = vadd.f32 %v1340_v45, %v1239_v25  ;;  %v1633_v40 = vadd.f32 %v1601_v18, %v1486_v1  ;;  %v1604_v49 = vld [vmem:[#allocation2 + $0x38] sm:$0xff]  ;;  %v1353_v18 = vld [vmem:[#allocation2 + $0xb0] sm:$0xff] }
 0x144   : > { %1406 = vst.msk [vmem:[#allocation2 + $0x58] sm:$0xff] %vm568_vm4, %v1374_v43  ;;  %1667 = vst.msk [vmem:[#allocation2 + $0x30] sm:$0xff] %vm568_vm4, %v1635_v37  ;;  %v1636_v53 = vadd.f32 %v4242_v42, %v1604_v49  ;;  %v1602_v32 = vld [vmem:[#allocation2 + $0x28] sm:$0xff]  ;;  %4426 = vmatmul.mubr.msk.bf16.gmra.mrb[148].mxu0 %vm354_vm1, %v5089_v50 }
 0x145   : > { %1404 = vst.msk [vmem:[#allocation2 + $0x48] sm:$0xff] %vm568_vm4, %v1372_v29  ;;  %1665 = vst.msk [vmem:[#allocation2 + $0x20] sm:$0xff] %vm568_vm4, %v1633_v40  ;;  %v1634_v12 = vadd.f32 %v1602_v32, %v1489_v30  ;;  %4429 = vmatprep.mubr.msk.bf16.mxu0 %vm354_vm1, %v5181_v15  ;;  %v1343_v15 = vld [vmem:[#allocation2 + $0x60] sm:$0xff]  ;;  %v1348_v42 = vld [vmem:[#allocation2 + $0x88] sm:$0xff] }
 0x146   : > { %1668 = vst.msk [vmem:[#allocation2 + $0x38] sm:$0xff] %vm568_vm4, %v1636_v53  ;;  %v4245_v20 = vpop.f32.mrb[40].mxu1  ;;  %v1351_v53 = vld [vmem:[#allocation2 + $0xa0] sm:$0xff] }
 0x147   : > { %1666 = vst.msk [vmem:[#allocation2 + $0x28] sm:$0xff] %vm568_vm4, %v1634_v12  ;;  %v4215_v24 = vpop.f32.mrb[44].mxu0  ;;  %v1502_v50 = vpop.f32.mrb[41].mxu1 }
 0x148   : > { %v1377_v38 = vadd.f32 %v4215_v24, %v1345_v57  ;;  %v1252_v14 = vpop.f32.mrb[45].mxu0  ;;  %v4246_v39 = vpop.f32.mrb[42].mxu1 }
 0x149   : > { %v1375_v0 = vadd.f32 %v1343_v15, %v1252_v14  ;;  %v4216_v26 = vpop.f32.mrb[46].mxu0  ;;  %v1607_v4 = vld [vmem:[#allocation2 + $0x50] sm:$0xff]  ;;  %v1505_v54 = vpop.f32.mrb[43].mxu1 }
 0x14a   : > { %1409 = vst.msk [vmem:[#allocation2 + $0x70] sm:$0xff] %vm568_vm4, %v1377_v38  ;;  %v1378_v46 = vadd.f32 %v4216_v26, %v1346_v28  ;;  %v1639_v52 = vadd.f32 %v4245_v20, %v1607_v4  ;;  %v1255_v63 = vpop.f32.mrb[47].mxu0  ;;  %v1605_v59 = vld [vmem:[#allocation2 + $0x40] sm:$0xff]  ;;  %v1352_v38 = vld [vmem:[#allocation2 + $0xa8] sm:$0xff] }
 0x14b   : > { %1407 = vst.msk [vmem:[#allocation2 + $0x60] sm:$0xff] %vm568_vm4, %v1375_v0  ;;  %v1376_v62 = vadd.f32 %v1344_v16, %v1255_v63  ;;  %v1637_v3 = vadd.f32 %v1605_v59, %v1502_v50  ;;  %v1608_v60 = vld [vmem:[#allocation2 + $0x58] sm:$0xff]  ;;  %v1355_v59 = vld [vmem:[#allocation2 + $0xc0] sm:$0xff] }
 0x14c   : > { %1410 = vst.msk [vmem:[#allocation2 + $0x78] sm:$0xff] %vm568_vm4, %v1378_v46  ;;  %1671 = vst.msk [vmem:[#allocation2 + $0x50] sm:$0xff] %vm568_vm4, %v1639_v52  ;;  %v1640_v36 = vadd.f32 %v4246_v39, %v1608_v60  ;;  %v1606_v44 = vld [vmem:[#allocation2 + $0x48] sm:$0xff]  ;;  %4430 = vmatmul.mubr.msk.bf16.gmra.mrb[152].mxu0 %vm354_vm1, %v5192_v48  ;;  %v1347_v48 = vld [vmem:[#allocation2 + $0x80] sm:$0xff] }
 0x14d   : > { %1408 = vst.msk [vmem:[#allocation2 + $0x68] sm:$0xff] %vm568_vm4, %v1376_v62  ;;  %1669 = vst.msk [vmem:[#allocation2 + $0x40] sm:$0xff] %vm568_vm4, %v1637_v3  ;;  %v1638_v8 = vadd.f32 %v1606_v44, %v1505_v54  ;;  %4433 = vmatprep.mubr.msk.bf16.mxu0 %vm354_vm1, %v2806_v2  ;;  %v1357_v46 = vld [vmem:[#allocation2 + $0xd0] sm:$0xff]  ;;  %v1358_v60 = vld [vmem:[#allocation2 + $0xd8] sm:$0xff] }
 0x14e   : > { %1672 = vst.msk [vmem:[#allocation2 + $0x58] sm:$0xff] %vm568_vm4, %v1640_v36  ;;  %v4249_v11 = vpop.f32.mrb[44].mxu1 }
 0x14f   : > { %1670 = vst.msk [vmem:[#allocation2 + $0x48] sm:$0xff] %vm568_vm4, %v1638_v8  ;;  %v4219_v9 = vpop.f32.mrb[48].mxu0  ;;  %v1518_v23 = vpop.f32.mrb[45].mxu1 }
 0x150   : > { %v1381_v17 = vadd.f32 %v4219_v9, %v1349_v56  ;;  %v1268_v55 = vpop.f32.mrb[49].mxu0  ;;  %v4250_v41 = vpop.f32.mrb[46].mxu1  ;;  %v1356_v9 = vld [vmem:[#allocation2 + $0xc8] sm:$0xff] }
 0x151   : > { %v1379_v22 = vadd.f32 %v1347_v48, %v1268_v55  ;;  %v4220_v21 = vpop.f32.mrb[50].mxu0  ;;  %v1611_v7 = vld [vmem:[#allocation2 + $0x70] sm:$0xff]  ;;  %v1521_v1 = vpop.f32.mrb[47].mxu1 }
 0x152   : > { %1413 = vst.msk [vmem:[#allocation2 + $0x90] sm:$0xff] %vm568_vm4, %v1381_v17  ;;  %v1382_v34 = vadd.f32 %v4220_v21, %v1350_v61  ;;  %v1643_v5 = vadd.f32 %v4249_v11, %v1611_v7  ;;  %v1271_v33 = vpop.f32.mrb[51].mxu0  ;;  %v1609_v6 = vld [vmem:[#allocation2 + $0x60] sm:$0xff]  ;;  %v1361_v7 = vld [vmem:[#allocation2 + $0xf0] sm:$0xff] }
 0x153   : > { %1411 = vst.msk [vmem:[#allocation2 + $0x80] sm:$0xff] %vm568_vm4, %v1379_v22  ;;  %v1380_v27 = vadd.f32 %v1348_v42, %v1271_v33  ;;  %v1641_v19 = vadd.f32 %v1609_v6, %v1518_v23  ;;  %v1612_v51 = vld [vmem:[#allocation2 + $0x78] sm:$0xff] }
 0x154   : > { %1414 = vst.msk [vmem:[#allocation2 + $0x98] sm:$0xff] %vm568_vm4, %v1382_v34  ;;  %1675 = vst.msk [vmem:[#allocation2 + $0x70] sm:$0xff] %vm568_vm4, %v1643_v5  ;;  %v1644_v30 = vadd.f32 %v4250_v41, %v1612_v51  ;;  %v1610_v43 = vld [vmem:[#allocation2 + $0x68] sm:$0xff]  ;;  %4434 = vmatmul.mubr.msk.bf16.gmra.mrb[156].mxu0 %vm354_vm1, %v2808_v10  ;;  %v1359_v5 = vld [vmem:[#allocation2 + $0xe0] sm:$0xff] }
 0x155   : > { %1412 = vst.msk [vmem:[#allocation2 + $0x88] sm:$0xff] %vm568_vm4, %v1380_v27  ;;  %1673 = vst.msk [vmem:[#allocation2 + $0x60] sm:$0xff] %vm568_vm4, %v1641_v19  ;;  %v1642_v37 = vadd.f32 %v1610_v43, %v1521_v1  ;;  %v1362_v27 = vld [vmem:[#allocation2 + $0xf8] sm:$0xff] }
 0x156   : > { %1676 = vst.msk [vmem:[#allocation2 + $0x78] sm:$0xff] %vm568_vm4, %v1644_v30  ;;  %v4253_v25 = vpop.f32.mrb[48].mxu1 }
 0x157   : > { %1674 = vst.msk [vmem:[#allocation2 + $0x68] sm:$0xff] %vm568_vm4, %v1642_v37  ;;  %v4223_v45 = vpop.f32.mrb[52].mxu0  ;;  %v1534_v29 = vpop.f32.mrb[49].mxu1 }
 0x158   : > { %v1385_v40 = vadd.f32 %v4223_v45, %v1353_v18  ;;  %v1284_v49 = vpop.f32.mrb[53].mxu0  ;;  %v4254_v32 = vpop.f32.mrb[50].mxu1 }
 0x159   : > { %v1383_v12 = vadd.f32 %v1351_v53, %v1284_v49  ;;  %v4224_v20 = vpop.f32.mrb[54].mxu0  ;;  %v1615_v31 = vld [vmem:[#allocation2 + $0x90] sm:$0xff]  ;;  %v1537_v24 = vpop.f32.mrb[51].mxu1 }
 0x15a   : > { %1417 = vst.msk [vmem:[#allocation2 + $0xb0] sm:$0xff] %vm568_vm4, %v1385_v40  ;;  %v1386_v57 = vadd.f32 %v4224_v20, %v1354_v13  ;;  %v1647_v50 = vadd.f32 %v4253_v25, %v1615_v31  ;;  %v1287_v35 = vpop.f32.mrb[55].mxu0  ;;  %v1613_v14 = vld [vmem:[#allocation2 + $0x80] sm:$0xff]  ;;  %v1360_v25 = vld [vmem:[#allocation2 + $0xe8] sm:$0xff]  ;;  %v1883_v13 = vld [vmem:[#allocation2 + $0x10] sm:$0xff] }
 0x15b   : > { %1415 = vst.msk [vmem:[#allocation2 + $0xa0] sm:$0xff] %vm568_vm4, %v1383_v12  ;;  %v1384_v15 = vadd.f32 %v1352_v38, %v1287_v35  ;;  %v1645_v39 = vadd.f32 %v1613_v14, %v1534_v29  ;;  %v1616_v58 = vld [vmem:[#allocation2 + $0x98] sm:$0xff] }
 0x15c   : > { %1418 = vst.msk [vmem:[#allocation2 + $0xb8] sm:$0xff] %vm568_vm4, %v1386_v57  ;;  %1679 = vst.msk [vmem:[#allocation2 + $0x90] sm:$0xff] %vm568_vm4, %v1647_v50  ;;  %v1648_v0 = vadd.f32 %v4254_v32, %v1616_v58  ;;  %v1614_v26 = vld [vmem:[#allocation2 + $0x88] sm:$0xff]  ;;  %v1881_v50 = vld [vmem:[#allocation2] sm:$0xff] }
 0x15d   : > { %1416 = vst.msk [vmem:[#allocation2 + $0xa8] sm:$0xff] %vm568_vm4, %v1384_v15  ;;  %1677 = vst.msk [vmem:[#allocation2 + $0x80] sm:$0xff] %vm568_vm4, %v1645_v39  ;;  %v1646_v28 = vadd.f32 %v1614_v26, %v1537_v24  ;;  %v1884_v39 = vld [vmem:[#allocation2 + $0x18] sm:$0xff] }
 0x15e   : > { %1680 = vst.msk [vmem:[#allocation2 + $0x98] sm:$0xff] %vm568_vm4, %v1648_v0  ;;  %v4257_v4 = vpop.f32.mrb[52].mxu1 }
 0x15f   : > { %1678 = vst.msk [vmem:[#allocation2 + $0x88] sm:$0xff] %vm568_vm4, %v1646_v28  ;;  %v4227_v54 = vpop.f32.mrb[56].mxu0  ;;  %v1550_v52 = vpop.f32.mrb[53].mxu1 }
 0x160   : > { %v1389_v63 = vadd.f32 %v4227_v54, %v1357_v46  ;;  %v1300_v16 = vpop.f32.mrb[57].mxu0  ;;  %v4258_v2 = vpop.f32.mrb[54].mxu1  ;;  %v1882_v54 = vld [vmem:[#allocation2 + $0x8] sm:$0xff] }
 0x161   : > { %v1387_v62 = vadd.f32 %v1355_v59, %v1300_v16  ;;  %v4228_v3 = vpop.f32.mrb[58].mxu0  ;;  %v1619_v36 = vld [vmem:[#allocation2 + $0xb0] sm:$0xff]  ;;  %v1553_v44 = vpop.f32.mrb[55].mxu1 }
 0x162   : > { %1421 = vst.msk [vmem:[#allocation2 + $0xd0] sm:$0xff] %vm568_vm4, %v1389_v63  ;;  %v1390_v8 = vadd.f32 %v4228_v3, %v1358_v60  ;;  %v1651_v47 = vadd.f32 %v4257_v4, %v1619_v36  ;;  %v1303_v11 = vpop.f32.mrb[59].mxu0  ;;  %v1617_v56 = vld [vmem:[#allocation2 + $0xa0] sm:$0xff]  ;;  %v1887_v60 = vld [vmem:[#allocation2 + $0x30] sm:$0xff] }
 0x163   : > { %1419 = vst.msk [vmem:[#allocation2 + $0xc0] sm:$0xff] %vm568_vm4, %v1387_v62  ;;  %v1388_v23 = vadd.f32 %v1356_v9, %v1303_v11  ;;  %v1649_v17 = vadd.f32 %v1617_v56, %v1550_v52  ;;  %v1620_v55 = vld [vmem:[#allocation2 + $0xb8] sm:$0xff] }
 0x164   : > { %1422 = vst.msk [vmem:[#allocation2 + $0xd8] sm:$0xff] %vm568_vm4, %v1390_v8  ;;  %1683 = vst.msk [vmem:[#allocation2 + $0xb0] sm:$0xff] %vm568_vm4, %v1651_v47  ;;  %v1652_v48 = vadd.f32 %v4258_v2, %v1620_v55  ;;  %v1618_v41 = vld [vmem:[#allocation2 + $0xa8] sm:$0xff]  ;;  %v1885_v47 = vld [vmem:[#allocation2 + $0x20] sm:$0xff] }
 0x165   : > { %1420 = vst.msk [vmem:[#allocation2 + $0xc8] sm:$0xff] %vm568_vm4, %v1388_v23  ;;  %1681 = vst.msk [vmem:[#allocation2 + $0xa0] sm:$0xff] %vm568_vm4, %v1649_v17  ;;  %v1650_v22 = vadd.f32 %v1618_v41, %v1553_v44  ;;  %v1888_v23 = vld [vmem:[#allocation2 + $0x38] sm:$0xff] }
 0x166   : > { %1684 = vst.msk [vmem:[#allocation2 + $0xb8] sm:$0xff] %vm568_vm4, %v1652_v48  ;;  %v4261_v21 = vpop.f32.mrb[56].mxu1 }
 0x167   : > { %1682 = vst.msk [vmem:[#allocation2 + $0xa8] sm:$0xff] %vm568_vm4, %v1650_v22  ;;  %v4231_v61 = vpop.f32.mrb[60].mxu0  ;;  %v1566_v1 = vpop.f32.mrb[57].mxu1 }
 0x168   : > { %v1393_v10 = vadd.f32 %v4231_v61, %v1361_v7  ;;  %v1316_v34 = vpop.f32.mrb[61].mxu0  ;;  %v4262_v33 = vpop.f32.mrb[58].mxu1 }
 0x169   : > { %v1391_v42 = vadd.f32 %v1359_v5, %v1316_v34  ;;  %v4232_v6 = vpop.f32.mrb[62].mxu0  ;;  %v1623_v19 = vld [vmem:[#allocation2 + $0xd0] sm:$0xff]  ;;  %v1569_v51 = vpop.f32.mrb[59].mxu1 }
 0x16a   : > { %1425 = vst.msk [vmem:[#allocation2 + $0xf0] sm:$0xff] %vm568_vm4, %v1393_v10  ;;  %v1394_v30 = vadd.f32 %v4232_v6, %v1362_v27  ;;  %v1655_v43 = vadd.f32 %v4261_v21, %v1623_v19  ;;  %v1319_v37 = vpop.f32.mrb[63].mxu0  ;;  %v1621_v45 = vld [vmem:[#allocation2 + $0xc0] sm:$0xff]  ;;  %v1886_v21 = vld [vmem:[#allocation2 + $0x28] sm:$0xff]  ;;  %v1891_v27 = vld [vmem:[#allocation2 + $0x50] sm:$0xff] }
 0x16b   : > { %1423 = vst.msk [vmem:[#allocation2 + $0xe0] sm:$0xff] %vm568_vm4, %v1391_v42  ;;  %v1392_v18 = vadd.f32 %v1360_v25, %v1319_v37  ;;  %v1653_v29 = vadd.f32 %v1621_v45, %v1566_v1  ;;  %v1624_v40 = vld [vmem:[#allocation2 + $0xd8] sm:$0xff] }
 0x16c   : > { %1426 = vst.msk [vmem:[#allocation2 + $0xf8] sm:$0xff] %vm568_vm4, %v1394_v30  ;;  %1687 = vst.msk [vmem:[#allocation2 + $0xd0] sm:$0xff] %vm568_vm4, %v1655_v43  ;;  %v1656_v49 = vadd.f32 %v4262_v33, %v1624_v40  ;;  %v1622_v53 = vld [vmem:[#allocation2 + $0xc8] sm:$0xff]  ;;  %v1889_v43 = vld [vmem:[#allocation2 + $0x40] sm:$0xff] }
 0x16d   : > { %1424 = vst.msk [vmem:[#allocation2 + $0xe8] sm:$0xff] %vm568_vm4, %v1392_v18  ;;  %1685 = vst.msk [vmem:[#allocation2 + $0xc0] sm:$0xff] %vm568_vm4, %v1653_v29  ;;  %v1654_v32 = vadd.f32 %v1622_v53, %v1569_v51  ;;  %v1892_v18 = vld [vmem:[#allocation2 + $0x58] sm:$0xff] }
 0x16e   : > { %1688 = vst.msk [vmem:[#allocation2 + $0xd8] sm:$0xff] %vm568_vm4, %v1656_v49  ;;  %v4265_v12 = vpop.f32.mrb[60].mxu1 }
 0x16f   : > { %1686 = vst.msk [vmem:[#allocation2 + $0xc8] sm:$0xff] %vm568_vm4, %v1654_v32  ;;  %v4271_v20 = vpop.f32.mrb[64].mxu0  ;;  %v1582_v31 = vpop.f32.mrb[61].mxu1 }
 0x170   : > { %v1915_v24 = vadd.f32 %v4271_v20, %v1883_v13  ;;  %v1754_v57 = vpop.f32.mrb[65].mxu0  ;;  %v4266_v35 = vpop.f32.mrb[62].mxu1 }
 0x171   : > { %v1913_v38 = vadd.f32 %v1881_v50, %v1754_v57  ;;  %v1627_v14 = vld [vmem:[#allocation2 + $0xf0] sm:$0xff]  ;;  %v4272_v15 = vpop.f32.mrb[66].mxu0  ;;  %v1585_v58 = vpop.f32.mrb[63].mxu1 }
 0x172   : > { %1947 = vst.msk [vmem:[#allocation2 + $0x10] sm:$0xff] %vm568_vm4, %v1915_v24  ;;  %v1659_v0 = vadd.f32 %v4265_v12, %v1627_v14  ;;  %v1916_v26 = vadd.f32 %v4272_v15, %v1884_v39  ;;  %v1625_v28 = vld [vmem:[#allocation2 + $0xe0] sm:$0xff]  ;;  %v1757_v4 = vpop.f32.mrb[67].mxu0  ;;  %v1890_v12 = vld [vmem:[#allocation2 + $0x48] sm:$0xff]  ;;  %v1895_v15 = vld [vmem:[#allocation2 + $0x70] sm:$0xff] }
 0x173   : > { %1945 = vst.msk [vmem:[#allocation2] sm:$0xff] %vm568_vm4, %v1913_v38  ;;  %v1657_v46 = vadd.f32 %v1625_v28, %v1582_v31  ;;  %v1914_v52 = vadd.f32 %v1882_v54, %v1757_v4  ;;  %v1628_v63 = vld [vmem:[#allocation2 + $0xf8] sm:$0xff] }
 0x174   : > { %1691 = vst.msk [vmem:[#allocation2 + $0xf0] sm:$0xff] %vm568_vm4, %v1659_v0  ;;  %1948 = vst.msk [vmem:[#allocation2 + $0x18] sm:$0xff] %vm568_vm4, %v1916_v26  ;;  %v1660_v16 = vadd.f32 %v4266_v35, %v1628_v63  ;;  %v1626_v59 = vld [vmem:[#allocation2 + $0xe8] sm:$0xff]  ;;  %v1893_v26 = vld [vmem:[#allocation2 + $0x60] sm:$0xff] }
 0x175   : > { %1689 = vst.msk [vmem:[#allocation2 + $0xe0] sm:$0xff] %vm568_vm4, %v1657_v46  ;;  %1946 = vst.msk [vmem:[#allocation2 + $0x8] sm:$0xff] %vm568_vm4, %v1914_v52  ;;  %v1658_v2 = vadd.f32 %v1626_v59, %v1585_v58  ;;  %v1896_v46 = vld [vmem:[#allocation2 + $0x78] sm:$0xff] }
 0x176   : > { %1692 = vst.msk [vmem:[#allocation2 + $0xf8] sm:$0xff] %vm568_vm4, %v1660_v16  ;;  %v4305_v62 = vpop.f32.mrb[64].mxu1 }
 0x177   : > { %1690 = vst.msk [vmem:[#allocation2 + $0xe8] sm:$0xff] %vm568_vm4, %v1658_v2  ;;  %v4275_v3 = vpop.f32.mrb[68].mxu0  ;;  %v2028_v36 = vpop.f32.mrb[65].mxu1 }
 0x178   : > { %v1919_v44 = vadd.f32 %v4275_v3, %v1887_v60  ;;  %v1770_v8 = vpop.f32.mrb[69].mxu0  ;;  %v4306_v11 = vpop.f32.mrb[66].mxu1 }
 0x179   : > { %v1917_v9 = vadd.f32 %v1885_v47, %v1770_v8  ;;  %v4276_v56 = vpop.f32.mrb[70].mxu0  ;;  %v2157_v17 = vld [vmem:[#allocation2 + $0x10] sm:$0xff]  ;;  %v2031_v55 = vpop.f32.mrb[67].mxu1 }
 0x17a   : > { %1951 = vst.msk [vmem:[#allocation2 + $0x30] sm:$0xff] %vm568_vm4, %v1919_v44  ;;  %v1920_v48 = vadd.f32 %v4276_v56, %v1888_v23  ;;  %v2189_v41 = vadd.f32 %v4305_v62, %v2157_v17  ;;  %v1773_v22 = vpop.f32.mrb[71].mxu0  ;;  %v2155_v61 = vld [vmem:[#allocation2] sm:$0xff]  ;;  %v1894_v62 = vld [vmem:[#allocation2 + $0x68] sm:$0xff]  ;;  %v1899_v23 = vld [vmem:[#allocation2 + $0x90] sm:$0xff] }
 0x17b   : > { %1949 = vst.msk [vmem:[#allocation2 + $0x20] sm:$0xff] %vm568_vm4, %v1917_v9  ;;  %v1918_v7 = vadd.f32 %v1886_v21, %v1773_v22  ;;  %v2187_v1 = vadd.f32 %v2155_v61, %v2028_v36  ;;  %v2158_v10 = vld [vmem:[#allocation2 + $0x18] sm:$0xff] }
 0x17c   : > { %1952 = vst.msk [vmem:[#allocation2 + $0x38] sm:$0xff] %vm568_vm4, %v1920_v48  ;;  %2221 = vst.msk [vmem:[#allocation2 + $0x10] sm:$0xff] %vm568_vm4, %v2189_v41  ;;  %v2190_v34 = vadd.f32 %v4306_v11, %v2158_v10  ;;  %v2156_v5 = vld [vmem:[#allocation2 + $0x8] sm:$0xff]  ;;  %v1897_v41 = vld [vmem:[#allocation2 + $0x80] sm:$0xff] }
 0x17d   : > { %1950 = vst.msk [vmem:[#allocation2 + $0x28] sm:$0xff] %vm568_vm4, %v1918_v7  ;;  %2219 = vst.msk [vmem:[#allocation2] sm:$0xff] %vm568_vm4, %v2187_v1  ;;  %v2188_v33 = vadd.f32 %v2156_v5, %v2031_v55  ;;  %v1900_v7 = vld [vmem:[#allocation2 + $0x98] sm:$0xff] }
 0x17e   : > { %2222 = vst.msk [vmem:[#allocation2 + $0x18] sm:$0xff] %vm568_vm4, %v2190_v34  ;;  %v4309_v42 = vpop.f32.mrb[68].mxu1 }
 0x17f   : > { %2220 = vst.msk [vmem:[#allocation2 + $0x8] sm:$0xff] %vm568_vm4, %v2188_v33  ;;  %v4279_v6 = vpop.f32.mrb[72].mxu0  ;;  %v2044_v19 = vpop.f32.mrb[69].mxu1 }
 0x180   : > { %v1923_v51 = vadd.f32 %v4279_v6, %v1891_v27  ;;  %v1786_v30 = vpop.f32.mrb[73].mxu0  ;;  %v4310_v37 = vpop.f32.mrb[70].mxu1 }
 0x181   : > { %v1921_v25 = vadd.f32 %v1889_v43, %v1786_v30  ;;  %v4280_v45 = vpop.f32.mrb[74].mxu0  ;;  %v2161_v29 = vld [vmem:[#allocation2 + $0x30] sm:$0xff]  ;;  %v2047_v40 = vpop.f32.mrb[71].mxu1 }
 0x182   : > { %1955 = vst.msk [vmem:[#allocation2 + $0x50] sm:$0xff] %vm568_vm4, %v1923_v51  ;;  %v1924_v49 = vadd.f32 %v4280_v45, %v1892_v18  ;;  %v2193_v53 = vadd.f32 %v4309_v42, %v2161_v29  ;;  %v1789_v32 = vpop.f32.mrb[75].mxu0  ;;  %v2159_v20 = vld [vmem:[#allocation2 + $0x20] sm:$0xff]  ;;  %v1898_v42 = vld [vmem:[#allocation2 + $0x88] sm:$0xff]  ;;  %v1903_v18 = vld [vmem:[#allocation2 + $0xb0] sm:$0xff] }
 0x183   : > { %1953 = vst.msk [vmem:[#allocation2 + $0x40] sm:$0xff] %vm568_vm4, %v1921_v25  ;;  %v1922_v13 = vadd.f32 %v1890_v12, %v1789_v32  ;;  %v2191_v31 = vadd.f32 %v2159_v20, %v2044_v19  ;;  %v2162_v24 = vld [vmem:[#allocation2 + $0x38] sm:$0xff] }
 0x184   : > { %1956 = vst.msk [vmem:[#allocation2 + $0x58] sm:$0xff] %vm568_vm4, %v1924_v49  ;;  %2225 = vst.msk [vmem:[#allocation2 + $0x30] sm:$0xff] %vm568_vm4, %v2193_v53  ;;  %v2194_v57 = vadd.f32 %v4310_v37, %v2162_v24  ;;  %v2160_v50 = vld [vmem:[#allocation2 + $0x28] sm:$0xff]  ;;  %v1901_v53 = vld [vmem:[#allocation2 + $0xa0] sm:$0xff] }
 0x185   : > { %1954 = vst.msk [vmem:[#allocation2 + $0x48] sm:$0xff] %vm568_vm4, %v1922_v13  ;;  %2223 = vst.msk [vmem:[#allocation2 + $0x20] sm:$0xff] %vm568_vm4, %v2191_v31  ;;  %v2192_v35 = vadd.f32 %v2160_v50, %v2047_v40  ;;  %v1904_v13 = vld [vmem:[#allocation2 + $0xb8] sm:$0xff] }
 0x186   : > { %2226 = vst.msk [vmem:[#allocation2 + $0x38] sm:$0xff] %vm568_vm4, %v2194_v57  ;;  %v4313_v38 = vpop.f32.mrb[72].mxu1 }
 0x187   : > { %2224 = vst.msk [vmem:[#allocation2 + $0x28] sm:$0xff] %vm568_vm4, %v2192_v35  ;;  %v4283_v14 = vpop.f32.mrb[76].mxu0  ;;  %v2060_v39 = vpop.f32.mrb[73].mxu1 }
 0x188   : > { %v1927_v58 = vadd.f32 %v4283_v14, %v1895_v15  ;;  %v1802_v0 = vpop.f32.mrb[77].mxu0  ;;  %v4314_v28 = vpop.f32.mrb[74].mxu1 }
 0x189   : > { %v1925_v4 = vadd.f32 %v1893_v26, %v1802_v0  ;;  %v4284_v54 = vpop.f32.mrb[78].mxu0  ;;  %v2165_v52 = vld [vmem:[#allocation2 + $0x50] sm:$0xff]  ;;  %v2063_v63 = vpop.f32.mrb[75].mxu1 }
 0x18a   : > { %1959 = vst.msk [vmem:[#allocation2 + $0x70] sm:$0xff] %vm568_vm4, %v1927_v58  ;;  %v1928_v16 = vadd.f32 %v4284_v54, %v1896_v46  ;;  %v2197_v59 = vadd.f32 %v4313_v38, %v2165_v52  ;;  %v1805_v2 = vpop.f32.mrb[79].mxu0  ;;  %v2163_v3 = vld [vmem:[#allocation2 + $0x40] sm:$0xff]  ;;  %v1902_v38 = vld [vmem:[#allocation2 + $0xa8] sm:$0xff]  ;;  %v1907_v46 = vld [vmem:[#allocation2 + $0xd0] sm:$0xff] }
 0x18b   : > { %1957 = vst.msk [vmem:[#allocation2 + $0x60] sm:$0xff] %vm568_vm4, %v1925_v4  ;;  %v1926_v60 = vadd.f32 %v1894_v62, %v1805_v2  ;;  %v2195_v36 = vadd.f32 %v2163_v3, %v2060_v39  ;;  %v2166_v44 = vld [vmem:[#allocation2 + $0x58] sm:$0xff] }
 0x18c   : > { %1960 = vst.msk [vmem:[#allocation2 + $0x78] sm:$0xff] %vm568_vm4, %v1928_v16  ;;  %2229 = vst.msk [vmem:[#allocation2 + $0x50] sm:$0xff] %vm568_vm4, %v2197_v59  ;;  %v2198_v8 = vadd.f32 %v4314_v28, %v2166_v44  ;;  %v2164_v47 = vld [vmem:[#allocation2 + $0x48] sm:$0xff]  ;;  %v1905_v59 = vld [vmem:[#allocation2 + $0xc0] sm:$0xff] }
 0x18d   : > { %1958 = vst.msk [vmem:[#allocation2 + $0x68] sm:$0xff] %vm568_vm4, %v1926_v60  ;;  %2227 = vst.msk [vmem:[#allocation2 + $0x40] sm:$0xff] %vm568_vm4, %v2195_v36  ;;  %v2196_v11 = vadd.f32 %v2164_v47, %v2063_v63  ;;  %v1908_v60 = vld [vmem:[#allocation2 + $0xd8] sm:$0xff] }
 0x18e   : > { %2230 = vst.msk [vmem:[#allocation2 + $0x58] sm:$0xff] %vm568_vm4, %v2198_v8  ;;  %v4317_v9 = vpop.f32.mrb[76].mxu1 }
 0x18f   : > { %2228 = vst.msk [vmem:[#allocation2 + $0x48] sm:$0xff] %vm568_vm4, %v2196_v11  ;;  %v4287_v56 = vpop.f32.mrb[80].mxu0  ;;  %v2076_v17 = vpop.f32.mrb[77].mxu1 }
 0x190   : > { %v1931_v55 = vadd.f32 %v4287_v56, %v1899_v23  ;;  %v1818_v48 = vpop.f32.mrb[81].mxu0  ;;  %v4318_v22 = vpop.f32.mrb[78].mxu1 }
 0x191   : > { %v1929_v21 = vadd.f32 %v1897_v41, %v1818_v48  ;;  %v4288_v61 = vpop.f32.mrb[82].mxu0  ;;  %v2169_v1 = vld [vmem:[#allocation2 + $0x70] sm:$0xff]  ;;  %v2079_v10 = vpop.f32.mrb[79].mxu1 }
 0x192   : > { %1963 = vst.msk [vmem:[#allocation2 + $0x90] sm:$0xff] %vm568_vm4, %v1931_v55  ;;  %v1932_v34 = vadd.f32 %v4288_v61, %v1900_v7  ;;  %v2201_v5 = vadd.f32 %v4317_v9, %v2169_v1  ;;  %v1821_v33 = vpop.f32.mrb[83].mxu0  ;;  %v2167_v6 = vld [vmem:[#allocation2 + $0x60] sm:$0xff]  ;;  %v1906_v9 = vld [vmem:[#allocation2 + $0xc8] sm:$0xff]  ;;  %v1911_v7 = vld [vmem:[#allocation2 + $0xf0] sm:$0xff] }
 0x193   : > { %1961 = vst.msk [vmem:[#allocation2 + $0x80] sm:$0xff] %vm568_vm4, %v1929_v21  ;;  %v1930_v27 = vadd.f32 %v1898_v42, %v1821_v33  ;;  %v2199_v19 = vadd.f32 %v2167_v6, %v2076_v17  ;;  %v2170_v51 = vld [vmem:[#allocation2 + $0x78] sm:$0xff] }
 0x194   : > { %1964 = vst.msk [vmem:[#allocation2 + $0x98] sm:$0xff] %vm568_vm4, %v1932_v34  ;;  %2233 = vst.msk [vmem:[#allocation2 + $0x70] sm:$0xff] %vm568_vm4, %v2201_v5  ;;  %v2202_v30 = vadd.f32 %v4318_v22, %v2170_v51  ;;  %v2168_v43 = vld [vmem:[#allocation2 + $0x68] sm:$0xff]  ;;  %v1909_v5 = vld [vmem:[#allocation2 + $0xe0] sm:$0xff] }
 0x195   : > { %1962 = vst.msk [vmem:[#allocation2 + $0x88] sm:$0xff] %vm568_vm4, %v1930_v27  ;;  %2231 = vst.msk [vmem:[#allocation2 + $0x60] sm:$0xff] %vm568_vm4, %v2199_v19  ;;  %v2200_v37 = vadd.f32 %v2168_v43, %v2079_v10  ;;  %v1912_v27 = vld [vmem:[#allocation2 + $0xf8] sm:$0xff] }
 0x196   : > { %2234 = vst.msk [vmem:[#allocation2 + $0x78] sm:$0xff] %vm568_vm4, %v2202_v30  ;;  %v4321_v25 = vpop.f32.mrb[80].mxu1 }
 0x197   : > { %2232 = vst.msk [vmem:[#allocation2 + $0x68] sm:$0xff] %vm568_vm4, %v2200_v37  ;;  %v4291_v45 = vpop.f32.mrb[84].mxu0  ;;  %v2092_v29 = vpop.f32.mrb[81].mxu1 }
 0x198   : > { %v1935_v40 = vadd.f32 %v4291_v45, %v1903_v18  ;;  %v1834_v49 = vpop.f32.mrb[85].mxu0  ;;  %v4322_v32 = vpop.f32.mrb[82].mxu1 }
 0x199   : > { %v1933_v12 = vadd.f32 %v1901_v53, %v1834_v49  ;;  %v4292_v20 = vpop.f32.mrb[86].mxu0  ;;  %v2173_v31 = vld [vmem:[#allocation2 + $0x90] sm:$0xff]  ;;  %v2095_v24 = vpop.f32.mrb[83].mxu1 }
 0x19a   : > { %1967 = vst.msk [vmem:[#allocation2 + $0xb0] sm:$0xff] %vm568_vm4, %v1935_v40  ;;  %v1936_v57 = vadd.f32 %v4292_v20, %v1904_v13  ;;  %v2205_v50 = vadd.f32 %v4321_v25, %v2173_v31  ;;  %v1837_v35 = vpop.f32.mrb[87].mxu0  ;;  %v2171_v14 = vld [vmem:[#allocation2 + $0x80] sm:$0xff]  ;;  %v1910_v25 = vld [vmem:[#allocation2 + $0xe8] sm:$0xff]  ;;  %v2423_v13 = vld [vmem:[#allocation2 + $0x10] sm:$0xff] }
 0x19b   : > { %1965 = vst.msk [vmem:[#allocation2 + $0xa0] sm:$0xff] %vm568_vm4, %v1933_v12  ;;  %v1934_v15 = vadd.f32 %v1902_v38, %v1837_v35  ;;  %v2203_v39 = vadd.f32 %v2171_v14, %v2092_v29  ;;  %v2174_v58 = vld [vmem:[#allocation2 + $0x98] sm:$0xff] }
 0x19c   : > { %1968 = vst.msk [vmem:[#allocation2 + $0xb8] sm:$0xff] %vm568_vm4, %v1936_v57  ;;  %2237 = vst.msk [vmem:[#allocation2 + $0x90] sm:$0xff] %vm568_vm4, %v2205_v50  ;;  %v2206_v0 = vadd.f32 %v4322_v32, %v2174_v58  ;;  %v2172_v26 = vld [vmem:[#allocation2 + $0x88] sm:$0xff]  ;;  %v2421_v50 = vld [vmem:[#allocation2] sm:$0xff] }
 0x19d   : > { %1966 = vst.msk [vmem:[#allocation2 + $0xa8] sm:$0xff] %vm568_vm4, %v1934_v15  ;;  %2235 = vst.msk [vmem:[#allocation2 + $0x80] sm:$0xff] %vm568_vm4, %v2203_v39  ;;  %v2204_v28 = vadd.f32 %v2172_v26, %v2095_v24  ;;  %v2424_v39 = vld [vmem:[#allocation2 + $0x18] sm:$0xff] }
 0x19e   : > { %2238 = vst.msk [vmem:[#allocation2 + $0x98] sm:$0xff] %vm568_vm4, %v2206_v0  ;;  %v4325_v4 = vpop.f32.mrb[84].mxu1 }
 0x19f   : > { %2236 = vst.msk [vmem:[#allocation2 + $0x88] sm:$0xff] %vm568_vm4, %v2204_v28  ;;  %v4295_v54 = vpop.f32.mrb[88].mxu0  ;;  %v2108_v52 = vpop.f32.mrb[85].mxu1 }
 0x1a0   : > { %v1939_v63 = vadd.f32 %v4295_v54, %v1907_v46  ;;  %v1850_v16 = vpop.f32.mrb[89].mxu0  ;;  %v4326_v2 = vpop.f32.mrb[86].mxu1  ;;  %v2422_v54 = vld [vmem:[#allocation2 + $0x8] sm:$0xff] }
 0x1a1   : > { %v1937_v62 = vadd.f32 %v1905_v59, %v1850_v16  ;;  %v4296_v3 = vpop.f32.mrb[90].mxu0  ;;  %v2177_v36 = vld [vmem:[#allocation2 + $0xb0] sm:$0xff]  ;;  %v2111_v44 = vpop.f32.mrb[87].mxu1 }
 0x1a2   : > { %1971 = vst.msk [vmem:[#allocation2 + $0xd0] sm:$0xff] %vm568_vm4, %v1939_v63  ;;  %v1940_v8 = vadd.f32 %v4296_v3, %v1908_v60  ;;  %v2209_v47 = vadd.f32 %v4325_v4, %v2177_v36  ;;  %v1853_v11 = vpop.f32.mrb[91].mxu0  ;;  %v2175_v56 = vld [vmem:[#allocation2 + $0xa0] sm:$0xff]  ;;  %v2427_v60 = vld [vmem:[#allocation2 + $0x30] sm:$0xff] }
 0x1a3   : > { %1969 = vst.msk [vmem:[#allocation2 + $0xc0] sm:$0xff] %vm568_vm4, %v1937_v62  ;;  %v1938_v23 = vadd.f32 %v1906_v9, %v1853_v11  ;;  %v2207_v17 = vadd.f32 %v2175_v56, %v2108_v52  ;;  %v2178_v55 = vld [vmem:[#allocation2 + $0xb8] sm:$0xff] }
 0x1a4   : > { %1972 = vst.msk [vmem:[#allocation2 + $0xd8] sm:$0xff] %vm568_vm4, %v1940_v8  ;;  %2241 = vst.msk [vmem:[#allocation2 + $0xb0] sm:$0xff] %vm568_vm4, %v2209_v47  ;;  %v2210_v48 = vadd.f32 %v4326_v2, %v2178_v55  ;;  %v2176_v41 = vld [vmem:[#allocation2 + $0xa8] sm:$0xff]  ;;  %v2425_v47 = vld [vmem:[#allocation2 + $0x20] sm:$0xff] }
 0x1a5   : > { %1970 = vst.msk [vmem:[#allocation2 + $0xc8] sm:$0xff] %vm568_vm4, %v1938_v23  ;;  %2239 = vst.msk [vmem:[#allocation2 + $0xa0] sm:$0xff] %vm568_vm4, %v2207_v17  ;;  %v2208_v22 = vadd.f32 %v2176_v41, %v2111_v44  ;;  %v2428_v23 = vld [vmem:[#allocation2 + $0x38] sm:$0xff] }
 0x1a6   : > { %2242 = vst.msk [vmem:[#allocation2 + $0xb8] sm:$0xff] %vm568_vm4, %v2210_v48  ;;  %v4329_v21 = vpop.f32.mrb[88].mxu1 }
 0x1a7   : > { %2240 = vst.msk [vmem:[#allocation2 + $0xa8] sm:$0xff] %vm568_vm4, %v2208_v22  ;;  %v4299_v61 = vpop.f32.mrb[92].mxu0  ;;  %v2124_v1 = vpop.f32.mrb[89].mxu1 }
 0x1a8   : > { %v1943_v10 = vadd.f32 %v4299_v61, %v1911_v7  ;;  %v1866_v34 = vpop.f32.mrb[93].mxu0  ;;  %v4330_v33 = vpop.f32.mrb[90].mxu1 }
 0x1a9   : > { %v1941_v42 = vadd.f32 %v1909_v5, %v1866_v34  ;;  %v4300_v6 = vpop.f32.mrb[94].mxu0  ;;  %v2181_v19 = vld [vmem:[#allocation2 + $0xd0] sm:$0xff]  ;;  %v2127_v51 = vpop.f32.mrb[91].mxu1 }
 0x1aa   : > { %1975 = vst.msk [vmem:[#allocation2 + $0xf0] sm:$0xff] %vm568_vm4, %v1943_v10  ;;  %v1944_v30 = vadd.f32 %v4300_v6, %v1912_v27  ;;  %v2213_v43 = vadd.f32 %v4329_v21, %v2181_v19  ;;  %v1869_v37 = vpop.f32.mrb[95].mxu0  ;;  %v2179_v45 = vld [vmem:[#allocation2 + $0xc0] sm:$0xff]  ;;  %v2426_v21 = vld [vmem:[#allocation2 + $0x28] sm:$0xff]  ;;  %v2431_v27 = vld [vmem:[#allocation2 + $0x50] sm:$0xff] }
 0x1ab   : > { %1973 = vst.msk [vmem:[#allocation2 + $0xe0] sm:$0xff] %vm568_vm4, %v1941_v42  ;;  %v1942_v18 = vadd.f32 %v1910_v25, %v1869_v37  ;;  %v2211_v29 = vadd.f32 %v2179_v45, %v2124_v1  ;;  %v2182_v40 = vld [vmem:[#allocation2 + $0xd8] sm:$0xff] }
 0x1ac   : > { %1976 = vst.msk [vmem:[#allocation2 + $0xf8] sm:$0xff] %vm568_vm4, %v1944_v30  ;;  %2245 = vst.msk [vmem:[#allocation2 + $0xd0] sm:$0xff] %vm568_vm4, %v2213_v43  ;;  %v2214_v49 = vadd.f32 %v4330_v33, %v2182_v40  ;;  %v2180_v53 = vld [vmem:[#allocation2 + $0xc8] sm:$0xff]  ;;  %v2429_v43 = vld [vmem:[#allocation2 + $0x40] sm:$0xff] }
 0x1ad   : > { %1974 = vst.msk [vmem:[#allocation2 + $0xe8] sm:$0xff] %vm568_vm4, %v1942_v18  ;;  %2243 = vst.msk [vmem:[#allocation2 + $0xc0] sm:$0xff] %vm568_vm4, %v2211_v29  ;;  %v2212_v32 = vadd.f32 %v2180_v53, %v2127_v51  ;;  %v2432_v18 = vld [vmem:[#allocation2 + $0x58] sm:$0xff] }
 0x1ae   : > { %2246 = vst.msk [vmem:[#allocation2 + $0xd8] sm:$0xff] %vm568_vm4, %v2214_v49  ;;  %v4333_v12 = vpop.f32.mrb[92].mxu1 }
 0x1af   : > { %2244 = vst.msk [vmem:[#allocation2 + $0xc8] sm:$0xff] %vm568_vm4, %v2212_v32  ;;  %v4339_v20 = vpop.f32.mrb[96].mxu0  ;;  %v2140_v31 = vpop.f32.mrb[93].mxu1 }
 0x1b0   : > { %v2455_v24 = vadd.f32 %v4339_v20, %v2423_v13  ;;  %v2294_v57 = vpop.f32.mrb[97].mxu0  ;;  %v4334_v35 = vpop.f32.mrb[94].mxu1 }
 0x1b1   : > { %v2453_v38 = vadd.f32 %v2421_v50, %v2294_v57  ;;  %v2185_v14 = vld [vmem:[#allocation2 + $0xf0] sm:$0xff]  ;;  %v4340_v15 = vpop.f32.mrb[98].mxu0  ;;  %v2143_v58 = vpop.f32.mrb[95].mxu1 }
 0x1b2   : > { %2487 = vst.msk [vmem:[#allocation2 + $0x10] sm:$0xff] %vm568_vm4, %v2455_v24  ;;  %v2217_v0 = vadd.f32 %v4333_v12, %v2185_v14  ;;  %v2456_v26 = vadd.f32 %v4340_v15, %v2424_v39  ;;  %v2183_v28 = vld [vmem:[#allocation2 + $0xe0] sm:$0xff]  ;;  %v2297_v4 = vpop.f32.mrb[99].mxu0  ;;  %v2430_v12 = vld [vmem:[#allocation2 + $0x48] sm:$0xff]  ;;  %v2435_v15 = vld [vmem:[#allocation2 + $0x70] sm:$0xff] }
 0x1b3   : > { %2485 = vst.msk [vmem:[#allocation2] sm:$0xff] %vm568_vm4, %v2453_v38  ;;  %v2215_v46 = vadd.f32 %v2183_v28, %v2140_v31  ;;  %v2454_v52 = vadd.f32 %v2422_v54, %v2297_v4  ;;  %v2186_v63 = vld [vmem:[#allocation2 + $0xf8] sm:$0xff] }
 0x1b4   : > { %2249 = vst.msk [vmem:[#allocation2 + $0xf0] sm:$0xff] %vm568_vm4, %v2217_v0  ;;  %2488 = vst.msk [vmem:[#allocation2 + $0x18] sm:$0xff] %vm568_vm4, %v2456_v26  ;;  %v2218_v16 = vadd.f32 %v4334_v35, %v2186_v63  ;;  %v2184_v59 = vld [vmem:[#allocation2 + $0xe8] sm:$0xff]  ;;  %v2433_v26 = vld [vmem:[#allocation2 + $0x60] sm:$0xff] }
 0x1b5   : > { %2247 = vst.msk [vmem:[#allocation2 + $0xe0] sm:$0xff] %vm568_vm4, %v2215_v46  ;;  %2486 = vst.msk [vmem:[#allocation2 + $0x8] sm:$0xff] %vm568_vm4, %v2454_v52  ;;  %v2216_v2 = vadd.f32 %v2184_v59, %v2143_v58  ;;  %v2436_v46 = vld [vmem:[#allocation2 + $0x78] sm:$0xff] }
 0x1b6   : > { %2250 = vst.msk [vmem:[#allocation2 + $0xf8] sm:$0xff] %vm568_vm4, %v2218_v16  ;;  %v4373_v62 = vpop.f32.mrb[96].mxu1 }
 0x1b7   : > { %2248 = vst.msk [vmem:[#allocation2 + $0xe8] sm:$0xff] %vm568_vm4, %v2216_v2  ;;  %v4343_v3 = vpop.f32.mrb[100].mxu0  ;;  %v2578_v36 = vpop.f32.mrb[97].mxu1 }
 0x1b8   : > { %v2459_v44 = vadd.f32 %v4343_v3, %v2427_v60  ;;  %v2310_v8 = vpop.f32.mrb[101].mxu0  ;;  %v4374_v11 = vpop.f32.mrb[98].mxu1 }
 0x1b9   : > { %v2457_v9 = vadd.f32 %v2425_v47, %v2310_v8  ;;  %v4344_v56 = vpop.f32.mrb[102].mxu0  ;;  %v2707_v17 = vld [vmem:[#allocation2 + $0x10] sm:$0xff]  ;;  %v2581_v55 = vpop.f32.mrb[99].mxu1 }
 0x1ba   : > { %2491 = vst.msk [vmem:[#allocation2 + $0x30] sm:$0xff] %vm568_vm4, %v2459_v44  ;;  %v2460_v48 = vadd.f32 %v4344_v56, %v2428_v23  ;;  %v2739_v41 = vadd.f32 %v4373_v62, %v2707_v17  ;;  %v2313_v22 = vpop.f32.mrb[103].mxu0  ;;  %v2705_v61 = vld [vmem:[#allocation2] sm:$0xff]  ;;  %v2434_v62 = vld [vmem:[#allocation2 + $0x68] sm:$0xff]  ;;  %v2439_v23 = vld [vmem:[#allocation2 + $0x90] sm:$0xff] }
 0x1bb   : > { %2489 = vst.msk [vmem:[#allocation2 + $0x20] sm:$0xff] %vm568_vm4, %v2457_v9  ;;  %v2458_v7 = vadd.f32 %v2426_v21, %v2313_v22  ;;  %v2737_v1 = vadd.f32 %v2705_v61, %v2578_v36  ;;  %v2708_v10 = vld [vmem:[#allocation2 + $0x18] sm:$0xff] }
 0x1bc   : > { %2492 = vst.msk [vmem:[#allocation2 + $0x38] sm:$0xff] %vm568_vm4, %v2460_v48  ;;  %2771 = vst.msk [vmem:[#allocation2 + $0x10] sm:$0xff] %vm568_vm4, %v2739_v41  ;;  %v2740_v34 = vadd.f32 %v4374_v11, %v2708_v10  ;;  %v2706_v5 = vld [vmem:[#allocation2 + $0x8] sm:$0xff]  ;;  %v2437_v41 = vld [vmem:[#allocation2 + $0x80] sm:$0xff] }
 0x1bd   : > { %2490 = vst.msk [vmem:[#allocation2 + $0x28] sm:$0xff] %vm568_vm4, %v2458_v7  ;;  %2769 = vst.msk [vmem:[#allocation2] sm:$0xff] %vm568_vm4, %v2737_v1  ;;  %v2738_v33 = vadd.f32 %v2706_v5, %v2581_v55  ;;  %v2440_v7 = vld [vmem:[#allocation2 + $0x98] sm:$0xff] }
 0x1be   : > { %2772 = vst.msk [vmem:[#allocation2 + $0x18] sm:$0xff] %vm568_vm4, %v2740_v34  ;;  %v4377_v42 = vpop.f32.mrb[100].mxu1 }
 0x1bf   : > { %2770 = vst.msk [vmem:[#allocation2 + $0x8] sm:$0xff] %vm568_vm4, %v2738_v33  ;;  %v4347_v6 = vpop.f32.mrb[104].mxu0  ;;  %v2594_v19 = vpop.f32.mrb[101].mxu1 }
 0x1c0   : > { %v2463_v51 = vadd.f32 %v4347_v6, %v2431_v27  ;;  %v2326_v30 = vpop.f32.mrb[105].mxu0  ;;  %v4378_v37 = vpop.f32.mrb[102].mxu1 }
 0x1c1   : > { %v2461_v25 = vadd.f32 %v2429_v43, %v2326_v30  ;;  %v4348_v45 = vpop.f32.mrb[106].mxu0  ;;  %v2711_v29 = vld [vmem:[#allocation2 + $0x30] sm:$0xff]  ;;  %v2597_v40 = vpop.f32.mrb[103].mxu1 }
 0x1c2   : > { %2495 = vst.msk [vmem:[#allocation2 + $0x50] sm:$0xff] %vm568_vm4, %v2463_v51  ;;  %v2464_v49 = vadd.f32 %v4348_v45, %v2432_v18  ;;  %v2743_v53 = vadd.f32 %v4377_v42, %v2711_v29  ;;  %v2329_v32 = vpop.f32.mrb[107].mxu0  ;;  %v2709_v20 = vld [vmem:[#allocation2 + $0x20] sm:$0xff]  ;;  %v2438_v42 = vld [vmem:[#allocation2 + $0x88] sm:$0xff]  ;;  %v2443_v18 = vld [vmem:[#allocation2 + $0xb0] sm:$0xff] }
 0x1c3   : > { %2493 = vst.msk [vmem:[#allocation2 + $0x40] sm:$0xff] %vm568_vm4, %v2461_v25  ;;  %v2462_v13 = vadd.f32 %v2430_v12, %v2329_v32  ;;  %v2741_v31 = vadd.f32 %v2709_v20, %v2594_v19  ;;  %v2712_v24 = vld [vmem:[#allocation2 + $0x38] sm:$0xff] }
 0x1c4   : > { %2496 = vst.msk [vmem:[#allocation2 + $0x58] sm:$0xff] %vm568_vm4, %v2464_v49  ;;  %2775 = vst.msk [vmem:[#allocation2 + $0x30] sm:$0xff] %vm568_vm4, %v2743_v53  ;;  %v2744_v57 = vadd.f32 %v4378_v37, %v2712_v24  ;;  %v2710_v50 = vld [vmem:[#allocation2 + $0x28] sm:$0xff]  ;;  %v2441_v53 = vld [vmem:[#allocation2 + $0xa0] sm:$0xff] }
 0x1c5   : > { %2494 = vst.msk [vmem:[#allocation2 + $0x48] sm:$0xff] %vm568_vm4, %v2462_v13  ;;  %2773 = vst.msk [vmem:[#allocation2 + $0x20] sm:$0xff] %vm568_vm4, %v2741_v31  ;;  %v2742_v35 = vadd.f32 %v2710_v50, %v2597_v40  ;;  %v2444_v13 = vld [vmem:[#allocation2 + $0xb8] sm:$0xff] }
 0x1c6   : > { %2776 = vst.msk [vmem:[#allocation2 + $0x38] sm:$0xff] %vm568_vm4, %v2744_v57  ;;  %v4381_v38 = vpop.f32.mrb[104].mxu1 }
 0x1c7   : > { %2774 = vst.msk [vmem:[#allocation2 + $0x28] sm:$0xff] %vm568_vm4, %v2742_v35  ;;  %v4351_v14 = vpop.f32.mrb[108].mxu0  ;;  %v2610_v39 = vpop.f32.mrb[105].mxu1 }
 0x1c8   : > { %v2467_v58 = vadd.f32 %v4351_v14, %v2435_v15  ;;  %v2342_v0 = vpop.f32.mrb[109].mxu0  ;;  %v4382_v28 = vpop.f32.mrb[106].mxu1 }
 0x1c9   : > { %v2465_v4 = vadd.f32 %v2433_v26, %v2342_v0  ;;  %v4352_v54 = vpop.f32.mrb[110].mxu0  ;;  %v2715_v52 = vld [vmem:[#allocation2 + $0x50] sm:$0xff]  ;;  %v2613_v63 = vpop.f32.mrb[107].mxu1 }
 0x1ca   : > { %2499 = vst.msk [vmem:[#allocation2 + $0x70] sm:$0xff] %vm568_vm4, %v2467_v58  ;;  %v2468_v16 = vadd.f32 %v4352_v54, %v2436_v46  ;;  %v2747_v59 = vadd.f32 %v4381_v38, %v2715_v52  ;;  %v2345_v2 = vpop.f32.mrb[111].mxu0  ;;  %v2713_v3 = vld [vmem:[#allocation2 + $0x40] sm:$0xff]  ;;  %v2442_v38 = vld [vmem:[#allocation2 + $0xa8] sm:$0xff]  ;;  %v2447_v46 = vld [vmem:[#allocation2 + $0xd0] sm:$0xff] }
 0x1cb   : > { %2497 = vst.msk [vmem:[#allocation2 + $0x60] sm:$0xff] %vm568_vm4, %v2465_v4  ;;  %v2466_v60 = vadd.f32 %v2434_v62, %v2345_v2  ;;  %v2745_v36 = vadd.f32 %v2713_v3, %v2610_v39  ;;  %v2716_v44 = vld [vmem:[#allocation2 + $0x58] sm:$0xff] }
 0x1cc   : > { %2500 = vst.msk [vmem:[#allocation2 + $0x78] sm:$0xff] %vm568_vm4, %v2468_v16  ;;  %2779 = vst.msk [vmem:[#allocation2 + $0x50] sm:$0xff] %vm568_vm4, %v2747_v59  ;;  %v2748_v8 = vadd.f32 %v4382_v28, %v2716_v44  ;;  %v2714_v47 = vld [vmem:[#allocation2 + $0x48] sm:$0xff]  ;;  %v2445_v59 = vld [vmem:[#allocation2 + $0xc0] sm:$0xff] }
 0x1cd   : > { %2498 = vst.msk [vmem:[#allocation2 + $0x68] sm:$0xff] %vm568_vm4, %v2466_v60  ;;  %2777 = vst.msk [vmem:[#allocation2 + $0x40] sm:$0xff] %vm568_vm4, %v2745_v36  ;;  %v2746_v11 = vadd.f32 %v2714_v47, %v2613_v63  ;;  %v2448_v60 = vld [vmem:[#allocation2 + $0xd8] sm:$0xff] }
 0x1ce   : > { %2780 = vst.msk [vmem:[#allocation2 + $0x58] sm:$0xff] %vm568_vm4, %v2748_v8  ;;  %v4385_v9 = vpop.f32.mrb[108].mxu1 }
 0x1cf   : > { %2778 = vst.msk [vmem:[#allocation2 + $0x48] sm:$0xff] %vm568_vm4, %v2746_v11  ;;  %v4355_v56 = vpop.f32.mrb[112].mxu0  ;;  %v2626_v17 = vpop.f32.mrb[109].mxu1 }
 0x1d0   : > { %v2471_v55 = vadd.f32 %v4355_v56, %v2439_v23  ;;  %v2358_v48 = vpop.f32.mrb[113].mxu0  ;;  %v4386_v22 = vpop.f32.mrb[110].mxu1 }
 0x1d1   : > { %v2469_v21 = vadd.f32 %v2437_v41, %v2358_v48  ;;  %v4356_v61 = vpop.f32.mrb[114].mxu0  ;;  %v2719_v1 = vld [vmem:[#allocation2 + $0x70] sm:$0xff]  ;;  %v2629_v10 = vpop.f32.mrb[111].mxu1 }
 0x1d2   : > { %2503 = vst.msk [vmem:[#allocation2 + $0x90] sm:$0xff] %vm568_vm4, %v2471_v55  ;;  %v2472_v34 = vadd.f32 %v4356_v61, %v2440_v7  ;;  %v2751_v5 = vadd.f32 %v4385_v9, %v2719_v1  ;;  %v2361_v33 = vpop.f32.mrb[115].mxu0  ;;  %v2717_v6 = vld [vmem:[#allocation2 + $0x60] sm:$0xff]  ;;  %v2446_v9 = vld [vmem:[#allocation2 + $0xc8] sm:$0xff]  ;;  %v2451_v7 = vld [vmem:[#allocation2 + $0xf0] sm:$0xff] }
 0x1d3   : > { %2501 = vst.msk [vmem:[#allocation2 + $0x80] sm:$0xff] %vm568_vm4, %v2469_v21  ;;  %v2470_v27 = vadd.f32 %v2438_v42, %v2361_v33  ;;  %v2749_v19 = vadd.f32 %v2717_v6, %v2626_v17  ;;  %v2720_v51 = vld [vmem:[#allocation2 + $0x78] sm:$0xff] }
 0x1d4   : > { %2504 = vst.msk [vmem:[#allocation2 + $0x98] sm:$0xff] %vm568_vm4, %v2472_v34  ;;  %2783 = vst.msk [vmem:[#allocation2 + $0x70] sm:$0xff] %vm568_vm4, %v2751_v5  ;;  %v2752_v30 = vadd.f32 %v4386_v22, %v2720_v51  ;;  %v2718_v43 = vld [vmem:[#allocation2 + $0x68] sm:$0xff]  ;;  %v2449_v5 = vld [vmem:[#allocation2 + $0xe0] sm:$0xff] }
 0x1d5   : > { %2502 = vst.msk [vmem:[#allocation2 + $0x88] sm:$0xff] %vm568_vm4, %v2470_v27  ;;  %2781 = vst.msk [vmem:[#allocation2 + $0x60] sm:$0xff] %vm568_vm4, %v2749_v19  ;;  %v2750_v37 = vadd.f32 %v2718_v43, %v2629_v10  ;;  %v2452_v27 = vld [vmem:[#allocation2 + $0xf8] sm:$0xff] }
 0x1d6   : > { %2784 = vst.msk [vmem:[#allocation2 + $0x78] sm:$0xff] %vm568_vm4, %v2752_v30  ;;  %v4389_v25 = vpop.f32.mrb[112].mxu1 }
 0x1d7   : > { %2782 = vst.msk [vmem:[#allocation2 + $0x68] sm:$0xff] %vm568_vm4, %v2750_v37  ;;  %v4359_v45 = vpop.f32.mrb[116].mxu0  ;;  %v2642_v29 = vpop.f32.mrb[113].mxu1 }
 0x1d8   : > { %v2475_v40 = vadd.f32 %v4359_v45, %v2443_v18  ;;  %v2374_v49 = vpop.f32.mrb[117].mxu0  ;;  %v4390_v32 = vpop.f32.mrb[114].mxu1 }
 0x1d9   : > { %v2473_v12 = vadd.f32 %v2441_v53, %v2374_v49  ;;  %v4360_v20 = vpop.f32.mrb[118].mxu0  ;;  %v2723_v31 = vld [vmem:[#allocation2 + $0x90] sm:$0xff]  ;;  %v2645_v24 = vpop.f32.mrb[115].mxu1 }
 0x1da   : > { %2507 = vst.msk [vmem:[#allocation2 + $0xb0] sm:$0xff] %vm568_vm4, %v2475_v40  ;;  %v2476_v57 = vadd.f32 %v4360_v20, %v2444_v13  ;;  %v2755_v50 = vadd.f32 %v4389_v25, %v2723_v31  ;;  %v2377_v35 = vpop.f32.mrb[119].mxu0  ;;  %v2721_v14 = vld [vmem:[#allocation2 + $0x80] sm:$0xff]  ;;  %v2450_v25 = vld [vmem:[#allocation2 + $0xe8] sm:$0xff]  ;;  %v2981_v13 = vld [vmem:[#allocation2 + $0x10] sm:$0xff] }
 0x1db   : > { %2505 = vst.msk [vmem:[#allocation2 + $0xa0] sm:$0xff] %vm568_vm4, %v2473_v12  ;;  %v2474_v15 = vadd.f32 %v2442_v38, %v2377_v35  ;;  %v2753_v39 = vadd.f32 %v2721_v14, %v2642_v29  ;;  %v2724_v58 = vld [vmem:[#allocation2 + $0x98] sm:$0xff] }
 0x1dc   : > { %2508 = vst.msk [vmem:[#allocation2 + $0xb8] sm:$0xff] %vm568_vm4, %v2476_v57  ;;  %2787 = vst.msk [vmem:[#allocation2 + $0x90] sm:$0xff] %vm568_vm4, %v2755_v50  ;;  %v2756_v0 = vadd.f32 %v4390_v32, %v2724_v58  ;;  %v2722_v26 = vld [vmem:[#allocation2 + $0x88] sm:$0xff]  ;;  %v2979_v50 = vld [vmem:[#allocation2] sm:$0xff] }
 0x1dd   : > { %2506 = vst.msk [vmem:[#allocation2 + $0xa8] sm:$0xff] %vm568_vm4, %v2474_v15  ;;  %2785 = vst.msk [vmem:[#allocation2 + $0x80] sm:$0xff] %vm568_vm4, %v2753_v39  ;;  %v2754_v28 = vadd.f32 %v2722_v26, %v2645_v24  ;;  %v2982_v39 = vld [vmem:[#allocation2 + $0x18] sm:$0xff] }
 0x1de   : > { %2788 = vst.msk [vmem:[#allocation2 + $0x98] sm:$0xff] %vm568_vm4, %v2756_v0  ;;  %v4393_v4 = vpop.f32.mrb[116].mxu1 }
 0x1df   : > { %2786 = vst.msk [vmem:[#allocation2 + $0x88] sm:$0xff] %vm568_vm4, %v2754_v28  ;;  %v4363_v54 = vpop.f32.mrb[120].mxu0  ;;  %v2658_v52 = vpop.f32.mrb[117].mxu1 }
 0x1e0   : > { %v2479_v63 = vadd.f32 %v4363_v54, %v2447_v46  ;;  %v2390_v16 = vpop.f32.mrb[121].mxu0  ;;  %v4394_v2 = vpop.f32.mrb[118].mxu1  ;;  %v2980_v54 = vld [vmem:[#allocation2 + $0x8] sm:$0xff] }
 0x1e1   : > { %v2477_v62 = vadd.f32 %v2445_v59, %v2390_v16  ;;  %v4364_v3 = vpop.f32.mrb[122].mxu0  ;;  %v2727_v36 = vld [vmem:[#allocation2 + $0xb0] sm:$0xff]  ;;  %v2661_v44 = vpop.f32.mrb[119].mxu1 }
 0x1e2   : > { %2511 = vst.msk [vmem:[#allocation2 + $0xd0] sm:$0xff] %vm568_vm4, %v2479_v63  ;;  %v2480_v8 = vadd.f32 %v4364_v3, %v2448_v60  ;;  %v2759_v47 = vadd.f32 %v4393_v4, %v2727_v36  ;;  %v2393_v11 = vpop.f32.mrb[123].mxu0  ;;  %v2725_v56 = vld [vmem:[#allocation2 + $0xa0] sm:$0xff]  ;;  %v2985_v3 = vld [vmem:[#allocation2 + $0x30] sm:$0xff] }
 0x1e3   : > { %2509 = vst.msk [vmem:[#allocation2 + $0xc0] sm:$0xff] %vm568_vm4, %v2477_v62  ;;  %v2478_v23 = vadd.f32 %v2446_v9, %v2393_v11  ;;  %v2757_v17 = vadd.f32 %v2725_v56, %v2658_v52  ;;  %v2728_v55 = vld [vmem:[#allocation2 + $0xb8] sm:$0xff]  ;;  %v5576_v60 = vld [vmem:[%s5863_s2] ss:$0 sm:$0xff] }
 0x1e4   : > { %2512 = vst.msk [vmem:[#allocation2 + $0xd8] sm:$0xff] %vm568_vm4, %v2480_v8  ;;  %2791 = vst.msk [vmem:[#allocation2 + $0xb0] sm:$0xff] %vm568_vm4, %v2759_v47  ;;  %v2760_v48 = vadd.f32 %v4394_v2, %v2728_v55  ;;  %v2726_v41 = vld [vmem:[#allocation2 + $0xa8] sm:$0xff]  ;;  %v2983_v8 = vld [vmem:[#allocation2 + $0x20] sm:$0xff] }
 0x1e5   : > { %2510 = vst.msk [vmem:[#allocation2 + $0xc8] sm:$0xff] %vm568_vm4, %v2478_v23  ;;  %2789 = vst.msk [vmem:[#allocation2 + $0xa0] sm:$0xff] %vm568_vm4, %v2757_v17  ;;  %v2758_v22 = vadd.f32 %v2726_v41, %v2661_v44  ;;  %v2986_v9 = vld [vmem:[#allocation2 + $0x38] sm:$0xff]  ;;  %v2984_v55 = vld [vmem:[#allocation2 + $0x28] sm:$0xff] }
 0x1e6   : > { %2792 = vst.msk [vmem:[#allocation2 + $0xb8] sm:$0xff] %vm568_vm4, %v2760_v48  ;;  %v4397_v21 = vpop.f32.mrb[120].mxu1 }
 0x1e7   : > { %2790 = vst.msk [vmem:[#allocation2 + $0xa8] sm:$0xff] %vm568_vm4, %v2758_v22  ;;  %v4367_v61 = vpop.f32.mrb[124].mxu0  ;;  %v2674_v1 = vpop.f32.mrb[121].mxu1 }
 0x1e8   : > { %v2483_v10 = vadd.f32 %v4367_v61, %v2451_v7  ;;  %v2406_v34 = vpop.f32.mrb[125].mxu0  ;;  %v4398_v33 = vpop.f32.mrb[122].mxu1 }
 0x1e9   : > { %v2481_v42 = vadd.f32 %v2449_v5, %v2406_v34  ;;  %v4368_v6 = vpop.f32.mrb[126].mxu0  ;;  %v2731_v19 = vld [vmem:[#allocation2 + $0xd0] sm:$0xff]  ;;  %v2677_v51 = vpop.f32.mrb[123].mxu1 }
 0x1ea   : > { %2515 = vst.msk [vmem:[#allocation2 + $0xf0] sm:$0xff] %vm568_vm4, %v2483_v10  ;;  %v2484_v30 = vadd.f32 %v4368_v6, %v2452_v27  ;;  %v2763_v43 = vadd.f32 %v4397_v21, %v2731_v19  ;;  %v2409_v37 = vpop.f32.mrb[127].mxu0  ;;  %v2729_v45 = vld [vmem:[#allocation2 + $0xc0] sm:$0xff]  ;;  %v2989_v6 = vld [vmem:[#allocation2 + $0x50] sm:$0xff] }
 0x1eb   : > { %2513 = vst.msk [vmem:[#allocation2 + $0xe0] sm:$0xff] %vm568_vm4, %v2481_v42  ;;  %v2482_v18 = vadd.f32 %v2450_v25, %v2409_v37  ;;  %v2761_v29 = vadd.f32 %v2729_v45, %v2674_v1  ;;  %v2732_v40 = vld [vmem:[#allocation2 + $0xd8] sm:$0xff] }
 0x1ec   : > { %2516 = vst.msk [vmem:[#allocation2 + $0xf8] sm:$0xff] %vm568_vm4, %v2484_v30  ;;  %2795 = vst.msk [vmem:[#allocation2 + $0xd0] sm:$0xff] %vm568_vm4, %v2763_v43  ;;  %v2764_v49 = vadd.f32 %v4398_v33, %v2732_v40  ;;  %v2730_v53 = vld [vmem:[#allocation2 + $0xc8] sm:$0xff]  ;;  %v2987_v30 = vld [vmem:[#allocation2 + $0x40] sm:$0xff] }
 0x1ed   : > { %2514 = vst.msk [vmem:[#allocation2 + $0xe8] sm:$0xff] %vm568_vm4, %v2482_v18  ;;  %2793 = vst.msk [vmem:[#allocation2 + $0xc0] sm:$0xff] %vm568_vm4, %v2761_v29  ;;  %v2762_v32 = vadd.f32 %v2730_v53, %v2677_v51  ;;  %v2990_v45 = vld [vmem:[#allocation2 + $0x58] sm:$0xff] }
 0x1ee   : > { %2796 = vst.msk [vmem:[#allocation2 + $0xd8] sm:$0xff] %vm568_vm4, %v2764_v49  ;;  %v4401_v12 = vpop.f32.mrb[124].mxu1 }
 0x1ef   : > { %2794 = vst.msk [vmem:[#allocation2 + $0xc8] sm:$0xff] %vm568_vm4, %v2762_v32  ;;  %v4407_v20 = vpop.f32.mrb[128].mxu0  ;;  %v2690_v31 = vpop.f32.mrb[125].mxu1  ;;  %v2988_v32 = vld [vmem:[#allocation2 + $0x48] sm:$0xff] }
 0x1f0   : > { %v3013_v24 = vadd.f32 %v4407_v20, %v2981_v13  ;;  %v2852_v57 = vpop.f32.mrb[129].mxu0  ;;  %v4402_v35 = vpop.f32.mrb[126].mxu1 }
 0x1f1   : > { %v3011_v38 = vadd.f32 %v2979_v50, %v2852_v57  ;;  %v2735_v14 = vld [vmem:[#allocation2 + $0xf0] sm:$0xff]  ;;  %v4408_v15 = vpop.f32.mrb[130].mxu0  ;;  %v2693_v58 = vpop.f32.mrb[127].mxu1 }
 0x1f2   : > { %3045 = vst.msk [vmem:[#allocation2 + $0x10] sm:$0xff] %vm568_vm4, %v3013_v24  ;;  %v2767_v0 = vadd.f32 %v4401_v12, %v2735_v14  ;;  %v3014_v26 = vadd.f32 %v4408_v15, %v2982_v39  ;;  %v2733_v28 = vld [vmem:[#allocation2 + $0xe0] sm:$0xff]  ;;  %v2855_v4 = vpop.f32.mrb[131].mxu0 }
 0x1f3   : > { %3043 = vst.msk [vmem:[#allocation2] sm:$0xff] %vm568_vm4, %v3011_v38  ;;  %v2765_v46 = vadd.f32 %v2733_v28, %v2690_v31  ;;  %v3012_v52 = vadd.f32 %v2980_v54, %v2855_v4  ;;  %v2736_v63 = vld [vmem:[#allocation2 + $0xf8] sm:$0xff]  ;;  %v2993_v28 = vld [vmem:[#allocation2 + $0x70] sm:$0xff] }
 0x1f4   : > { %2799 = vst.msk [vmem:[#allocation2 + $0xf0] sm:$0xff] %vm568_vm4, %v2767_v0  ;;  %3046 = vst.msk [vmem:[#allocation2 + $0x18] sm:$0xff] %vm568_vm4, %v3014_v26  ;;  %v2768_v16 = vadd.f32 %v4402_v35, %v2736_v63  ;;  %v2734_v59 = vld [vmem:[#allocation2 + $0xe8] sm:$0xff] }
 0x1f5   : > { %2797 = vst.msk [vmem:[#allocation2 + $0xe0] sm:$0xff] %vm568_vm4, %v2765_v46  ;;  %3044 = vst.msk [vmem:[#allocation2 + $0x8] sm:$0xff] %vm568_vm4, %v3012_v52  ;;  %v2766_v2 = vadd.f32 %v2734_v59, %v2693_v58  ;;  %v2991_v52 = vld [vmem:[#allocation2 + $0x60] sm:$0xff] }
 0x1f6   : > { %2800 = vst.msk [vmem:[#allocation2 + $0xf8] sm:$0xff] %vm568_vm4, %v2768_v16 }
 0x1f7   : > { %2798 = vst.msk [vmem:[#allocation2 + $0xe8] sm:$0xff] %vm568_vm4, %v2766_v2  ;;  %v4411_v62 = vpop.f32.mrb[132].mxu0  ;;  %v2994_v2 = vld [vmem:[#allocation2 + $0x78] sm:$0xff] }
 0x1f8   : > { %v3017_v36 = vadd.f32 %v4411_v62, %v2985_v3  ;;  %v2868_v44 = vpop.f32.mrb[133].mxu0 }
 0x1f9   : > { %v3015_v47 = vadd.f32 %v2983_v8, %v2868_v44  ;;  %v4412_v11 = vpop.f32.mrb[134].mxu0  ;;  %v3077_v56 = vld [vmem:[#allocation2 + $0x10] sm:$0xff] }
 0x1fa   : > { %3049 = vst.msk [vmem:[#allocation2 + $0x30] sm:$0xff] %vm568_vm4, %v3017_v36  ;;  %v3018_v23 = vadd.f32 %v4412_v11, %v2986_v9  ;;  %v2871_v17 = vpop.f32.mrb[135].mxu0  ;;  %v3075_v48 = vld [vmem:[#allocation2] sm:$0xff]  ;;  %v3116_v41 = vadd.f32 %v5576_v60, %v3077_v56 }
 0x1fb   : > { %3047 = vst.msk [vmem:[#allocation2 + $0x20] sm:$0xff] %vm568_vm4, %v3015_v47  ;;  %v3016_v22 = vadd.f32 %v2984_v55, %v2871_v17  ;;  %v3114_v21 = vadd.f32 %v5576_v60, %v3075_v48  ;;  %v3078_v61 = vld [vmem:[#allocation2 + $0x18] sm:$0xff]  ;;  %v2992_v47 = vld [vmem:[#allocation2 + $0x68] sm:$0xff] }
 0x1fc   : > { %3050 = vst.msk [vmem:[#allocation2 + $0x38] sm:$0xff] %vm568_vm4, %v3018_v23  ;;  %v3076_v7 = vld [vmem:[#allocation2 + $0x8] sm:$0xff]  ;;  %v3117_v1 = vadd.f32 %v5576_v60, %v3078_v61  ;;  %v3180_v5 = vmul.f32 0.2, %v3116_v41  ;;  %vm3148_vm9 = vcmp.ge.f32.partialorder %v3116_v41, 0.0 }
 0x1fd   : > { %3048 = vst.msk [vmem:[#allocation2 + $0x28] sm:$0xff] %vm568_vm4, %v3016_v22  ;;  %v3115_v10 = vadd.f32 %v5576_v60, %v3076_v7  ;;  %v3178_v34 = vmul.f32 0.2, %v3114_v21  ;;  %vm3146_vm6 = vcmp.ge.f32.partialorder %v3114_v21, 0.0 }
 0x1fe   : > { %vm3149_vm7 = vcmp.ge.f32.partialorder %v3117_v1, 0.0  ;;  %v3181_v33 = vmul.f32 0.2, %v3117_v1  ;;  %v3212_v20 = vsel %vm3148_vm9, %v3116_v41, %v3180_v5  ;;  %v2997_v5 = vld [vmem:[#allocation2 + $0x90] sm:$0xff] }
 0x1ff   : > { %v4415_v42 = vpop.f32.mrb[136].mxu0  ;;  %vm3147_vm8 = vcmp.ge.f32.partialorder %v3115_v10, 0.0  ;;  %v3179_v27 = vmul.f32 0.2, %v3115_v10  ;;  %v3210_v18 = vsel %vm3146_vm6, %v3114_v21, %v3178_v34 }
 0x200   : > { %v3021_v19 = vadd.f32 %v4415_v42, %v2989_v6  ;;  %v2884_v51 = vpop.f32.mrb[137].mxu0  ;;  %v3213_v43 = vsel %vm3149_vm7, %v3117_v1, %v3181_v33 }
 0x201   : > { %v3019_v37 = vadd.f32 %v2987_v30, %v2884_v51  ;;  %v4416_v25 = vpop.f32.mrb[138].mxu0  ;;  %v3211_v29 = vsel %vm3147_vm8, %v3115_v10, %v3179_v27  ;;  %v3081_v40 = vld [vmem:[#allocation2 + $0x30] sm:$0xff]  ;;  %v3243_v57 = vpack.c.bf16 %v3213_v43, %v3212_v20  ;;  %v2995_v27 = vld [vmem:[#allocation2 + $0x80] sm:$0xff]  ;;  %v2998_v43 = vld [vmem:[#allocation2 + $0x98] sm:$0xff] }
 0x202   : > { %3053 = vst.msk [vmem:[#allocation2 + $0x50] sm:$0xff] %vm568_vm4, %v3021_v19  ;;  %v3022_v49 = vadd.f32 %v4416_v25, %v2990_v45  ;;  %v2887_v53 = vpop.f32.mrb[139].mxu0  ;;  %v3242_v12 = vpack.c.bf16 %v3211_v29, %v3210_v18  ;;  %v3079_v13 = vld [vmem:[#allocation2 + $0x20] sm:$0xff]  ;;  %v3120_v31 = vadd.f32 %v5576_v60, %v3081_v40  ;;  %v2996_v40 = vld [vmem:[#allocation2 + $0x88] sm:$0xff] }
 0x203   : > { %3051 = vst.msk [vmem:[#allocation2 + $0x40] sm:$0xff] %vm568_vm4, %v3019_v37  ;;  %v3020_v24 = vadd.f32 %v2988_v32, %v2887_v53  ;;  %v3118_v50 = vadd.f32 %v5576_v60, %v3079_v13  ;;  %v3082_v35 = vld [vmem:[#allocation2 + $0x38] sm:$0xff] }
 0x204   : > { %3054 = vst.msk [vmem:[#allocation2 + $0x58] sm:$0xff] %vm568_vm4, %v3022_v49  ;;  %4439 = vmatprep.mubr.msk.bf16.mxu1 %vm568_vm4, %v3242_v12  ;;  %v3080_v38 = vld [vmem:[#allocation2 + $0x28] sm:$0xff]  ;;  %v3121_v14 = vadd.f32 %v5576_v60, %v3082_v35  ;;  %v3184_v58 = vmul.f32 0.2, %v3120_v31  ;;  %vm3152_vm13 = vcmp.ge.f32.partialorder %v3120_v31, 0.0 }
 0x205   : > { %3052 = vst.msk [vmem:[#allocation2 + $0x48] sm:$0xff] %vm568_vm4, %v3020_v24  ;;  %4440 = vmatmul.mubr.msk.bf16.vlgmr.msra.gmra.mrb[128].mxu1 %vm568_vm4, %v3243_v57  ;;  %v3119_v15 = vadd.f32 %v5576_v60, %v3080_v38  ;;  %v3182_v39 = vmul.f32 0.2, %v3118_v50  ;;  %vm3150_vm10 = vcmp.ge.f32.partialorder %v3118_v50, 0.0 }
 0x206   : > { %vm3153_vm11 = vcmp.ge.f32.partialorder %v3121_v14, 0.0  ;;  %v3185_v0 = vmul.f32 0.2, %v3121_v14  ;;  %v3216_v9 = vsel %vm3152_vm13, %v3120_v31, %v3184_v58  ;;  %v3001_v58 = vld [vmem:[#allocation2 + $0xb0] sm:$0xff] }
 0x207   : > { %v4419_v26 = vpop.f32.mrb[140].mxu0  ;;  %vm3151_vm12 = vcmp.ge.f32.partialorder %v3119_v15, 0.0  ;;  %v3183_v4 = vmul.f32 0.2, %v3119_v15  ;;  %v3214_v62 = vsel %vm3150_vm10, %v3118_v50, %v3182_v39 }
 0x208   : > { %v3025_v54 = vadd.f32 %v4419_v26, %v2993_v28  ;;  %v2900_v46 = vpop.f32.mrb[141].mxu0  ;;  %v3217_v63 = vsel %vm3153_vm11, %v3121_v14, %v3185_v0 }
 0x209   : > { %v3023_v16 = vadd.f32 %v2991_v52, %v2900_v46  ;;  %v4420_v59 = vpop.f32.mrb[142].mxu0  ;;  %v3215_v3 = vsel %vm3151_vm12, %v3119_v15, %v3183_v4  ;;  %v3085_v36 = vld [vmem:[#allocation2 + $0x50] sm:$0xff]  ;;  %v3245_v55 = vpack.c.bf16 %v3217_v63, %v3216_v9  ;;  %v2999_v4 = vld [vmem:[#allocation2 + $0xa0] sm:$0xff]  ;;  %v3002_v63 = vld [vmem:[#allocation2 + $0xb8] sm:$0xff] }
 0x20a   : > { %3057 = vst.msk [vmem:[#allocation2 + $0x70] sm:$0xff] %vm568_vm4, %v3025_v54  ;;  %v3026_v44 = vadd.f32 %v4420_v59, %v2994_v2  ;;  %v2903_v8 = vpop.f32.mrb[143].mxu0  ;;  %v3244_v11 = vpack.c.bf16 %v3215_v3, %v3214_v62  ;;  %v3083_v56 = vld [vmem:[#allocation2 + $0x40] sm:$0xff]  ;;  %v3124_v23 = vadd.f32 %v5576_v60, %v3085_v36  ;;  %v3000_v36 = vld [vmem:[#allocation2 + $0xa8] sm:$0xff] }
 0x20b   : > { %3055 = vst.msk [vmem:[#allocation2 + $0x60] sm:$0xff] %vm568_vm4, %v3023_v16  ;;  %v3024_v17 = vadd.f32 %v2992_v47, %v2903_v8  ;;  %v3122_v48 = vadd.f32 %v5576_v60, %v3083_v56  ;;  %v3086_v41 = vld [vmem:[#allocation2 + $0x58] sm:$0xff] }
 0x20c   : > { %3058 = vst.msk [vmem:[#allocation2 + $0x78] sm:$0xff] %vm568_vm4, %v3026_v44  ;;  %4443 = vmatprep.mubr.msk.bf16.mxu1 %vm568_vm4, %v3244_v11  ;;  %v3084_v22 = vld [vmem:[#allocation2 + $0x48] sm:$0xff]  ;;  %v3125_v21 = vadd.f32 %v5576_v60, %v3086_v41  ;;  %v3188_v1 = vmul.f32 0.2, %v3124_v23  ;;  %vm3156_vm2 = vcmp.ge.f32.partialorder %v3124_v23, 0.0 }
 0x20d   : > { %3056 = vst.msk [vmem:[#allocation2 + $0x68] sm:$0xff] %vm568_vm4, %v3024_v17  ;;  %4444 = vmatmul.mubr.msk.bf16.gmra.mrb[132].mxu1 %vm568_vm4, %v3245_v55  ;;  %v3123_v61 = vadd.f32 %v5576_v60, %v3084_v22  ;;  %v3186_v7 = vmul.f32 0.2, %v3122_v48  ;;  %vm3154_vm14 = vcmp.ge.f32.partialorder %v3122_v48, 0.0 }
 0x20e   : > { %vm3157_vm15 = vcmp.ge.f32.partialorder %v3125_v21, 0.0  ;;  %v3189_v10 = vmul.f32 0.2, %v3125_v21  ;;  %v3220_v53 = vsel %vm3156_vm2, %v3124_v23, %v3188_v1  ;;  %v3005_v1 = vld [vmem:[#allocation2 + $0xd0] sm:$0xff] }
 0x20f   : > { %v4423_v34 = vpop.f32.mrb[144].mxu0  ;;  %vm3155_vm0 = vcmp.ge.f32.partialorder %v3123_v61, 0.0  ;;  %v3187_v33 = vmul.f32 0.2, %v3123_v61  ;;  %v3218_v37 = vsel %vm3154_vm14, %v3122_v48, %v3186_v7 }
 0x210   : > { %v3029_v42 = vadd.f32 %v4423_v34, %v2997_v5  ;;  %v2916_v6 = vpop.f32.mrb[145].mxu0  ;;  %v3221_v19 = vsel %vm3157_vm15, %v3125_v21, %v3189_v10 }
 0x211   : > { %v3027_v51 = vadd.f32 %v2995_v27, %v2916_v6  ;;  %v4424_v30 = vpop.f32.mrb[146].mxu0  ;;  %v3219_v25 = vsel %vm3155_vm0, %v3123_v61, %v3187_v33  ;;  %v3089_v45 = vld [vmem:[#allocation2 + $0x70] sm:$0xff]  ;;  %v3247_v13 = vpack.c.bf16 %v3221_v19, %v3220_v53  ;;  %v3003_v33 = vld [vmem:[#allocation2 + $0xc0] sm:$0xff]  ;;  %v3006_v19 = vld [vmem:[#allocation2 + $0xd8] sm:$0xff] }
 0x212   : > { %3061 = vst.msk [vmem:[#allocation2 + $0x90] sm:$0xff] %vm568_vm4, %v3029_v42  ;;  %v3030_v18 = vadd.f32 %v4424_v30, %v2998_v43  ;;  %v2919_v29 = vpop.f32.mrb[147].mxu0  ;;  %v3246_v49 = vpack.c.bf16 %v3219_v25, %v3218_v37  ;;  %v3087_v32 = vld [vmem:[#allocation2 + $0x60] sm:$0xff]  ;;  %v3128_v12 = vadd.f32 %v5576_v60, %v3089_v45  ;;  %v3004_v45 = vld [vmem:[#allocation2 + $0xc8] sm:$0xff] }
 0x213   : > { %3059 = vst.msk [vmem:[#allocation2 + $0x80] sm:$0xff] %vm568_vm4, %v3027_v51  ;;  %v3028_v20 = vadd.f32 %v2996_v40, %v2919_v29  ;;  %v3126_v31 = vadd.f32 %v5576_v60, %v3087_v32  ;;  %v3090_v24 = vld [vmem:[#allocation2 + $0x78] sm:$0xff] }
 0x214   : > { %3062 = vst.msk [vmem:[#allocation2 + $0x98] sm:$0xff] %vm568_vm4, %v3030_v18  ;;  %4447 = vmatprep.mubr.msk.bf16.mxu1 %vm568_vm4, %v3246_v49  ;;  %v3088_v57 = vld [vmem:[#allocation2 + $0x68] sm:$0xff]  ;;  %v3129_v50 = vadd.f32 %v5576_v60, %v3090_v24  ;;  %v3192_v14 = vmul.f32 0.2, %v3128_v12  ;;  %vm3160_vm8 = vcmp.ge.f32.partialorder %v3128_v12, 0.0 }
 0x215   : > { %3060 = vst.msk [vmem:[#allocation2 + $0x88] sm:$0xff] %vm568_vm4, %v3028_v20  ;;  %4448 = vmatmul.mubr.msk.bf16.gmra.mrb[136].mxu1 %vm568_vm4, %v3247_v13  ;;  %v3127_v35 = vadd.f32 %v5576_v60, %v3088_v57  ;;  %v3190_v38 = vmul.f32 0.2, %v3126_v31  ;;  %vm3158_vm5 = vcmp.ge.f32.partialorder %v3126_v31, 0.0 }
 0x216   : > { %vm3161_vm6 = vcmp.ge.f32.partialorder %v3129_v50, 0.0  ;;  %v3193_v15 = vmul.f32 0.2, %v3129_v50  ;;  %v3224_v8 = vsel %vm3160_vm8, %v3128_v12, %v3192_v14  ;;  %v3009_v14 = vld [vmem:[#allocation2 + $0xf0] sm:$0xff] }
 0x217   : > { %v4427_v39 = vpop.f32.mrb[148].mxu0  ;;  %vm3159_vm7 = vcmp.ge.f32.partialorder %v3127_v35, 0.0  ;;  %v3191_v0 = vmul.f32 0.2, %v3127_v35  ;;  %v3222_v16 = vsel %vm3158_vm5, %v3126_v31, %v3190_v38 }
 0x218   : > { %v3033_v26 = vadd.f32 %v4427_v39, %v3001_v58  ;;  %v2932_v28 = vpop.f32.mrb[149].mxu0  ;;  %v3225_v54 = vsel %vm3161_vm6, %v3129_v50, %v3193_v15 }
 0x219   : > { %v3031_v46 = vadd.f32 %v2999_v4, %v2932_v28  ;;  %v4428_v52 = vpop.f32.mrb[150].mxu0  ;;  %v3223_v59 = vsel %vm3159_vm7, %v3127_v35, %v3191_v0  ;;  %v3093_v2 = vld [vmem:[#allocation2 + $0x90] sm:$0xff]  ;;  %v3249_v56 = vpack.c.bf16 %v3225_v54, %v3224_v8  ;;  %v3007_v0 = vld [vmem:[#allocation2 + $0xe0] sm:$0xff]  ;;  %v3010_v54 = vld [vmem:[#allocation2 + $0xf8] sm:$0xff] }
 0x21a   : > { %3065 = vst.msk [vmem:[#allocation2 + $0xb0] sm:$0xff] %vm568_vm4, %v3033_v26  ;;  %v3034_v62 = vadd.f32 %v4428_v52, %v3002_v63  ;;  %v2935_v3 = vpop.f32.mrb[151].mxu0  ;;  %v3248_v44 = vpack.c.bf16 %v3223_v59, %v3222_v16  ;;  %v3091_v47 = vld [vmem:[#allocation2 + $0x80] sm:$0xff]  ;;  %v3132_v11 = vadd.f32 %v5576_v60, %v3093_v2  ;;  %v3008_v2 = vld [vmem:[#allocation2 + $0xe8] sm:$0xff] }
 0x21b   : > { %3063 = vst.msk [vmem:[#allocation2 + $0xa0] sm:$0xff] %vm568_vm4, %v3031_v46  ;;  %v3032_v9 = vadd.f32 %v3000_v36, %v2935_v3  ;;  %v3130_v23 = vadd.f32 %v5576_v60, %v3091_v47  ;;  %v3094_v17 = vld [vmem:[#allocation2 + $0x98] sm:$0xff] }
 0x21c   : > { %3066 = vst.msk [vmem:[#allocation2 + $0xb8] sm:$0xff] %vm568_vm4, %v3034_v62  ;;  %4451 = vmatprep.mubr.msk.bf16.mxu1 %vm568_vm4, %v3248_v44  ;;  %v3092_v55 = vld [vmem:[#allocation2 + $0x88] sm:$0xff]  ;;  %v3133_v48 = vadd.f32 %v5576_v60, %v3094_v17  ;;  %v3196_v21 = vmul.f32 0.2, %v3132_v11  ;;  %vm3164_vm12 = vcmp.ge.f32.partialorder %v3132_v11, 0.0 }
 0x21d   : > { %3064 = vst.msk [vmem:[#allocation2 + $0xa8] sm:$0xff] %vm568_vm4, %v3032_v9  ;;  %4452 = vmatmul.mubr.msk.bf16.gmra.mrb[140].mxu1 %vm568_vm4, %v3249_v56  ;;  %v3131_v41 = vadd.f32 %v5576_v60, %v3092_v55  ;;  %v3194_v22 = vmul.f32 0.2, %v3130_v23  ;;  %vm3162_vm9 = vcmp.ge.f32.partialorder %v3130_v23, 0.0 }
 0x21e   : > { %vm3165_vm10 = vcmp.ge.f32.partialorder %v3133_v48, 0.0  ;;  %v3197_v61 = vmul.f32 0.2, %v3133_v48  ;;  %v3228_v29 = vsel %vm3164_vm12, %v3132_v11, %v3196_v21 }
 0x21f   : > { %v4431_v7 = vpop.f32.mrb[152].mxu0  ;;  %vm3163_vm11 = vcmp.ge.f32.partialorder %v3131_v41, 0.0  ;;  %v3195_v10 = vmul.f32 0.2, %v3131_v41  ;;  %v3226_v51 = vsel %vm3162_vm9, %v3130_v23, %v3194_v22 }
 0x220   : > { %v3037_v34 = vadd.f32 %v4431_v7, %v3005_v1  ;;  %v2948_v5 = vpop.f32.mrb[153].mxu0  ;;  %v3229_v42 = vsel %vm3165_vm10, %v3133_v48, %v3197_v61 }
 0x221   : > { %v3035_v6 = vadd.f32 %v3003_v33, %v2948_v5  ;;  %v4432_v27 = vpop.f32.mrb[154].mxu0  ;;  %v3227_v30 = vsel %vm3163_vm11, %v3131_v41, %v3195_v10  ;;  %v3097_v43 = vld [vmem:[#allocation2 + $0xb0] sm:$0xff]  ;;  %v3251_v32 = vpack.c.bf16 %v3229_v42, %v3228_v29 }
 0x222   : > { %3069 = vst.msk [vmem:[#allocation2 + $0xd0] sm:$0xff] %vm568_vm4, %v3037_v34  ;;  %v3038_v37 = vadd.f32 %v4432_v27, %v3006_v19  ;;  %v2951_v25 = vpop.f32.mrb[155].mxu0  ;;  %v3250_v18 = vpack.c.bf16 %v3227_v30, %v3226_v51  ;;  %v3095_v40 = vld [vmem:[#allocation2 + $0xa0] sm:$0xff]  ;;  %v3136_v49 = vadd.f32 %v5576_v60, %v3097_v43 }
 0x223   : > { %3067 = vst.msk [vmem:[#allocation2 + $0xc0] sm:$0xff] %vm568_vm4, %v3035_v6  ;;  %v3036_v53 = vadd.f32 %v3004_v45, %v2951_v25  ;;  %v3134_v12 = vadd.f32 %v5576_v60, %v3095_v40  ;;  %v3098_v20 = vld [vmem:[#allocation2 + $0xb8] sm:$0xff] }
 0x224   : > { %3070 = vst.msk [vmem:[#allocation2 + $0xd8] sm:$0xff] %vm568_vm4, %v3038_v37  ;;  %4455 = vmatprep.mubr.msk.bf16.mxu1 %vm568_vm4, %v3250_v18  ;;  %v3096_v13 = vld [vmem:[#allocation2 + $0xa8] sm:$0xff]  ;;  %v3137_v31 = vadd.f32 %v5576_v60, %v3098_v20  ;;  %v3200_v50 = vmul.f32 0.2, %v3136_v49  ;;  %vm3168_vm0 = vcmp.ge.f32.partialorder %v3136_v49, 0.0  ;;  %v4524_v20 = vld [vmem:[%s4694_s15 + $0x40] sm:$0xff] }
 0x225   : > { %3068 = vst.msk [vmem:[#allocation2 + $0xc8] sm:$0xff] %vm568_vm4, %v3036_v53  ;;  %4456 = vmatmul.mubr.msk.bf16.gmra.mrb[144].mxu1 %vm568_vm4, %v3251_v32  ;;  %v3135_v24 = vadd.f32 %v5576_v60, %v3096_v13  ;;  %v3198_v57 = vmul.f32 0.2, %v3134_v12  ;;  %vm3166_vm13 = vcmp.ge.f32.partialorder %v3134_v12, 0.0  ;;  %v4523_v32 = vld [vmem:[%s4694_s15 + $0x38] sm:$0xff]  ;;  %v3525_v13 = vrot.slane %v4524_v20, 1 }
 0x226   : > { %vm3169_vm14 = vcmp.ge.f32.partialorder %v3137_v31, 0.0  ;;  %v3201_v35 = vmul.f32 0.2, %v3137_v31  ;;  %v3232_v3 = vsel %vm3168_vm0, %v3136_v49, %v3200_v50 }
 0x227   : > { %v4435_v38 = vpop.f32.mrb[156].mxu0  ;;  %vm3167_vm15 = vcmp.ge.f32.partialorder %v3135_v24, 0.0  ;;  %v3199_v15 = vmul.f32 0.2, %v3135_v24  ;;  %v3230_v46 = vsel %vm3166_vm13, %v3134_v12, %v3198_v57  ;;  %v3523_v12 = vrot.slane %v4523_v32, 1  ;;  %v4526_v57 = vld [vmem:[%s4694_s15 + $0x30] sm:$0xff] }
 0x228   : > { %v3041_v39 = vadd.f32 %v4435_v38, %v3009_v14  ;;  %v2964_v58 = vpop.f32.mrb[157].mxu0  ;;  %v3233_v26 = vsel %vm3169_vm14, %v3137_v31, %v3201_v35  ;;  %v4525_v31 = vld [vmem:[%s4694_s15 + $0x28] sm:$0xff]  ;;  %v3521_v50 = vrot.slane %v4526_v57, 1  ;;  %v5675_v35 = vld [vmem:[%s5865_s4] ss:$0 sm:$0xff] }
 0x229   : > { %v3039_v28 = vadd.f32 %v3007_v0, %v2964_v58  ;;  %v4436_v4 = vpop.f32.mrb[158].mxu0  ;;  %v3231_v52 = vsel %vm3167_vm15, %v3135_v24, %v3199_v15  ;;  %v3101_v63 = vld [vmem:[#allocation2 + $0xd0] sm:$0xff]  ;;  %v3253_v47 = vpack.c.bf16 %v3233_v26, %v3232_v3  ;;  %v3520_v24 = vrot.slane %v4525_v31, 1  ;;  %v4527_v38 = vld [vmem:[%s4694_s15 + $0x48] sm:$0x3] }
 0x22a   : > { %3073 = vst.msk [vmem:[#allocation2 + $0xf0] sm:$0xff] %vm568_vm4, %v3041_v39  ;;  %v3042_v16 = vadd.f32 %v4436_v4, %v3010_v54  ;;  %v2967_v59 = vpop.f32.mrb[159].mxu0  ;;  %v3252_v62 = vpack.c.bf16 %v3231_v52, %v3230_v46  ;;  %v3099_v36 = vld [vmem:[#allocation2 + $0xc0] sm:$0xff]  ;;  %v3140_v44 = vadd.f32 %v5576_v60, %v3101_v63  ;;  %v3527_v14 = vrot.slane %v4527_v38, 1 }
 0x22b   : > { %3071 = vst.msk [vmem:[#allocation2 + $0xe0] sm:$0xff] %vm568_vm4, %v3039_v28  ;;  %v3040_v8 = vadd.f32 %v3008_v2, %v2967_v59  ;;  %v3138_v11 = vadd.f32 %v5576_v60, %v3099_v36  ;;  %v3102_v9 = vld [vmem:[#allocation2 + $0xd8] sm:$0xff]  ;;  %v3526_v39 = vsel %vm1078_vm3, %v3523_v12, %v3525_v13  ;;  %v3522_v26 = vsel %vm1078_vm3, %v3520_v24, %v3521_v50  ;;  %v4529_v36 = vld [vmem:[%s4694_s15 + $0x68] sm:$0xff] }
 0x22c   : > { %3074 = vst.msk [vmem:[#allocation2 + $0xf8] sm:$0xff] %vm568_vm4, %v3042_v16  ;;  %4459 = vmatprep.mubr.msk.bf16.mxu1 %vm568_vm4, %v3252_v62  ;;  %v3100_v56 = vld [vmem:[#allocation2 + $0xc8] sm:$0xff]  ;;  %v3141_v23 = vadd.f32 %v5576_v60, %v3102_v9  ;;  %v3204_v48 = vmul.f32 0.2, %v3140_v44  ;;  %vm3172_vm7 = vcmp.ge.f32.partialorder %v3140_v44, 0.0  ;;  %v3528_v54 = vsel %vm1078_vm3, %v3525_v13, %v3527_v14  ;;  %v4528_v62 = vld [vmem:[%s4694_s15 + $0x60] sm:$0xff] }
 0x22d   : > { %3072 = vst.msk [vmem:[#allocation2 + $0xe8] sm:$0xff] %vm568_vm4, %v3040_v8  ;;  %4460 = vmatmul.mubr.msk.bf16.gmra.mrb[148].mxu1 %vm568_vm4, %v3253_v47  ;;  %v3139_v17 = vadd.f32 %v5576_v60, %v3100_v56  ;;  %v3202_v55 = vmul.f32 0.2, %v3138_v11  ;;  %vm3170_vm2 = vcmp.ge.f32.partialorder %v3138_v11, 0.0  ;;  %v3524_v16 = vsel %vm1078_vm3, %v3521_v50, %v3523_v12  ;;  %v4530_v47 = vld [vmem:[%s4694_s15 + $0x50] sm:$0xff]  ;;  %v4531_v9 = vld [vmem:[%s4694_s15 + $0x58] sm:$0xff] }
 0x22e   : > { %vm3173_vm5 = vcmp.ge.f32.partialorder %v3141_v23, 0.0  ;;  %v3205_v41 = vmul.f32 0.2, %v3141_v23  ;;  %v3236_v34 = vsel %vm3172_vm7, %v3140_v44, %v3204_v48  ;;  %v3532_v3 = vrot.slane %v4528_v62, 1 }
 0x22f   : > { %vm3171_vm6 = vcmp.ge.f32.partialorder %v3139_v17, 0.0  ;;  %v3203_v22 = vmul.f32 0.2, %v3139_v17  ;;  %v3234_v61 = vsel %vm3170_vm2, %v3138_v11, %v3202_v55  ;;  %v3534_v44 = vrot.slane %v4529_v36, 1 }
 0x230   : > { %v3237_v21 = vsel %vm3173_vm5, %v3141_v23, %v3205_v41  ;;  %v3529_v11 = vrot.slane %v4530_v47, 1  ;;  %v3530_v56 = vrot.slane %v4531_v9, 1 }
 0x231   : > { %v3235_v7 = vsel %vm3171_vm6, %v3139_v17, %v3203_v22  ;;  %v3105_v1 = vld [vmem:[#allocation2 + $0xf0] sm:$0xff]  ;;  %v3255_v42 = vpack.c.bf16 %v3237_v21, %v3236_v34  ;;  %v3535_v41 = vsel %vm1078_vm3, %v3532_v3, %v3534_v44 }
 0x232   : > { %v3254_v10 = vpack.c.bf16 %v3235_v7, %v3234_v61  ;;  %v3103_v5 = vld [vmem:[#allocation2 + $0xe0] sm:$0xff]  ;;  %v3144_v33 = vadd.f32 %v5576_v60, %v3105_v1  ;;  %v4532_v17 = vld [vmem:[%s4694_s15 + $0x70] sm:$0x3]  ;;  %v3531_v61 = vsel %vm1078_vm3, %v3529_v11, %v3530_v56 }
 0x233   : > { %v3142_v6 = vadd.f32 %v5576_v60, %v3103_v5  ;;  %v3106_v27 = vld [vmem:[#allocation2 + $0xf8] sm:$0xff]  ;;  %v3536_v55 = vrot.slane %v4532_v17, 1 }
 0x234   : > { %4463 = vmatprep.mubr.msk.bf16.mxu1 %vm568_vm4, %v3254_v10  ;;  %v3104_v19 = vld [vmem:[#allocation2 + $0xe8] sm:$0xff]  ;;  %v3145_v51 = vadd.f32 %v5576_v60, %v3106_v27  ;;  %v3208_v37 = vmul.f32 0.2, %v3144_v33  ;;  %vm3176_vm11 = vcmp.ge.f32.partialorder %v3144_v33, 0.0 }
 0x235   : > { %4464 = vmatmul.mubr.msk.bf16.gmra.mrb[152].mxu1 %vm568_vm4, %v3255_v42  ;;  %v3143_v30 = vadd.f32 %v5576_v60, %v3104_v19  ;;  %v3206_v43 = vmul.f32 0.2, %v3142_v6  ;;  %vm3174_vm8 = vcmp.ge.f32.partialorder %v3142_v6, 0.0  ;;  %v3537_v10 = vsel %vm1078_vm3, %v3534_v44, %v3536_v55  ;;  %v4533_v19 = vld [vmem:[%s4694_s15 + $0x88] sm:$0xff] }
 0x236   : > { %vm3177_vm9 = vcmp.ge.f32.partialorder %v3145_v51, 0.0  ;;  %v3209_v25 = vmul.f32 0.2, %v3145_v51  ;;  %v3240_v53 = vsel %vm3176_vm11, %v3144_v33, %v3208_v37  ;;  %v3533_v42 = vsel %vm1078_vm3, %v3530_v56, %v3532_v3 }
 0x237   : > { %vm3175_vm10 = vcmp.ge.f32.partialorder %v3143_v30, 0.0  ;;  %v3207_v45 = vmul.f32 0.2, %v3143_v30  ;;  %v3238_v29 = vsel %vm3174_vm8, %v3142_v6, %v3206_v43 }
 0x238   : > { %v3241_v18 = vsel %vm3177_vm9, %v3145_v51, %v3209_v25  ;;  %v3541_v51 = vrot.slane %v4533_v19, 1  ;;  %v4535_v25 = vld [vmem:[%s4694_s15 + $0x78] sm:$0xff] }
 0x239   : > { %v3239_v40 = vsel %vm3175_vm10, %v3143_v30, %v3207_v45  ;;  %v3257_v60 = vpack.c.bf16 %v3241_v18, %v3240_v53  ;;  %v4534_v30 = vld [vmem:[%s4694_s15 + $0x90] sm:$0xff]  ;;  %v3538_v45 = vrot.slane %v4535_v25, 1  ;;  %v4536_v18 = vld [vmem:[%s4694_s15 + $0x80] sm:$0xff] }
 0x23a   : > { %v3256_v49 = vpack.c.bf16 %v3239_v40, %v3238_v29  ;;  %v3543_v43 = vrot.slane %v4534_v30, 1  ;;  %v3539_v29 = vrot.slane %v4536_v18, 1 }
 0x23c   : > { %4467 = vmatprep.mubr.msk.bf16.mxu1 %vm568_vm4, %v3256_v49  ;;  %v4537_v49 = vld [vmem:[%s4694_s15 + $0x98] sm:$0x3]  ;;  %v3544_v32 = vsel %vm1078_vm3, %v3541_v51, %v3543_v43  ;;  %v3540_v13 = vsel %vm1078_vm3, %v3538_v45, %v3539_v29 }
 0x23d   : > { %4468 = vmatmul.mubr.msk.bf16.gmra.mrb[156].mxu1 %vm568_vm4, %v3257_v60  ;;  %v3545_v53 = vrot.slane %v4537_v49, 1 }
 0x23f   : > { %v3546_v57 = vsel %vm1078_vm3, %v3543_v43, %v3545_v53 }
 0x2d8   : > { %v4441_v15 = vpop.f32.mrb[128].mxu1 }
 0x2d9   : > { %v3361_v58 = vadd.f32 %v4441_v15, %v5675_v35  ;;  %v3352_v0 = vpop.f32.mrb[129].mxu1  ;;  %v3542_v15 = vsel %vm1078_vm3, %v3539_v29, %v3541_v51 }
 0x2da   : > { %v3353_v28 = vadd.f32 %v5675_v35, %v3352_v0  ;;  %v4442_v4 = vpop.f32.mrb[130].mxu1  ;;  %v4538_v0 = vld [vmem:[%s4694_s15 + $0xb0] sm:$0xff] }
 0x2db   : > { %v3626_v46 = vadd.f32 %v3526_v39, %v3361_v58  ;;  %v3364_v52 = vadd.f32 %v4442_v4, %v5675_v35  ;;  %v3355_v63 = vpop.f32.mrb[131].mxu1 }
 0x2dc   : > { %v3624_v59 = vadd.f32 %v3522_v26, %v3353_v28  ;;  %v3356_v2 = vadd.f32 %v5675_v35, %v3355_v63  ;;  %v3550_v26 = vrot.slane %v4538_v0, 1  ;;  %v4539_v28 = vld [vmem:[%s4694_s15 + $0xb8] sm:$0xff]  ;;  %v4541_v63 = vld [vmem:[%s4694_s15 + $0xa8] sm:$0xff] }
 0x2dd   : > { %3658 = vst.msk [vmem:[%s5684_s27 + $0x10] sm:$0xff] %vm354_vm1, %v3626_v46  ;;  %v3627_v8 = vadd.f32 %v3528_v54, %v3364_v52  ;;  %v3552_v4 = vrot.slane %v4539_v28, 1  ;;  %v4540_v46 = vld [vmem:[%s4694_s15 + $0xa0] sm:$0xff] }
 0x2de   : > { %3656 = vst.msk [vmem:[%s5684_s27] sm:$0xff] %vm354_vm1, %v3624_v59  ;;  %v3625_v23 = vadd.f32 %v3524_v16, %v3356_v2  ;;  %v3547_v52 = vrot.slane %v4540_v46, 1  ;;  %v3548_v16 = vrot.slane %v4541_v63, 1  ;;  %v4542_v2 = vld [vmem:[%s4694_s15 + $0xc0] sm:$0x3] }
 0x2df   : > { %3659 = vst.msk [vmem:[%s5684_s27 + $0x18] sm:$0xff] %vm354_vm1, %v3627_v8  ;;  %v3554_v62 = vrot.slane %v4542_v2, 1  ;;  %v3553_v36 = vsel %vm1078_vm3, %v3550_v26, %v3552_v4 }
 0x2e0   : > { %3657 = vst.msk [vmem:[%s5684_s27 + $0x8] sm:$0xff] %vm354_vm1, %v3625_v23  ;;  %v4445_v48 = vpop.f32.mrb[132].mxu1  ;;  %v3549_v47 = vsel %vm1078_vm3, %v3547_v52, %v3548_v16 }
 0x2e1   : > { %v3377_v22 = vadd.f32 %v4445_v48, %v5675_v35  ;;  %v3368_v21 = vpop.f32.mrb[133].mxu1  ;;  %v3555_v56 = vsel %vm1078_vm3, %v3552_v4, %v3554_v62  ;;  %v3551_v48 = vsel %vm1078_vm3, %v3548_v16, %v3550_v26 }
 0x2e2   : > { %v3369_v7 = vadd.f32 %v5675_v35, %v3368_v21  ;;  %v4446_v1 = vpop.f32.mrb[134].mxu1  ;;  %v4543_v21 = vld [vmem:[%s4694_s15 + $0xd8] sm:$0xff] }
 0x2e3   : > { %v3630_v34 = vadd.f32 %v3535_v41, %v3377_v22  ;;  %v3380_v5 = vadd.f32 %v4446_v1, %v5675_v35  ;;  %v3371_v33 = vpop.f32.mrb[135].mxu1 }
 0x2e4   : > { %v3628_v6 = vadd.f32 %v3531_v61, %v3369_v7  ;;  %v3372_v27 = vadd.f32 %v5675_v35, %v3371_v33  ;;  %v3559_v61 = vrot.slane %v4543_v21, 1  ;;  %v4544_v7 = vld [vmem:[%s4694_s15 + $0xe0] sm:$0xff]  ;;  %v4546_v33 = vld [vmem:[%s4694_s15 + $0xd0] sm:$0xff] }
 0x2e5   : > { %3662 = vst.msk [vmem:[%s5684_s27 + $0x30] sm:$0xff] %vm354_vm1, %v3630_v34  ;;  %v3631_v37 = vadd.f32 %v3537_v10, %v3380_v5  ;;  %v3561_v1 = vrot.slane %v4544_v7, 1  ;;  %v4545_v34 = vld [vmem:[%s4694_s15 + $0xc8] sm:$0xff] }
 0x2e6   : > { %3660 = vst.msk [vmem:[%s5684_s27 + $0x20] sm:$0xff] %vm354_vm1, %v3628_v6  ;;  %v3629_v40 = vadd.f32 %v3533_v42, %v3372_v27  ;;  %v3556_v5 = vrot.slane %v4545_v34, 1  ;;  %v3557_v42 = vrot.slane %v4546_v33, 1  ;;  %v4547_v27 = vld [vmem:[%s4694_s15 + $0xe8] sm:$0x3] }
 0x2e7   : > { %3663 = vst.msk [vmem:[%s5684_s27 + $0x38] sm:$0xff] %vm354_vm1, %v3631_v37  ;;  %v3563_v19 = vrot.slane %v4547_v27, 1  ;;  %v3562_v30 = vsel %vm1078_vm3, %v3559_v61, %v3561_v1 }
 0x2e8   : > { %3661 = vst.msk [vmem:[%s5684_s27 + $0x28] sm:$0xff] %vm354_vm1, %v3629_v40  ;;  %v4449_v60 = vpop.f32.mrb[136].mxu1  ;;  %v3558_v25 = vsel %vm1078_vm3, %v3556_v5, %v3557_v42 }
 0x2e9   : > { %v3393_v12 = vadd.f32 %v4449_v60, %v5675_v35  ;;  %v3384_v20 = vpop.f32.mrb[137].mxu1  ;;  %v3564_v29 = vsel %vm1078_vm3, %v3561_v1, %v3563_v19  ;;  %v3560_v60 = vsel %vm1078_vm3, %v3557_v42, %v3559_v61 }
 0x2ea   : > { %v3385_v31 = vadd.f32 %v5675_v35, %v3384_v20  ;;  %v4450_v24 = vpop.f32.mrb[138].mxu1  ;;  %v4548_v20 = vld [vmem:[%s4694_s15 + $0x100] sm:$0xff] }
 0x2eb   : > { %v3634_v50 = vadd.f32 %v3544_v32, %v3393_v12  ;;  %v3396_v38 = vadd.f32 %v4450_v24, %v5675_v35  ;;  %v3387_v14 = vpop.f32.mrb[139].mxu1 }
 0x2ec   : > { %v3632_v39 = vadd.f32 %v3540_v13, %v3385_v31  ;;  %v3388_v58 = vadd.f32 %v5675_v35, %v3387_v14  ;;  %v3568_v13 = vrot.slane %v4548_v20, 1  ;;  %v4549_v31 = vld [vmem:[%s4694_s15 + $0x108] sm:$0xff]  ;;  %v4551_v14 = vld [vmem:[%s4694_s15 + $0xf8] sm:$0xff] }
 0x2ed   : > { %3666 = vst.msk [vmem:[%s5684_s27 + $0x50] sm:$0xff] %vm354_vm1, %v3634_v50  ;;  %v3635_v54 = vadd.f32 %v3546_v57, %v3396_v38  ;;  %v3570_v24 = vrot.slane %v4549_v31, 1  ;;  %v4550_v50 = vld [vmem:[%s4694_s15 + $0xf0] sm:$0xff] }
 0x2ee   : > { %3664 = vst.msk [vmem:[%s5684_s27 + $0x40] sm:$0xff] %vm354_vm1, %v3632_v39  ;;  %v3633_v59 = vadd.f32 %v3542_v15, %v3388_v58  ;;  %v3565_v38 = vrot.slane %v4550_v50, 1  ;;  %v3566_v15 = vrot.slane %v4551_v14, 1  ;;  %v4552_v58 = vld [vmem:[%s4694_s15 + $0x110] sm:$0x3] }
 0x2ef   : > { %3667 = vst.msk [vmem:[%s5684_s27 + $0x58] sm:$0xff] %vm354_vm1, %v3635_v54  ;;  %v3572_v0 = vrot.slane %v4552_v58, 1  ;;  %v3571_v28 = vsel %vm1078_vm3, %v3568_v13, %v3570_v24 }
 0x2f0   : > { %3665 = vst.msk [vmem:[%s5684_s27 + $0x48] sm:$0xff] %vm354_vm1, %v3633_v59  ;;  %v4453_v3 = vpop.f32.mrb[140].mxu1  ;;  %v3567_v46 = vsel %vm1078_vm3, %v3565_v38, %v3566_v15 }
 0x2f1   : > { %v3409_v44 = vadd.f32 %v4453_v3, %v5675_v35  ;;  %v3400_v8 = vpop.f32.mrb[141].mxu1  ;;  %v3573_v16 = vsel %vm1078_vm3, %v3570_v24, %v3572_v0  ;;  %v3569_v3 = vsel %vm1078_vm3, %v3566_v15, %v3568_v13 }
 0x2f2   : > { %v3401_v11 = vadd.f32 %v5675_v35, %v3400_v8  ;;  %v4454_v9 = vpop.f32.mrb[142].mxu1  ;;  %v4553_v8 = vld [vmem:[%s4694_s15 + $0x128] sm:$0xff] }
 0x2f3   : > { %v3638_v23 = vadd.f32 %v3553_v36, %v3409_v44  ;;  %v3412_v17 = vadd.f32 %v4454_v9, %v5675_v35  ;;  %v3403_v55 = vpop.f32.mrb[143].mxu1 }
 0x2f4   : > { %v3636_v41 = vadd.f32 %v3549_v47, %v3401_v11  ;;  %v3404_v22 = vadd.f32 %v5675_v35, %v3403_v55  ;;  %v3577_v47 = vrot.slane %v4553_v8, 1  ;;  %v4554_v11 = vld [vmem:[%s4694_s15 + $0x130] sm:$0xff]  ;;  %v4556_v55 = vld [vmem:[%s4694_s15 + $0x120] sm:$0xff] }
 0x2f5   : > { %3670 = vst.msk [vmem:[%s5684_s27 + $0x70] sm:$0xff] %vm354_vm1, %v3638_v23  ;;  %v3639_v10 = vadd.f32 %v3555_v56, %v3412_v17  ;;  %v3579_v9 = vrot.slane %v4554_v11, 1  ;;  %v4555_v23 = vld [vmem:[%s4694_s15 + $0x118] sm:$0xff] }
 0x2f6   : > { %3668 = vst.msk [vmem:[%s5684_s27 + $0x60] sm:$0xff] %vm354_vm1, %v3636_v41  ;;  %v3637_v6 = vadd.f32 %v3551_v48, %v3404_v22  ;;  %v3574_v17 = vrot.slane %v4555_v23, 1  ;;  %v3575_v48 = vrot.slane %v4556_v55, 1  ;;  %v4557_v22 = vld [vmem:[%s4694_s15 + $0x138] sm:$0x3] }
 0x2f7   : > { %3671 = vst.msk [vmem:[%s5684_s27 + $0x78] sm:$0xff] %vm354_vm1, %v3639_v10  ;;  %v3581_v21 = vrot.slane %v4557_v22, 1  ;;  %v3580_v7 = vsel %vm1078_vm3, %v3577_v47, %v3579_v9 }
 0x2f8   : > { %3669 = vst.msk [vmem:[%s5684_s27 + $0x68] sm:$0xff] %vm354_vm1, %v3637_v6  ;;  %v4457_v51 = vpop.f32.mrb[144].mxu1  ;;  %v3576_v34 = vsel %vm1078_vm3, %v3574_v17, %v3575_v48 }
 0x2f9   : > { %v3425_v43 = vadd.f32 %v4457_v51, %v5675_v35  ;;  %v3416_v37 = vpop.f32.mrb[145].mxu1  ;;  %v3582_v42 = vsel %vm1078_vm3, %v3579_v9, %v3581_v21  ;;  %v3578_v51 = vsel %vm1078_vm3, %v3575_v48, %v3577_v47 }
 0x2fa   : > { %v3417_v45 = vadd.f32 %v5675_v35, %v3416_v37  ;;  %v4458_v18 = vpop.f32.mrb[146].mxu1  ;;  %v4558_v37 = vld [vmem:[%s4694_s15 + $0x150] sm:$0xff] }
 0x2fb   : > { %v3642_v40 = vadd.f32 %v3562_v30, %v3425_v43  ;;  %v3428_v49 = vadd.f32 %v4458_v18, %v5675_v35  ;;  %v3419_v53 = vpop.f32.mrb[147].mxu1 }
 0x2fc   : > { %v3640_v32 = vadd.f32 %v3558_v25, %v3417_v45  ;;  %v3420_v12 = vadd.f32 %v5675_v35, %v3419_v53  ;;  %v3586_v25 = vrot.slane %v4558_v37, 1  ;;  %v4559_v45 = vld [vmem:[%s4694_s15 + $0x158] sm:$0xff]  ;;  %v4561_v53 = vld [vmem:[%s4694_s15 + $0x148] sm:$0xff] }
 0x2fd   : > { %3674 = vst.msk [vmem:[%s5684_s27 + $0x90] sm:$0xff] %vm354_vm1, %v3642_v40  ;;  %v3643_v57 = vadd.f32 %v3564_v29, %v3428_v49  ;;  %v3588_v18 = vrot.slane %v4559_v45, 1  ;;  %v4560_v40 = vld [vmem:[%s4694_s15 + $0x140] sm:$0xff] }
 0x2fe   : > { %3672 = vst.msk [vmem:[%s5684_s27 + $0x80] sm:$0xff] %vm354_vm1, %v3640_v32  ;;  %v3641_v39 = vadd.f32 %v3560_v60, %v3420_v12  ;;  %v3583_v49 = vrot.slane %v4560_v40, 1  ;;  %v3584_v60 = vrot.slane %v4561_v53, 1  ;;  %v4562_v12 = vld [vmem:[%s4694_s15 + $0x160] sm:$0x3] }
 0x2ff   : > { %3675 = vst.msk [vmem:[%s5684_s27 + $0x98] sm:$0xff] %vm354_vm1, %v3643_v57  ;;  %v3590_v20 = vrot.slane %v4562_v12, 1  ;;  %v3589_v31 = vsel %vm1078_vm3, %v3586_v25, %v3588_v18 }
 0x300   : > { %3673 = vst.msk [vmem:[%s5684_s27 + $0x88] sm:$0xff] %vm354_vm1, %v3641_v39  ;;  %v4461_v26 = vpop.f32.mrb[148].mxu1  ;;  %v3585_v50 = vsel %vm1078_vm3, %v3583_v49, %v3584_v60 }
 0x301   : > { %v3441_v4 = vadd.f32 %v4461_v26, %v5675_v35  ;;  %v3432_v54 = vpop.f32.mrb[149].mxu1  ;;  %v3591_v15 = vsel %vm1078_vm3, %v3588_v18, %v3590_v20  ;;  %v3587_v26 = vsel %vm1078_vm3, %v3584_v60, %v3586_v25 }
 0x302   : > { %v3433_v52 = vadd.f32 %v5675_v35, %v3432_v54  ;;  %v4462_v63 = vpop.f32.mrb[150].mxu1 }
 0x303   : > { %v3646_v59 = vadd.f32 %v3571_v28, %v3441_v4  ;;  %v3444_v2 = vadd.f32 %v4462_v63, %v5675_v35  ;;  %v3435_v62 = vpop.f32.mrb[151].mxu1 }
 0x304   : > { %v3644_v36 = vadd.f32 %v3567_v46, %v3433_v52  ;;  %v3436_v44 = vadd.f32 %v5675_v35, %v3435_v62 }
 0x305   : > { %3678 = vst.msk [vmem:[%s5684_s27 + $0xb0] sm:$0xff] %vm354_vm1, %v3646_v59  ;;  %v3647_v56 = vadd.f32 %v3573_v16, %v3444_v2 }
 0x306   : > { %3676 = vst.msk [vmem:[%s5684_s27 + $0xa0] sm:$0xff] %vm354_vm1, %v3644_v36  ;;  %v3645_v41 = vadd.f32 %v3569_v3, %v3436_v44 }
 0x307   : > { %3679 = vst.msk [vmem:[%s5684_s27 + $0xb8] sm:$0xff] %vm354_vm1, %v3647_v56 }
 0x308   : > { %3677 = vst.msk [vmem:[%s5684_s27 + $0xa8] sm:$0xff] %vm354_vm1, %v3645_v41  ;;  %v4465_v61 = vpop.f32.mrb[152].mxu1 }
 0x309   : > { %v3457_v1 = vadd.f32 %v4465_v61, %v5675_v35  ;;  %v3448_v10 = vpop.f32.mrb[153].mxu1 }
 0x30a   : > { %v3449_v5 = vadd.f32 %v5675_v35, %v3448_v10  ;;  %v4466_v33 = vpop.f32.mrb[154].mxu1 }
 0x30b   : > { %v3650_v6 = vadd.f32 %v3580_v7, %v3457_v1  ;;  %v3460_v27 = vadd.f32 %v4466_v33, %v5675_v35  ;;  %v3451_v19 = vpop.f32.mrb[155].mxu1 }
 0x30c   : > { %v3648_v30 = vadd.f32 %v3576_v34, %v3449_v5  ;;  %v3452_v43 = vadd.f32 %v5675_v35, %v3451_v19 }
 0x30d   : > { %3682 = vst.msk [vmem:[%s5684_s27 + $0xd0] sm:$0xff] %vm354_vm1, %v3650_v6  ;;  %v3651_v29 = vadd.f32 %v3582_v42, %v3460_v27 }
 0x30e   : > { %3680 = vst.msk [vmem:[%s5684_s27 + $0xc0] sm:$0xff] %vm354_vm1, %v3648_v30  ;;  %v3649_v32 = vadd.f32 %v3578_v51, %v3452_v43 }
 0x30f   : > { %3683 = vst.msk [vmem:[%s5684_s27 + $0xd8] sm:$0xff] %vm354_vm1, %v3651_v29 }
 0x310   : > { %3681 = vst.msk [vmem:[%s5684_s27 + $0xc8] sm:$0xff] %vm354_vm1, %v3649_v32  ;;  %v4469_v13 = vpop.f32.mrb[156].mxu1 }
 0x311   : > { %v3473_v24 = vadd.f32 %v4469_v13, %v5675_v35  ;;  %v3464_v57 = vpop.f32.mrb[157].mxu1 }
 0x312   : > { %v3465_v38 = vadd.f32 %v5675_v35, %v3464_v57  ;;  %v4470_v14 = vpop.f32.mrb[158].mxu1 }
 0x313   : > { %v3654_v39 = vadd.f32 %v3589_v31, %v3473_v24  ;;  %v3476_v58 = vadd.f32 %v4470_v14, %v5675_v35  ;;  %v3467_v0 = vpop.f32.mrb[159].mxu1 }
 0x314   : > { %v3652_v28 = vadd.f32 %v3585_v50, %v3465_v38  ;;  %v3468_v4 = vadd.f32 %v5675_v35, %v3467_v0 }
 0x315   : > { %3686 = vst.msk [vmem:[%s5684_s27 + $0xf0] sm:$0xff] %vm354_vm1, %v3654_v39  ;;  %v3655_v54 = vadd.f32 %v3591_v15, %v3476_v58 }
 0x316   : > { %3684 = vst.msk [vmem:[%s5684_s27 + $0xe0] sm:$0xff] %vm354_vm1, %v3652_v28  ;;  %v3653_v46 = vadd.f32 %v3587_v26, %v3468_v4 }
 0x317   : > { %3687 = vst.msk [vmem:[%s5684_s27 + $0xf8] sm:$0xff] %vm354_vm1, %v3655_v54 }
 0x318   : > { %3685 = vst.msk [vmem:[%s5684_s27 + $0xe8] sm:$0xff] %vm354_vm1, %v3653_v46 }
 0x319 PF: > { %s15_s22 = sadd.s32 1, %s4601_s22   ;;  %s5867_s18 = smov %s4593_s20 }
 0x31a   : > { %p12_p8 = scmp.ge.s32.totalorder %s15_s22, 10   ;;  %s5868_s19 = smov %s4597_s21 }
 0x31b   : > { %s5869_s20 = smov %s5872_s23  ;;  %s5870_s21 = smov %s5876_s24 }
 0x31c   :  { %14 = sbr.rel (!%p12_p8) target bundleno = 3 (0x3), region = 70 }

</bundles_post_ra>
